<compile_context>
chip_gen: v5e
topology: v5e:2x2
jax: 0.10.0
libtpu: 0.0.40
codegen_flags: <defaults>
</compile_context>

<pallas_src>
import jax
import jax.numpy as jnp
import numpy as np
from jax.experimental import pallas as pl
from jax.experimental.pallas import tpu as pltpu


# ----------------------------- Pallas kernels ------------------------------

def conv_stack_kernel(p1_ref, w1_ref, b1_ref, w2_ref, b2_ref, o_ref, p2_ref):
    """Fused conv1(3x3,p=1)+pool2+ReLU -> conv2(3x3,p=1)+pool2+ReLU (channel-major).

    Per grid step (= one batch element):
      p1_ref : [1, 9, 4096] bf16  conv1 im2col, rows = taps (ky*3+kx), lanes =
               o*1024 + PQ*256 + y'*16 + x'  where the conv1-output coordinate
               is h = 4y'+2P+i, w = 4x'+2Q+j, o = 2i+j, PQ = 2P+Q.
      w1_ref : [16, 9]   bf16 (= w1.reshape(16, 9))
      b1_ref : [16, 1]   f32
      w2_ref : [32, 144] bf16 (= w2.transpose(0,2,3,1).reshape(32,144))
      b2_ref : [32, 1]   f32
      o_ref  : [1, 32, 256] bf16  pooled conv2 output, lanes = oh2*16 + ow2
               (native PyTorch (C,H,W) flatten order)
      p2_ref : VMEM [144, 1024] bf16  conv2 im2col, rows (tap, c),
               lanes (o2, oh2, ow2)
    """
    # ---- conv1 + maxpool (max over 4 pool-offset lane blocks) + ReLU --------
    h1f = None
    for o in range(4):
        a1o = jnp.dot(w1_ref[...], p1_ref[0, :, o * 1024:(o + 1) * 1024],
                      preferred_element_type=jnp.float32)          # [16, 1024]
        h1f = a1o if h1f is None else jnp.maximum(h1f, a1o)
    h1 = jnp.maximum(h1f + b1_ref[...], 0.0).astype(jnp.bfloat16)  # [16, 1024]
    # h1[c, PQ*256 + y'*16 + x'] == pooled conv1 output at (c, oh=2y'+P, ow=2x'+Q)

    # ---- zero-extended parity slabs (aligned concat; data at lanes [128,384))
    zpad = jnp.zeros((16, 128), jnp.bfloat16)
    padded = [jnp.concatenate(
        [zpad, h1[:, pq * 256:(pq + 1) * 256], zpad], axis=1)      # [16, 512]
        for pq in range(4)]

    # column masks for the x-direction wrap of the flattened lane shift
    col = jax.lax.broadcasted_iota(jnp.int32, (16, 256), 1)
    ow2_idx = jnp.bitwise_and(col, 15)          # lane % 16  ==  ow2
    keep_right = ow2_idx != 15                  # needed when sx == +1
    keep_left = ow2_idx != 0                    # needed when sx == -1

    # ---- conv2 im2col: 16 distinct shifted slabs, 36 aligned dense stores ---
    def split(d):                               # d in {-1,0,1,2} -> (parity, shift)
        p = d % 2
        return p, (d - p) // 2

    for dy in (-1, 0, 1, 2):
        P, sy = split(dy)
        for dx in (-1, 0, 1, 2):
            Q, sx = split(dx)
            s = sy * 16 + sx
            slab = padded[2 * P + Q][:, 128 + s: 384 + s]          # [16, 256]
            if sx == 1:
                slab = jnp.where(keep_right, slab, 0).astype(jnp.bfloat16)
            elif sx == -1:
                slab = jnp.where(keep_left, slab, 0).astype(jnp.bfloat16)
            for ky in range(3):
                i2 = dy - (ky - 1)
                if i2 not in (0, 1):
                    continue
                for kx in range(3):
                    j2 = dx - (kx - 1)
                    if j2 not in (0, 1):
                        continue
                    tap, o2 = ky * 3 + kx, i2 * 2 + j2
                    p2_ref[tap * 16:(tap + 1) * 16,
                           o2 * 256:(o2 + 1) * 256] = slab

    # ---- conv2 + maxpool (max over 4 pool-offset lane blocks) + ReLU --------
    h2f = None
    for o2 in range(4):
        a2o = jnp.dot(w2_ref[...], p2_ref[:, o2 * 256:(o2 + 1) * 256],
                      preferred_element_type=jnp.float32)          # [32, 256]
        h2f = a2o if h2f is None else jnp.maximum(h2f, a2o)
    h2 = jnp.maximum(h2f + b2_ref[...], 0.0)                       # [32, 256]
    o_ref[0] = h2.astype(o_ref.dtype)


def linear_kernel(x_ref, w_ref, b_ref, o_ref):
    """o = x @ w + b   (x: [B, K] bf16, w: [K, N] bf16, b: [1, N] f32)."""
    o_ref[...] = (
        jnp.dot(x_ref[...], w_ref[...], preferred_element_type=jnp.float32)
        + b_ref[...]
    )


# ------------------------------ JAX glue -----------------------------------

def prepare_params(params):
    """One-time weight staging: transpose / cast to bf16 (no per-forward work)."""
    w1, b1, w2, b2, wl, bl = params
    w1k = w1.reshape(16, 9).astype(jnp.bfloat16)                   # [oc, ky*3+kx]
    w2k = jnp.transpose(w2, (0, 2, 3, 1)).reshape(32, 144).astype(jnp.bfloat16)
    wlk = wl.T.astype(jnp.bfloat16)                                # [8192, 128]
    return (w1k, b1.reshape(16, 1).astype(jnp.float32),
            w2k, b2.reshape(32, 1).astype(jnp.float32),
            wlk, bl.reshape(1, 128).astype(jnp.float32))


def build_conv1_patches(x_nchw):
    """conv1 im2col as [B, 9, 4096]: taps on sublanes, spatial (lane-dense) on lanes.

    Lane order: o*1024 + PQ*256 + y'*16 + x' with h = 4y'+2P+i, w = 4x'+2Q+j.
    """
    B, C, H, W = x_nchw.shape
    assert C == 1 and H == 64 and W == 64, "Linear(32*16*16) fixes 1x64x64 input"
    xpad = jnp.pad(x_nchw[:, 0], ((0, 0), (1, 1), (1, 1)))         # [B, 66, 66]
    slabs = []
    for ky in range(3):
        for kx in range(3):
            s = xpad[:, ky:ky + 64, kx:kx + 64]                    # [B, 64, 64]
            s = s.reshape(B, 16, 2, 2, 16, 2, 2)                   # [b,y',P,i,x',Q,j]
            s = s.transpose(0, 3, 6, 2, 5, 1, 4)                   # [b,i,j,P,Q,y',x']
            slabs.append(s.reshape(B, 4096))
    p1 = jnp.stack(slabs, axis=1)                                  # [B, 9, 4096]
    return p1.astype(jnp.bfloat16)


def conv_block(p1, w1k, b1k, w2k, b2k):
    B = p1.shape[0]
    return pl.pallas_call(
        conv_stack_kernel,
        out_shape=jax.ShapeDtypeStruct((B, 32, 256), jnp.bfloat16),
        grid=(B,),
        in_specs=[
            pl.BlockSpec((1, 9, 4096), lambda b: (b, 0, 0)),
            pl.BlockSpec((16, 9), lambda b: (0, 0)),
            pl.BlockSpec((16, 1), lambda b: (0, 0)),
            pl.BlockSpec((32, 144), lambda b: (0, 0)),
            pl.BlockSpec((32, 1), lambda b: (0, 0)),
        ],
        out_specs=pl.BlockSpec((1, 32, 256), lambda b: (b, 0, 0)),
        scratch_shapes=[
            pltpu.VMEM((144, 1024), jnp.bfloat16),   # conv2 im2col (lane-dense)
        ],
        compiler_params=pltpu.CompilerParams(
            dimension_semantics=("parallel",)),
    )(p1, w1k, b1k, w2k, b2k)


def linear(x2d, wlk, blk):
    B = x2d.shape[0]
    vmem = pl.BlockSpec(memory_space=pltpu.MemorySpace.VMEM)
    return pl.pallas_call(
        linear_kernel,
        out_shape=jax.ShapeDtypeStruct((B, 128), jnp.float32),
        in_specs=[vmem, vmem, vmem],
        out_specs=vmem,
    )(x2d, wlk, blk)


def imagenet_forward(x_nchw, prepped):
    w1k, b1k, w2k, b2k, wlk, blk = prepped
    B = x_nchw.shape[0]
    # TODO(synk): conv1 im2col (9x expansion) is still built by XLA host-side;
    # lane-dense [B,9,4096] layout keeps the DMA dense, but an in-kernel patch
    # build from the raw image would cut input HBM bytes another ~9x.
    p1 = build_conv1_patches(x_nchw)                       # [B, 9, 4096] bf16
    h2 = conv_block(p1, w1k, b1k, w2k, b2k)                # [B, 32, 256] bf16 (C,H,W)
    return linear(h2.reshape(B, 32 * 16 * 16), wlk, blk)   # [B, 128] f32


# -------------------------- pure-JAX reference ------------------------------

def imagenet_reference(x_nchw, params):
    w1, b1, w2, b2, wl, bl = params
    dn = ("NCHW", "OIHW", "NCHW")

    def block(y, w, b):
        y = jax.lax.conv_general_dilated(y, w, (1, 1), "SAME", dimension_numbers=dn)
        y = y + b[None, :, None, None]
        y = jax.lax.reduce_window(y, -jnp.inf, jax.lax.max,
                                  (1, 1, 2, 2), (1, 1, 2, 2), "VALID")
        return jnp.maximum(y, 0.0)

    y = block(x_nchw, w1, b1)
    y = block(y, w2, b2)
    y = y.reshape(y.shape[0], -1)                          # NCHW flatten (C-major)
    return y @ wl.T + bl[None, :]


# --------------------------------- main -------------------------------------

if __name__ == "__main__":
    key = jax.random.PRNGKey(0)
    kx_, k1, k2, k3, k4, k5, k6 = jax.random.split(key, 7)

    B = 2
    x = jax.random.normal(kx_, (B, 1, 64, 64), dtype=jnp.float32)

    # Deterministic synthetic parameters (PyTorch shapes).
    w1 = jax.random.normal(k1, (16, 1, 3, 3), dtype=jnp.float32) * 0.10
    b1 = jax.random.normal(k2, (16,), dtype=jnp.float32) * 0.10
    w2 = jax.random.normal(k3, (32, 16, 3, 3), dtype=jnp.float32) * 0.05
    b2 = jax.random.normal(k4, (32,), dtype=jnp.float32) * 0.05
    wl = jax.random.normal(k5, (128, 32 * 16 * 16), dtype=jnp.float32) * 0.01
    bl = jax.random.normal(k6, (128,), dtype=jnp.float32) * 0.01
    params = (w1, b1, w2, b2, wl, bl)

    prepped = prepare_params(params)         # one-time weight transpose / bf16 cast
    forward = jax.jit(imagenet_forward)

    out = jax.block_until_ready(forward(x, prepped))
    assert out.shape == (B, 128), out.shape

    ref = jax.block_until_ready(imagenet_reference(x, params))
    # bf16 operands with f32 accumulation -> slightly relaxed tolerance.
    np.testing.assert_allclose(np.asarray(out), np.asarray(ref),
                               rtol=2e-2, atol=2e-2)

    print("KERNEL_OK")
</pallas_src>

<mosaic_0001>
module attributes {stable_mosaic.version = 11 : i64} {
  func.func @conv_stack_kernel(%arg0: i32, %arg1: memref<1x9x4096xbf16, #tpu.memory_space<vmem>>, %arg2: memref<16x9xbf16, #tpu.memory_space<vmem>>, %arg3: memref<16x1xf32, #tpu.memory_space<vmem>>, %arg4: memref<32x144xbf16, #tpu.memory_space<vmem>>, %arg5: memref<32x1xf32, #tpu.memory_space<vmem>>, %arg6: memref<1x32x256xbf16, #tpu.memory_space<vmem>>, %arg7: memref<144x1024xbf16, #tpu.memory_space<vmem>>) attributes {dimension_semantics = [#tpu.dimension_semantics<parallel>], iteration_bounds = array<i64: 2>, scalar_prefetch = 0 : i64, scratch_operands = 1 : i64, tpu.core_type = #tpu.core_type<tc>, window_params = [{transform_indices = @transform_0, window_bounds = array<i64: 1, 9, 4096>}, {pipeline_mode = #tpu.pipeline_mode<synchronous>, transform_indices = @transform_1, window_bounds = array<i64: 16, 9>}, {pipeline_mode = #tpu.pipeline_mode<synchronous>, transform_indices = @transform_2, window_bounds = array<i64: 16, 1>}, {pipeline_mode = #tpu.pipeline_mode<synchronous>, transform_indices = @transform_3, window_bounds = array<i64: 32, 144>}, {pipeline_mode = #tpu.pipeline_mode<synchronous>, transform_indices = @transform_4, window_bounds = array<i64: 32, 1>}, {transform_indices = @transform_5, window_bounds = array<i64: 1, 32, 256>}]} {
    %c0 = arith.constant 0 : index
    %c0_0 = arith.constant 0 : index
    %0 = vector.load %arg2[%c0, %c0_0] : memref<16x9xbf16, #tpu.memory_space<vmem>>, vector<16x9xbf16>
    %c0_1 = arith.constant 0 : index
    %c0_2 = arith.constant 0 : index
    %c0_3 = arith.constant 0 : index
    %1 = vector.load %arg1[%c0_1, %c0_2, %c0_3] : memref<1x9x4096xbf16, #tpu.memory_space<vmem>>, vector<1x9x1024xbf16>
    %2 = vector.shape_cast %1 : vector<1x9x1024xbf16> to vector<9x1024xbf16>
    %cst = arith.constant dense<0.000000e+00> : vector<16x1024xf32>
    %3 = tpu.matmul %0, %2, %cst {dimension_numbers = #tpu.dot_dimension_numbers<[1], [0], [0], [1], [0, 0, 1, 1], [], []>} : vector<16x9xbf16>, vector<9x1024xbf16>, vector<16x1024xf32> -> vector<16x1024xf32>
    %c0_4 = arith.constant 0 : index
    %c0_5 = arith.constant 0 : index
    %4 = vector.load %arg2[%c0_4, %c0_5] : memref<16x9xbf16, #tpu.memory_space<vmem>>, vector<16x9xbf16>
    %c0_6 = arith.constant 0 : index
    %c0_7 = arith.constant 0 : index
    %c1024 = arith.constant 1024 : index
    %5 = vector.load %arg1[%c0_6, %c0_7, %c1024] : memref<1x9x4096xbf16, #tpu.memory_space<vmem>>, vector<1x9x1024xbf16>
    %6 = vector.shape_cast %5 : vector<1x9x1024xbf16> to vector<9x1024xbf16>
    %cst_8 = arith.constant dense<0.000000e+00> : vector<16x1024xf32>
    %7 = tpu.matmul %4, %6, %cst_8 {dimension_numbers = #tpu.dot_dimension_numbers<[1], [0], [0], [1], [0, 0, 1, 1], [], []>} : vector<16x9xbf16>, vector<9x1024xbf16>, vector<16x1024xf32> -> vector<16x1024xf32>
    %8 = arith.maximumf %3, %7 : vector<16x1024xf32>
    %c0_9 = arith.constant 0 : index
    %c0_10 = arith.constant 0 : index
    %9 = vector.load %arg2[%c0_9, %c0_10] : memref<16x9xbf16, #tpu.memory_space<vmem>>, vector<16x9xbf16>
    %c0_11 = arith.constant 0 : index
    %c0_12 = arith.constant 0 : index
    %c2048 = arith.constant 2048 : index
    %10 = vector.load %arg1[%c0_11, %c0_12, %c2048] : memref<1x9x4096xbf16, #tpu.memory_space<vmem>>, vector<1x9x1024xbf16>
    %11 = vector.shape_cast %10 : vector<1x9x1024xbf16> to vector<9x1024xbf16>
    %cst_13 = arith.constant dense<0.000000e+00> : vector<16x1024xf32>
    %12 = tpu.matmul %9, %11, %cst_13 {dimension_numbers = #tpu.dot_dimension_numbers<[1], [0], [0], [1], [0, 0, 1, 1], [], []>} : vector<16x9xbf16>, vector<9x1024xbf16>, vector<16x1024xf32> -> vector<16x1024xf32>
    %13 = arith.maximumf %8, %12 : vector<16x1024xf32>
    %c0_14 = arith.constant 0 : index
    %c0_15 = arith.constant 0 : index
    %14 = vector.load %arg2[%c0_14, %c0_15] : memref<16x9xbf16, #tpu.memory_space<vmem>>, vector<16x9xbf16>
    %c0_16 = arith.constant 0 : index
    %c0_17 = arith.constant 0 : index
    %c3072 = arith.constant 3072 : index
    %15 = vector.load %arg1[%c0_16, %c0_17, %c3072] : memref<1x9x4096xbf16, #tpu.memory_space<vmem>>, vector<1x9x1024xbf16>
    %16 = vector.shape_cast %15 : vector<1x9x1024xbf16> to vector<9x1024xbf16>
    %cst_18 = arith.constant dense<0.000000e+00> : vector<16x1024xf32>
    %17 = tpu.matmul %14, %16, %cst_18 {dimension_numbers = #tpu.dot_dimension_numbers<[1], [0], [0], [1], [0, 0, 1, 1], [], []>} : vector<16x9xbf16>, vector<9x1024xbf16>, vector<16x1024xf32> -> vector<16x1024xf32>
    %18 = arith.maximumf %13, %17 : vector<16x1024xf32>
    %c0_19 = arith.constant 0 : index
    %c0_20 = arith.constant 0 : index
    %19 = vector.load %arg3[%c0_19, %c0_20] : memref<16x1xf32, #tpu.memory_space<vmem>>, vector<16x1xf32>
    %20 = vector.broadcast %19 : vector<16x1xf32> to vector<16x1024xf32>
    %21 = arith.addf %18, %20 : vector<16x1024xf32>
    %cst_21 = arith.constant 0.000000e+00 : f32
    %22 = vector.broadcast %cst_21 : f32 to vector<16x1024xf32>
    %23 = arith.maximumf %21, %22 : vector<16x1024xf32>
    %24 = arith.truncf %23 : vector<16x1024xf32> to vector<16x1024xbf16>
    %cst_22 = arith.constant 0.000000e+00 : bf16
    %25 = vector.broadcast %cst_22 : bf16 to vector<16x128xbf16>
    %26 = vector.extract_strided_slice %24 {offsets = [0, 0], sizes = [16, 256], strides = [1, 1]} : vector<16x1024xbf16> to vector<16x256xbf16>
    %27 = tpu.concatenate %25, %26, %25 in 1 : vector<16x128xbf16>, vector<16x256xbf16>, vector<16x128xbf16> -> vector<16x512xbf16>
    %28 = vector.extract_strided_slice %24 {offsets = [0, 256], sizes = [16, 256], strides = [1, 1]} : vector<16x1024xbf16> to vector<16x256xbf16>
    %29 = tpu.concatenate %25, %28, %25 in 1 : vector<16x128xbf16>, vector<16x256xbf16>, vector<16x128xbf16> -> vector<16x512xbf16>
    %30 = vector.extract_strided_slice %24 {offsets = [0, 512], sizes = [16, 256], strides = [1, 1]} : vector<16x1024xbf16> to vector<16x256xbf16>
    %31 = tpu.concatenate %25, %30, %25 in 1 : vector<16x128xbf16>, vector<16x256xbf16>, vector<16x128xbf16> -> vector<16x512xbf16>
    %32 = vector.extract_strided_slice %24 {offsets = [0, 768], sizes = [16, 256], strides = [1, 1]} : vector<16x1024xbf16> to vector<16x256xbf16>
    %33 = tpu.concatenate %25, %32, %25 in 1 : vector<16x128xbf16>, vector<16x256xbf16>, vector<16x128xbf16> -> vector<16x512xbf16>
    %34 = tpu.iota {dimensions = array<i32: 1>} : vector<16x256xi32>
    %c15_i32 = arith.constant 15 : i32
    %35 = vector.broadcast %c15_i32 : i32 to vector<16x256xi32>
    %36 = arith.andi %34, %35 : vector<16x256xi32>
    %c15_i32_23 = arith.constant 15 : i32
    %37 = vector.broadcast %c15_i32_23 : i32 to vector<16x256xi32>
    %38 = arith.cmpi ne, %36, %37 : vector<16x256xi32>
    %c0_i32 = arith.constant 0 : i32
    %39 = vector.broadcast %c0_i32 : i32 to vector<16x256xi32>
    %40 = arith.cmpi ne, %36, %39 : vector<16x256xi32>
    %41 = vector.extract_strided_slice %33 {offsets = [0, 111], sizes = [16, 256], strides = [1, 1]} : vector<16x512xbf16> to vector<16x256xbf16>
    %c0_i32_24 = arith.constant 0 : i32
    %42 = arith.sitofp %c0_i32_24 : i32 to bf16
    %43 = vector.broadcast %42 : bf16 to vector<16x256xbf16>
    %44 = arith.select %40, %41, %43 : vector<16x256xi1>, vector<16x256xbf16>
    %c0_25 = arith.constant 0 : index
    %c0_26 = arith.constant 0 : index
    %45 = vector.load %arg7[%c0_25, %c0_26] : memref<144x1024xbf16, #tpu.memory_space<vmem>>, vector<16x256xbf16>
    tpu.vector_store %arg7[%c0_25, %c0_26], %44 {strides = array<i32>} : memref<144x1024xbf16, #tpu.memory_space<vmem>>, vector<16x256xbf16>,
    %46 = vector.extract_strided_slice %31 {offsets = [0, 112], sizes = [16, 256], strides = [1, 1]} : vector<16x512xbf16> to vector<16x256xbf16>
    %c0_27 = arith.constant 0 : index
    %c256 = arith.constant 256 : index
    %47 = vector.load %arg7[%c0_27, %c256] : memref<144x1024xbf16, #tpu.memory_space<vmem>>, vector<16x256xbf16>
    tpu.vector_store %arg7[%c0_27, %c256], %46 {strides = array<i32>} : memref<144x1024xbf16, #tpu.memory_space<vmem>>, vector<16x256xbf16>,
    %c16 = arith.constant 16 : index
    %c0_28 = arith.constant 0 : index
    %48 = vector.load %arg7[%c16, %c0_28] : memref<144x1024xbf16, #tpu.memory_space<vmem>>, vector<16x256xbf16>
    tpu.vector_store %arg7[%c16, %c0_28], %46 {strides = array<i32>} : memref<144x1024xbf16, #tpu.memory_space<vmem>>, vector<16x256xbf16>,
    %49 = vector.extract_strided_slice %33 {offsets = [0, 112], sizes = [16, 256], strides = [1, 1]} : vector<16x512xbf16> to vector<16x256xbf16>
    %c16_29 = arith.constant 16 : index
    %c256_30 = arith.constant 256 : index
    %50 = vector.load %arg7[%c16_29, %c256_30] : memref<144x1024xbf16, #tpu.memory_space<vmem>>, vector<16x256xbf16>
    tpu.vector_store %arg7[%c16_29, %c256_30], %49 {strides = array<i32>} : memref<144x1024xbf16, #tpu.memory_space<vmem>>, vector<16x256xbf16>,
    %c32 = arith.constant 32 : index
    %c0_31 = arith.constant 0 : index
    %51 = vector.load %arg7[%c32, %c0_31] : memref<144x1024xbf16, #tpu.memory_space<vmem>>, vector<16x256xbf16>
    tpu.vector_store %arg7[%c32, %c0_31], %49 {strides = array<i32>} : memref<144x1024xbf16, #tpu.memory_space<vmem>>, vector<16x256xbf16>,
    %52 = vector.extract_strided_slice %31 {offsets = [0, 113], sizes = [16, 256], strides = [1, 1]} : vector<16x512xbf16> to vector<16x256xbf16>
    %c0_i32_32 = arith.constant 0 : i32
    %53 = arith.sitofp %c0_i32_32 : i32 to bf16
    %54 = vector.broadcast %53 : bf16 to vector<16x256xbf16>
    %55 = arith.select %38, %52, %54 : vector<16x256xi1>, vector<16x256xbf16>
    %c32_33 = arith.constant 32 : index
    %c256_34 = arith.constant 256 : index
    %56 = vector.load %arg7[%c32_33, %c256_34] : memref<144x1024xbf16, #tpu.memory_space<vmem>>, vector<16x256xbf16>
    tpu.vector_store %arg7[%c32_33, %c256_34], %55 {strides = array<i32>} : memref<144x1024xbf16, #tpu.memory_space<vmem>>, vector<16x256xbf16>,
    %57 = vector.extract_strided_slice %29 {offsets = [0, 127], sizes = [16, 256], strides = [1, 1]} : vector<16x512xbf16> to vector<16x256xbf16>
    %c0_i32_35 = arith.constant 0 : i32
    %58 = arith.sitofp %c0_i32_35 : i32 to bf16
    %59 = vector.broadcast %58 : bf16 to vector<16x256xbf16>
    %60 = arith.select %40, %57, %59 : vector<16x256xi1>, vector<16x256xbf16>
    %c0_36 = arith.constant 0 : index
    %c512 = arith.constant 512 : index
    %61 = vector.load %arg7[%c0_36, %c512] : memref<144x1024xbf16, #tpu.memory_space<vmem>>, vector<16x256xbf16>
    tpu.vector_store %arg7[%c0_36, %c512], %60 {strides = array<i32>} : memref<144x1024xbf16, #tpu.memory_space<vmem>>, vector<16x256xbf16>,
    %c48 = arith.constant 48 : index
    %c0_37 = arith.constant 0 : index
    %62 = vector.load %arg7[%c48, %c0_37] : memref<144x1024xbf16, #tpu.memory_space<vmem>>, vector<16x256xbf16>
    tpu.vector_store %arg7[%c48, %c0_37], %60 {strides = array<i32>} : memref<144x1024xbf16, #tpu.memory_space<vmem>>, vector<16x256xbf16>,
    %63 = vector.extract_strided_slice %27 {offsets = [0, 128], sizes = [16, 256], strides = [1, 1]} : vector<16x512xbf16> to vector<16x256xbf16>
    %c0_38 = arith.constant 0 : index
    %c768 = arith.constant 768 : index
    %64 = vector.load %arg7[%c0_38, %c768] : memref<144x1024xbf16, #tpu.memory_space<vmem>>, vector<16x256xbf16>
    tpu.vector_store %arg7[%c0_38, %c768], %63 {strides = array<i32>} : memref<144x1024xbf16, #tpu.memory_space<vmem>>, vector<16x256xbf16>,
    %c16_39 = arith.constant 16 : index
    %c512_40 = arith.constant 512 : index
    %65 = vector.load %arg7[%c16_39, %c512_40] : memref<144x1024xbf16, #tpu.memory_space<vmem>>, vector<16x256xbf16>
    tpu.vector_store %arg7[%c16_39, %c512_40], %63 {strides = array<i32>} : memref<144x1024xbf16, #tpu.memory_space<vmem>>, vector<16x256xbf16>,
    %c48_41 = arith.constant 48 : index
    %c256_42 = arith.constant 256 : index
    %66 = vector.load %arg7[%c48_41, %c256_42] : memref<144x1024xbf16, #tpu.memory_space<vmem>>, vector<16x256xbf16>
    tpu.vector_store %arg7[%c48_41, %c256_42], %63 {strides = array<i32>} : memref<144x1024xbf16, #tpu.memory_space<vmem>>, vector<16x256xbf16>,
    %c64 = arith.constant 64 : index
    %c0_43 = arith.constant 0 : index
    %67 = vector.load %arg7[%c64, %c0_43] : memref<144x1024xbf16, #tpu.memory_space<vmem>>, vector<16x256xbf16>
    tpu.vector_store %arg7[%c64, %c0_43], %63 {strides = array<i32>} : memref<144x1024xbf16, #tpu.memory_space<vmem>>, vector<16x256xbf16>,
    %68 = vector.extract_strided_slice %29 {offsets = [0, 128], sizes = [16, 256], strides = [1, 1]} : vector<16x512xbf16> to vector<16x256xbf16>
    %c16_44 = arith.constant 16 : index
    %c768_45 = arith.constant 768 : index
    %69 = vector.load %arg7[%c16_44, %c768_45] : memref<144x1024xbf16, #tpu.memory_space<vmem>>, vector<16x256xbf16>
    tpu.vector_store %arg7[%c16_44, %c768_45], %68 {strides = array<i32>} : memref<144x1024xbf16, #tpu.memory_space<vmem>>, vector<16x256xbf16>,
    %c32_46 = arith.constant 32 : index
    %c512_47 = arith.constant 512 : index
    %70 = vector.load %arg7[%c32_46, %c512_47] : memref<144x1024xbf16, #tpu.memory_space<vmem>>, vector<16x256xbf16>
    tpu.vector_store %arg7[%c32_46, %c512_47], %68 {strides = array<i32>} : memref<144x1024xbf16, #tpu.memory_space<vmem>>, vector<16x256xbf16>,
    %c64_48 = arith.constant 64 : index
    %c256_49 = arith.constant 256 : index
    %71 = vector.load %arg7[%c64_48, %c256_49] : memref<144x1024xbf16, #tpu.memory_space<vmem>>, vector<16x256xbf16>
    tpu.vector_store %arg7[%c64_48, %c256_49], %68 {strides = array<i32>} : memref<144x1024xbf16, #tpu.memory_space<vmem>>, vector<16x256xbf16>,
    %c80 = arith.constant 80 : index
    %c0_50 = arith.constant 0 : index
    %72 = vector.load %arg7[%c80, %c0_50] : memref<144x1024xbf16, #tpu.memory_space<vmem>>, vector<16x256xbf16>
    tpu.vector_store %arg7[%c80, %c0_50], %68 {strides = array<i32>} : memref<144x1024xbf16, #tpu.memory_space<vmem>>, vector<16x256xbf16>,
    %73 = vector.extract_strided_slice %27 {offsets = [0, 129], sizes = [16, 256], strides = [1, 1]} : vector<16x512xbf16> to vector<16x256xbf16>
    %c0_i32_51 = arith.constant 0 : i32
    %74 = arith.sitofp %c0_i32_51 : i32 to bf16
    %75 = vector.broadcast %74 : bf16 to vector<16x256xbf16>
    %76 = arith.select %38, %73, %75 : vector<16x256xi1>, vector<16x256xbf16>
    %c32_52 = arith.constant 32 : index
    %c768_53 = arith.constant 768 : index
    %77 = vector.load %arg7[%c32_52, %c768_53] : memref<144x1024xbf16, #tpu.memory_space<vmem>>, vector<16x256xbf16>
    tpu.vector_store %arg7[%c32_52, %c768_53], %76 {strides = array<i32>} : memref<144x1024xbf16, #tpu.memory_space<vmem>>, vector<16x256xbf16>,
    %c80_54 = arith.constant 80 : index
    %c256_55 = arith.constant 256 : index
    %78 = vector.load %arg7[%c80_54, %c256_55] : memref<144x1024xbf16, #tpu.memory_space<vmem>>, vector<16x256xbf16>
    tpu.vector_store %arg7[%c80_54, %c256_55], %76 {strides = array<i32>} : memref<144x1024xbf16, #tpu.memory_space<vmem>>, vector<16x256xbf16>,
    %79 = vector.extract_strided_slice %33 {offsets = [0, 127], sizes = [16, 256], strides = [1, 1]} : vector<16x512xbf16> to vector<16x256xbf16>
    %c0_i32_56 = arith.constant 0 : i32
    %80 = arith.sitofp %c0_i32_56 : i32 to bf16
    %81 = vector.broadcast %80 : bf16 to vector<16x256xbf16>
    %82 = arith.select %40, %79, %81 : vector<16x256xi1>, vector<16x256xbf16>
    %c48_57 = arith.constant 48 : index
    %c512_58 = arith.constant 512 : index
    %83 = vector.load %arg7[%c48_57, %c512_58] : memref<144x1024xbf16, #tpu.memory_space<vmem>>, vector<16x256xbf16>
    tpu.vector_store %arg7[%c48_57, %c512_58], %82 {strides = array<i32>} : memref<144x1024xbf16, #tpu.memory_space<vmem>>, vector<16x256xbf16>,
    %c96 = arith.constant 96 : index
    %c0_59 = arith.constant 0 : index
    %84 = vector.load %arg7[%c96, %c0_59] : memref<144x1024xbf16, #tpu.memory_space<vmem>>, vector<16x256xbf16>
    tpu.vector_store %arg7[%c96, %c0_59], %82 {strides = array<i32>} : memref<144x1024xbf16, #tpu.memory_space<vmem>>, vector<16x256xbf16>,
    %85 = vector.extract_strided_slice %31 {offsets = [0, 128], sizes = [16, 256], strides = [1, 1]} : vector<16x512xbf16> to vector<16x256xbf16>
    %c48_60 = arith.constant 48 : index
    %c768_61 = arith.constant 768 : index
    %86 = vector.load %arg7[%c48_60, %c768_61] : memref<144x1024xbf16, #tpu.memory_space<vmem>>, vector<16x256xbf16>
    tpu.vector_store %arg7[%c48_60, %c768_61], %85 {strides = array<i32>} : memref<144x1024xbf16, #tpu.memory_space<vmem>>, vector<16x256xbf16>,
    %c64_62 = arith.constant 64 : index
    %c512_63 = arith.constant 512 : index
    %87 = vector.load %arg7[%c64_62, %c512_63] : memref<144x1024xbf16, #tpu.memory_space<vmem>>, vector<16x256xbf16>
    tpu.vector_store %arg7[%c64_62, %c512_63], %85 {strides = array<i32>} : memref<144x1024xbf16, #tpu.memory_space<vmem>>, vector<16x256xbf16>,
    %c96_64 = arith.constant 96 : index
    %c256_65 = arith.constant 256 : index
    %88 = vector.load %arg7[%c96_64, %c256_65] : memref<144x1024xbf16, #tpu.memory_space<vmem>>, vector<16x256xbf16>
    tpu.vector_store %arg7[%c96_64, %c256_65], %85 {strides = array<i32>} : memref<144x1024xbf16, #tpu.memory_space<vmem>>, vector<16x256xbf16>,
    %c112 = arith.constant 112 : index
    %c0_66 = arith.constant 0 : index
    %89 = vector.load %arg7[%c112, %c0_66] : memref<144x1024xbf16, #tpu.memory_space<vmem>>, vector<16x256xbf16>
    tpu.vector_store %arg7[%c112, %c0_66], %85 {strides = array<i32>} : memref<144x1024xbf16, #tpu.memory_space<vmem>>, vector<16x256xbf16>,
    %90 = vector.extract_strided_slice %33 {offsets = [0, 128], sizes = [16, 256], strides = [1, 1]} : vector<16x512xbf16> to vector<16x256xbf16>
    %c64_67 = arith.constant 64 : index
    %c768_68 = arith.constant 768 : index
    %91 = vector.load %arg7[%c64_67, %c768_68] : memref<144x1024xbf16, #tpu.memory_space<vmem>>, vector<16x256xbf16>
    tpu.vector_store %arg7[%c64_67, %c768_68], %90 {strides = array<i32>} : memref<144x1024xbf16, #tpu.memory_space<vmem>>, vector<16x256xbf16>,
    %c80_69 = arith.constant 80 : index
    %c512_70 = arith.constant 512 : index
    %92 = vector.load %arg7[%c80_69, %c512_70] : memref<144x1024xbf16, #tpu.memory_space<vmem>>, vector<16x256xbf16>
    tpu.vector_store %arg7[%c80_69, %c512_70], %90 {strides = array<i32>} : memref<144x1024xbf16, #tpu.memory_space<vmem>>, vector<16x256xbf16>,
    %c112_71 = arith.constant 112 : index
    %c256_72 = arith.constant 256 : index
    %93 = vector.load %arg7[%c112_71, %c256_72] : memref<144x1024xbf16, #tpu.memory_space<vmem>>, vector<16x256xbf16>
    tpu.vector_store %arg7[%c112_71, %c256_72], %90 {strides = array<i32>} : memref<144x1024xbf16, #tpu.memory_space<vmem>>, vector<16x256xbf16>,
    %c128 = arith.constant 128 : index
    %c0_73 = arith.constant 0 : index
    %94 = vector.load %arg7[%c128, %c0_73] : memref<144x1024xbf16, #tpu.memory_space<vmem>>, vector<16x256xbf16>
    tpu.vector_store %arg7[%c128, %c0_73], %90 {strides = array<i32>} : memref<144x1024xbf16, #tpu.memory_space<vmem>>, vector<16x256xbf16>,
    %95 = vector.extract_strided_slice %31 {offsets = [0, 129], sizes = [16, 256], strides = [1, 1]} : vector<16x512xbf16> to vector<16x256xbf16>
    %c0_i32_74 = arith.constant 0 : i32
    %96 = arith.sitofp %c0_i32_74 : i32 to bf16
    %97 = vector.broadcast %96 : bf16 to vector<16x256xbf16>
    %98 = arith.select %38, %95, %97 : vector<16x256xi1>, vector<16x256xbf16>
    %c80_75 = arith.constant 80 : index
    %c768_76 = arith.constant 768 : index
    %99 = vector.load %arg7[%c80_75, %c768_76] : memref<144x1024xbf16, #tpu.memory_space<vmem>>, vector<16x256xbf16>
    tpu.vector_store %arg7[%c80_75, %c768_76], %98 {strides = array<i32>} : memref<144x1024xbf16, #tpu.memory_space<vmem>>, vector<16x256xbf16>,
    %c128_77 = arith.constant 128 : index
    %c256_78 = arith.constant 256 : index
    %100 = vector.load %arg7[%c128_77, %c256_78] : memref<144x1024xbf16, #tpu.memory_space<vmem>>, vector<16x256xbf16>
    tpu.vector_store %arg7[%c128_77, %c256_78], %98 {strides = array<i32>} : memref<144x1024xbf16, #tpu.memory_space<vmem>>, vector<16x256xbf16>,
    %101 = vector.extract_strided_slice %29 {offsets = [0, 143], sizes = [16, 256], strides = [1, 1]} : vector<16x512xbf16> to vector<16x256xbf16>
    %c0_i32_79 = arith.constant 0 : i32
    %102 = arith.sitofp %c0_i32_79 : i32 to bf16
    %103 = vector.broadcast %102 : bf16 to vector<16x256xbf16>
    %104 = arith.select %40, %101, %103 : vector<16x256xi1>, vector<16x256xbf16>
    %c96_80 = arith.constant 96 : index
    %c512_81 = arith.constant 512 : index
    %105 = vector.load %arg7[%c96_80, %c512_81] : memref<144x1024xbf16, #tpu.memory_space<vmem>>, vector<16x256xbf16>
    tpu.vector_store %arg7[%c96_80, %c512_81], %104 {strides = array<i32>} : memref<144x1024xbf16, #tpu.memory_space<vmem>>, vector<16x256xbf16>,
    %106 = vector.extract_strided_slice %27 {offsets = [0, 144], sizes = [16, 256], strides = [1, 1]} : vector<16x512xbf16> to vector<16x256xbf16>
    %c96_82 = arith.constant 96 : index
    %c768_83 = arith.constant 768 : index
    %107 = vector.load %arg7[%c96_82, %c768_83] : memref<144x1024xbf16, #tpu.memory_space<vmem>>, vector<16x256xbf16>
    tpu.vector_store %arg7[%c96_82, %c768_83], %106 {strides = array<i32>} : memref<144x1024xbf16, #tpu.memory_space<vmem>>, vector<16x256xbf16>,
    %c112_84 = arith.constant 112 : index
    %c512_85 = arith.constant 512 : index
    %108 = vector.load %arg7[%c112_84, %c512_85] : memref<144x1024xbf16, #tpu.memory_space<vmem>>, vector<16x256xbf16>
    tpu.vector_store %arg7[%c112_84, %c512_85], %106 {strides = array<i32>} : memref<144x1024xbf16, #tpu.memory_space<vmem>>, vector<16x256xbf16>,
    %109 = vector.extract_strided_slice %29 {offsets = [0, 144], sizes = [16, 256], strides = [1, 1]} : vector<16x512xbf16> to vector<16x256xbf16>
    %c112_86 = arith.constant 112 : index
    %c768_87 = arith.constant 768 : index
    %110 = vector.load %arg7[%c112_86, %c768_87] : memref<144x1024xbf16, #tpu.memory_space<vmem>>, vector<16x256xbf16>
    tpu.vector_store %arg7[%c112_86, %c768_87], %109 {strides = array<i32>} : memref<144x1024xbf16, #tpu.memory_space<vmem>>, vector<16x256xbf16>,
    %c128_88 = arith.constant 128 : index
    %c512_89 = arith.constant 512 : index
    %111 = vector.load %arg7[%c128_88, %c512_89] : memref<144x1024xbf16, #tpu.memory_space<vmem>>, vector<16x256xbf16>
    tpu.vector_store %arg7[%c128_88, %c512_89], %109 {strides = array<i32>} : memref<144x1024xbf16, #tpu.memory_space<vmem>>, vector<16x256xbf16>,
    %112 = vector.extract_strided_slice %27 {offsets = [0, 145], sizes = [16, 256], strides = [1, 1]} : vector<16x512xbf16> to vector<16x256xbf16>
    %c0_i32_90 = arith.constant 0 : i32
    %113 = arith.sitofp %c0_i32_90 : i32 to bf16
    %114 = vector.broadcast %113 : bf16 to vector<16x256xbf16>
    %115 = arith.select %38, %112, %114 : vector<16x256xi1>, vector<16x256xbf16>
    %c128_91 = arith.constant 128 : index
    %c768_92 = arith.constant 768 : index
    %116 = vector.load %arg7[%c128_91, %c768_92] : memref<144x1024xbf16, #tpu.memory_space<vmem>>, vector<16x256xbf16>
    tpu.vector_store %arg7[%c128_91, %c768_92], %115 {strides = array<i32>} : memref<144x1024xbf16, #tpu.memory_space<vmem>>, vector<16x256xbf16>,
    %c0_93 = arith.constant 0 : index
    %c0_94 = arith.constant 0 : index
    %117 = vector.load %arg4[%c0_93, %c0_94] : memref<32x144xbf16, #tpu.memory_space<vmem>>, vector<32x144xbf16>
    %c0_95 = arith.constant 0 : index
    %c0_96 = arith.constant 0 : index
    %118 = vector.load %arg7[%c0_95, %c0_96] : memref<144x1024xbf16, #tpu.memory_space<vmem>>, vector<144x256xbf16>
    %cst_97 = arith.constant dense<0.000000e+00> : vector<32x256xf32>
    %119 = tpu.matmul %117, %118, %cst_97 {dimension_numbers = #tpu.dot_dimension_numbers<[1], [0], [0], [1], [0, 0, 1, 1], [], []>} : vector<32x144xbf16>, vector<144x256xbf16>, vector<32x256xf32> -> vector<32x256xf32>
    %c0_98 = arith.constant 0 : index
    %c0_99 = arith.constant 0 : index
    %120 = vector.load %arg4[%c0_98, %c0_99] : memref<32x144xbf16, #tpu.memory_space<vmem>>, vector<32x144xbf16>
    %c0_100 = arith.constant 0 : index
    %c256_101 = arith.constant 256 : index
    %121 = vector.load %arg7[%c0_100, %c256_101] : memref<144x1024xbf16, #tpu.memory_space<vmem>>, vector<144x256xbf16>
    %cst_102 = arith.constant dense<0.000000e+00> : vector<32x256xf32>
    %122 = tpu.matmul %120, %121, %cst_102 {dimension_numbers = #tpu.dot_dimension_numbers<[1], [0], [0], [1], [0, 0, 1, 1], [], []>} : vector<32x144xbf16>, vector<144x256xbf16>, vector<32x256xf32> -> vector<32x256xf32>
    %123 = arith.maximumf %119, %122 : vector<32x256xf32>
    %c0_103 = arith.constant 0 : index
    %c0_104 = arith.constant 0 : index
    %124 = vector.load %arg4[%c0_103, %c0_104] : memref<32x144xbf16, #tpu.memory_space<vmem>>, vector<32x144xbf16>
    %c0_105 = arith.constant 0 : index
    %c512_106 = arith.constant 512 : index
    %125 = vector.load %arg7[%c0_105, %c512_106] : memref<144x1024xbf16, #tpu.memory_space<vmem>>, vector<144x256xbf16>
    %cst_107 = arith.constant dense<0.000000e+00> : vector<32x256xf32>
    %126 = tpu.matmul %124, %125, %cst_107 {dimension_numbers = #tpu.dot_dimension_numbers<[1], [0], [0], [1], [0, 0, 1, 1], [], []>} : vector<32x144xbf16>, vector<144x256xbf16>, vector<32x256xf32> -> vector<32x256xf32>
    %127 = arith.maximumf %123, %126 : vector<32x256xf32>
    %c0_108 = arith.constant 0 : index
    %c0_109 = arith.constant 0 : index
    %128 = vector.load %arg4[%c0_108, %c0_109] : memref<32x144xbf16, #tpu.memory_space<vmem>>, vector<32x144xbf16>
    %c0_110 = arith.constant 0 : index
    %c768_111 = arith.constant 768 : index
    %129 = vector.load %arg7[%c0_110, %c768_111] : memref<144x1024xbf16, #tpu.memory_space<vmem>>, vector<144x256xbf16>
    %cst_112 = arith.constant dense<0.000000e+00> : vector<32x256xf32>
    %130 = tpu.matmul %128, %129, %cst_112 {dimension_numbers = #tpu.dot_dimension_numbers<[1], [0], [0], [1], [0, 0, 1, 1], [], []>} : vector<32x144xbf16>, vector<144x256xbf16>, vector<32x256xf32> -> vector<32x256xf32>
    %131 = arith.maximumf %127, %130 : vector<32x256xf32>
    %c0_113 = arith.constant 0 : index
    %c0_114 = arith.constant 0 : index
    %132 = vector.load %arg5[%c0_113, %c0_114] : memref<32x1xf32, #tpu.memory_space<vmem>>, vector<32x1xf32>
    %133 = vector.broadcast %132 : vector<32x1xf32> to vector<32x256xf32>
    %134 = arith.addf %131, %133 : vector<32x256xf32>
    %cst_115 = arith.constant 0.000000e+00 : f32
    %135 = vector.broadcast %cst_115 : f32 to vector<32x256xf32>
    %136 = arith.maximumf %134, %135 : vector<32x256xf32>
    %137 = arith.truncf %136 : vector<32x256xf32> to vector<32x256xbf16>
    %c0_116 = arith.constant 0 : index
    %c0_117 = arith.constant 0 : index
    %c0_118 = arith.constant 0 : index
    %138 = vector.load %arg6[%c0_116, %c0_117, %c0_118] : memref<1x32x256xbf16, #tpu.memory_space<vmem>>, vector<1x32x256xbf16>
    %139 = vector.shape_cast %138 : vector<1x32x256xbf16> to vector<32x256xbf16>
    %140 = vector.shape_cast %137 : vector<32x256xbf16> to vector<1x32x256xbf16>
    tpu.vector_store %arg6[%c0_116, %c0_117, %c0_118], %140 {strides = array<i32>} : memref<1x32x256xbf16, #tpu.memory_space<vmem>>, vector<1x32x256xbf16>,
    return
  }
  func.func @transform_0(%arg0: i32) -> (i32, i32, i32) {
    %c0_i32 = arith.constant 0 : i32
    %c0_i32_0 = arith.constant 0 : i32
    %c0_i32_1 = arith.constant 0 : i32
    return %arg0, %c0_i32, %c0_i32_0 : i32, i32, i32
  }
  func.func @transform_1(%arg0: i32) -> (i32, i32) {
    %c0_i32 = arith.constant 0 : i32
    %c0_i32_0 = arith.constant 0 : i32
    %c0_i32_1 = arith.constant 0 : i32
    return %c0_i32, %c0_i32_0 : i32, i32
  }
  func.func @transform_2(%arg0: i32) -> (i32, i32) {
    %c0_i32 = arith.constant 0 : i32
    %c0_i32_0 = arith.constant 0 : i32
    %c0_i32_1 = arith.constant 0 : i32
    return %c0_i32, %c0_i32_0 : i32, i32
  }
  func.func @transform_3(%arg0: i32) -> (i32, i32) {
    %c0_i32 = arith.constant 0 : i32
    %c0_i32_0 = arith.constant 0 : i32
    %c0_i32_1 = arith.constant 0 : i32
    return %c0_i32, %c0_i32_0 : i32, i32
  }
  func.func @transform_4(%arg0: i32) -> (i32, i32) {
    %c0_i32 = arith.constant 0 : i32
    %c0_i32_0 = arith.constant 0 : i32
    %c0_i32_1 = arith.constant 0 : i32
    return %c0_i32, %c0_i32_0 : i32, i32
  }
  func.func @transform_5(%arg0: i32) -> (i32, i32, i32) {
    %c0_i32 = arith.constant 0 : i32
    %c0_i32_0 = arith.constant 0 : i32
    %c0_i32_1 = arith.constant 0 : i32
    return %arg0, %c0_i32, %c0_i32_0 : i32, i32, i32
  }
}

module attributes {stable_mosaic.version = 11 : i64} {
  func.func @linear_kernel(%arg0: memref<2x8192xbf16, #tpu.memory_space<vmem>>, %arg1: memref<8192x128xbf16, #tpu.memory_space<vmem>>, %arg2: memref<1x128xf32, #tpu.memory_space<vmem>>, %arg3: memref<2x128xf32, #tpu.memory_space<vmem>>) attributes {dimension_semantics = [], scalar_prefetch = 0 : i64, scratch_operands = 0 : i64, tpu.core_type = #tpu.core_type<tc>} {
    %c0 = arith.constant 0 : index
    %c0_0 = arith.constant 0 : index
    %0 = vector.load %arg0[%c0, %c0_0] : memref<2x8192xbf16, #tpu.memory_space<vmem>>, vector<2x8192xbf16>
    %c0_1 = arith.constant 0 : index
    %c0_2 = arith.constant 0 : index
    %1 = vector.load %arg1[%c0_1, %c0_2] : memref<8192x128xbf16, #tpu.memory_space<vmem>>, vector<8192x128xbf16>
    %cst = arith.constant dense<0.000000e+00> : vector<2x128xf32>
    %2 = tpu.matmul %0, %1, %cst {dimension_numbers = #tpu.dot_dimension_numbers<[1], [0], [0], [1], [0, 0, 1, 1], [], []>} : vector<2x8192xbf16>, vector<8192x128xbf16>, vector<2x128xf32> -> vector<2x128xf32>
    %c0_3 = arith.constant 0 : index
    %c0_4 = arith.constant 0 : index
    %3 = vector.load %arg2[%c0_3, %c0_4] : memref<1x128xf32, #tpu.memory_space<vmem>>, vector<1x128xf32>
    %4 = vector.broadcast %3 : vector<1x128xf32> to vector<2x128xf32>
    %5 = arith.addf %2, %4 : vector<2x128xf32>
    %c0_5 = arith.constant 0 : index
    %c0_6 = arith.constant 0 : index
    %6 = vector.load %arg3[%c0_5, %c0_6] : memref<2x128xf32, #tpu.memory_space<vmem>>, vector<2x128xf32>
    tpu.vector_store %arg3[%c0_5, %c0_6], %5 {strides = array<i32>} : memref<2x128xf32, #tpu.memory_space<vmem>>, vector<2x128xf32>,
    return
  }
}

</mosaic_0001>

<bundles_post_ra>
// kernel: imagenet_forward.2
= control target key start
LH: loop header
LB: loop body
LE: loop exit
PB: predicated region body
PF: predicated region fallthrough
CT: control target
= control target key end

     0   :  { %s3187_s18 = smov 0   ;;  %s4109_s0 = inlined_call_operand.vmem [shape: bf16[2,9,4096], index: 0, kind: input, shape index: {}]   ;;  %s4110_s1 = inlined_call_operand.vmem [shape: bf16[16,9], index: 1, kind: input, shape index: {}]   ;;  %s4111_s2 = inlined_call_operand.vmem [shape: f32[16,1], index: 2, kind: input, shape index: {}]   ;;  %s4112_s3 = inlined_call_operand.vmem [shape: bf16[32,144], index: 3, kind: input, shape index: {}]   ;;  %s4113_s4 = inlined_call_operand.vmem [shape: f32[32,1], index: 4, kind: input, shape index: {}]   ;;  %s4114_s5 = inlined_call_operand.vmem [shape: bf16[2,32,256], index: 5, kind: output, shape index: {}]  }
   0x1 LB: > { %s2512_s19 = sadd.s32 4294967295, %s3145_s18   ;;  %p2516_p0 = scmp.ge.s32.totalorder %s3145_s18, 1  ;;  %s3145_s18 = sphi %s3187_s18, %s15_s18  }
   0x2   : > { %p187_p1 = scmp.lt.s32.totalorder %s3145_s18, 3 }
   0x4   : > { %p188_p2 = pnand %p2516_p0, %p187_p1 }
   0x6   : > { %191 = sbr.rel (%p188_p2) target bundleno = 887 (0x377), region = 40 }
   0xb   : > { %p215_p3 = scmp.lt.s32.totalorder %s2512_s19, 1  ;;  %vm279_vm0 = vcmask 1043456   ;;  %vm280_vm1 = vcmask 1044480   ;;  %v3147_v0 = vmov 65535   ;;  %vm275_vm2 = vcmask 72704   ;;  %v3217_v14 = vld [vmem:[%s4110_s1] sm:$0xff] }
   0xc   : > { %v281_v1 = vsel %vm279_vm0, 4294967295, %v3147_v0  ;;  %s3149_s28 = smov 127   ;;  %s3150_s29 = smov 111   ;;  %vm1271_vm9 = vcmask 1039360   ;;  %vm1312_vm10 = vcmask 7168  }
   0xd   : > { %s4146_s19 = smov (!%p215_p3, %s2512_s19), 1  ;;  %v3204_v2 = vsel %vm280_vm1, %v281_v1, 0  ;;  %s3151_s7 = smov 1  }
   0xe   : > { %s3007_s20 = sshll.u32 %s4146_s19, 8  ;;  %s3152_s8 = smov 113  }
   0xf   : > { %s3202_s23 = scalar_lea.vmem %s4109_s0, %s3007_s20  ;;  %s3153_s9 = smov 16  }
  0x10   : > { %v2527_v3 = vld [vmem:[%s3202_s23] sm:$0xf]  ;;  %v3010_v5 = vld [vmem:[%s3202_s23 + $0x4] sm:$0xf]  ;;  %v2535_v8 = vld [vmem:[%s3202_s23 + $0x8] sm:$0xf] }
  0x11   : > { %v3014_v4 = vld [vmem:[%s3202_s23 + $0x7c] sm:$0x10]  ;;  %v2529_v7 = vld [vmem:[%s3202_s23 + $0x80] sm:$0x10]  ;;  %v3015_v9 = vld [vmem:[%s3202_s23 + $0x84] sm:$0x10] }
  0x12   : > { %v2528_v6 = vor.u32 %v3014_v4, %v2527_v3  ;;  %v2532_v10 = vor.u32 %v3010_v5, %v2529_v7  ;;  %v2536_v11 = vor.u32 %v3015_v9, %v2535_v8  ;;  %v3011_v12 = vld [vmem:[%s3202_s23 + $0xc] sm:$0xf]  ;;  %v2543_v15 = vld [vmem:[%s3202_s23 + $0x10] sm:$0xf]  ;;  %v3012_v19 = vld [vmem:[%s3202_s23 + $0x14] sm:$0xf] }
  0x13   : > { %v2537_v13 = vld [vmem:[%s3202_s23 + $0x88] sm:$0x10]  ;;  %v3016_v18 = vld [vmem:[%s3202_s23 + $0x8c] sm:$0x10]  ;;  %v2545_v20 = vld [vmem:[%s3202_s23 + $0x90] sm:$0x10] }
  0x14   : > { %v284_v16 = vand.u32 %v2528_v6, %v3204_v2  ;;  %v2540_v17 = vor.u32 %v3011_v12, %v2537_v13  ;;  %v287_v21 = vand.u32 %v2532_v10, %v3204_v2  ;;  %v290_v22 = vand.u32 %v2536_v11, %v3204_v2  ;;  %v2551_v25 = vld [vmem:[%s3202_s23 + $0x18] sm:$0xf]  ;;  %v3013_v27 = vld [vmem:[%s3202_s23 + $0x1c] sm:$0xf]  ;;  %v2567_v31 = vld [vmem:[%s3202_s23 + $0x20] sm:$0xf] }
  0x15   : > { %v2544_v23 = vor.u32 %v3016_v18, %v2543_v15  ;;  %v2548_v24 = vor.u32 %v3012_v19, %v2545_v20  ;;  %v3017_v26 = vld [vmem:[%s3202_s23 + $0x94] sm:$0x10]  ;;  %v2553_v30 = vld [vmem:[%s3202_s23 + $0x98] sm:$0x10]  ;;  %v3022_v32 = vld [vmem:[%s3202_s23 + $0x9c] sm:$0x10] }
  0x16   : > { %314 = vmatpush.bf16.msra.mxu0 %v284_v16  ;;  %v293_v28 = vand.u32 %v2540_v17, %v3204_v2  ;;  %v2552_v29 = vor.u32 %v3017_v26, %v2551_v25  ;;  %328 = vmatpush.bf16.msra.mxu1 %v287_v21  ;;  %v2556_v35 = vor.u32 %v3013_v27, %v2553_v30  ;;  %v3018_v36 = vld [vmem:[%s3202_s23 + $0x24] sm:$0xf]  ;;  %v2575_v38 = vld [vmem:[%s3202_s23 + $0x28] sm:$0xf]  ;;  %v3019_v43 = vld [vmem:[%s3202_s23 + $0x2c] sm:$0xf] }
  0x17   : > { %342 = vmatpush.bf16.msra.mxu2 %v290_v22  ;;  %v296_v33 = vand.u32 %v2544_v23, %v3204_v2  ;;  %v299_v34 = vand.u32 %v2548_v24, %v3204_v2  ;;  %v2569_v37 = vld [vmem:[%s3202_s23 + $0xa0] sm:$0x10]  ;;  %v2568_v40 = vor.u32 %v3022_v32, %v2567_v31  ;;  %v3023_v42 = vld [vmem:[%s3202_s23 + $0xa4] sm:$0x10]  ;;  %v2577_v44 = vld [vmem:[%s3202_s23 + $0xa8] sm:$0x10] }
  0x18   : > { %356 = vmatpush.bf16.msra.mxu3 %v293_v28  ;;  %v302_v39 = vand.u32 %v2552_v29, %v3204_v2  ;;  %v2572_v41 = vor.u32 %v3018_v36, %v2569_v37  ;;  %v305_v45 = vand.u32 %v2556_v35, %v3204_v2  ;;  %v2576_v46 = vor.u32 %v3023_v42, %v2575_v38  ;;  %v2583_v52 = vld [vmem:[%s3202_s23 + $0x30] sm:$0xf]  ;;  %v3020_v54 = vld [vmem:[%s3202_s23 + $0x34] sm:$0xf]  ;;  %v2591_v56 = vld [vmem:[%s3202_s23 + $0x38] sm:$0xf] }
  0x19   : > { %2557 = vmatmul.msk.bf16.vlgmr.msra.gmra.mxu0 %vm275_vm2, %v3217_v14  ;;  %v2580_v47 = vor.u32 %v3019_v43, %v2577_v44  ;;  %2558 = vmatmul.msk.bf16.vlgmr.msra.gmra.mxu1 %vm275_vm2, %v3217_v14  ;;  %v460_v48 = vand.u32 %v2568_v40, %v3204_v2  ;;  %v3024_v53 = vld [vmem:[%s3202_s23 + $0xac] sm:$0x10]  ;;  %v2585_v55 = vld [vmem:[%s3202_s23 + $0xb0] sm:$0x10]  ;;  %v3025_v57 = vld [vmem:[%s3202_s23 + $0xb4] sm:$0x10] }
  0x1a   : > { %384 = vmatpush.bf16.msrb.mxu1 %v299_v34  ;;  %2559 = vmatmul.msk.bf16.vlgmr.msra.gmra.mxu2 %vm275_vm2, %v3217_v14  ;;  %v463_v49 = vand.u32 %v2572_v41, %v3204_v2  ;;  %v466_v50 = vand.u32 %v2576_v46, %v3204_v2  ;;  %v3021_v58 = vld [vmem:[%s3202_s23 + $0x3c] sm:$0xf]  ;;  %v2584_v60 = vor.u32 %v3024_v53, %v2583_v52  ;;  %v2607_v5 = vld [vmem:[%s3202_s23 + $0x40] sm:$0xf]  ;;  %v3026_v7 = vld [vmem:[%s3202_s23 + $0x44] sm:$0xf]  ;;  %v1087_v53 = vlaneseq }
  0x1b   : > { %2560 = vmatmul.msk.bf16.vlgmr.msra.gmra.mxu3 %vm275_vm2, %v3217_v14  ;;  %370 = vmatpush.bf16.msrb.mxu0 %v296_v33  ;;  %v469_v51 = vand.u32 %v2580_v47, %v3204_v2  ;;  %v2593_v59 = vld [vmem:[%s3202_s23 + $0xb8] sm:$0x10]  ;;  %v2588_v61 = vor.u32 %v3020_v54, %v2585_v55  ;;  %v2592_v62 = vor.u32 %v3025_v57, %v2591_v56  ;;  %v3030_v6 = vld [vmem:[%s3202_s23 + $0xbc] sm:$0x10]  ;;  %v2609_v8 = vld [vmem:[%s3202_s23 + $0xc0] sm:$0x10] }
  0x1c   : > { %398 = vmatpush.bf16.msrb.mxu2 %v302_v39  ;;  %412 = vmatpush.bf16.msrb.mxu3 %v305_v45  ;;  %v2596_v63 = vor.u32 %v3021_v58, %v2593_v59  ;;  %v472_v0 = vand.u32 %v2584_v60, %v3204_v2  ;;  %v2615_v9 = vld [vmem:[%s3202_s23 + $0x48] sm:$0xf]  ;;  %v3027_v11 = vld [vmem:[%s3202_s23 + $0x4c] sm:$0xf]  ;;  %v2608_v13 = vor.u32 %v3030_v6, %v2607_v5  ;;  %v2623_v22 = vld [vmem:[%s3202_s23 + $0x50] sm:$0xf] }
  0x1d   : > { %v475_v1 = vand.u32 %v2588_v61, %v3204_v2  ;;  %v478_v3 = vand.u32 %v2592_v62, %v3204_v2  ;;  %v3031_v10 = vld [vmem:[%s3202_s23 + $0xc4] sm:$0x10]  ;;  %v2617_v12 = vld [vmem:[%s3202_s23 + $0xc8] sm:$0x10]  ;;  %v2612_v15 = vor.u32 %v3026_v7, %v2609_v8  ;;  %v3032_v23 = vld [vmem:[%s3202_s23 + $0xcc] sm:$0x10] }
  0x1e   : > { %504 = vmatpush.bf16.msra.mxu1 %v463_v49  ;;  %v481_v4 = vand.u32 %v2596_v63, %v3204_v2  ;;  %v2616_v16 = vor.u32 %v3031_v10, %v2615_v9  ;;  %v2620_v17 = vor.u32 %v3027_v11, %v2617_v12  ;;  %v652_v18 = vand.u32 %v2608_v13, %v3204_v2  ;;  %v3028_v24 = vld [vmem:[%s3202_s23 + $0x54] sm:$0xf]  ;;  %v2631_v26 = vld [vmem:[%s3202_s23 + $0x58] sm:$0xf]  ;;  %v3029_v28 = vld [vmem:[%s3202_s23 + $0x5c] sm:$0xf] }
  0x1f   : > { %490 = vmatpush.bf16.msra.mxu0 %v460_v48  ;;  %v655_v19 = vand.u32 %v2612_v15, %v3204_v2  ;;  %v2625_v25 = vld [vmem:[%s3202_s23 + $0xd0] sm:$0x10]  ;;  %v3033_v27 = vld [vmem:[%s3202_s23 + $0xd4] sm:$0x10]  ;;  %v2633_v29 = vld [vmem:[%s3202_s23 + $0xd8] sm:$0x10]  ;;  %v2624_v30 = vor.u32 %v3032_v23, %v2623_v22 }
  0x20   : > { %518 = vmatpush.bf16.msra.mxu2 %v466_v50  ;;  %532 = vmatpush.bf16.msra.mxu3 %v469_v51  ;;  %v658_v20 = vand.u32 %v2616_v16, %v3204_v2  ;;  %v661_v21 = vand.u32 %v2620_v17, %v3204_v2  ;;  %v2628_v31 = vor.u32 %v3028_v24, %v2625_v25  ;;  %v2647_v38 = vld [vmem:[%s3202_s23 + $0x60] sm:$0xf]  ;;  %v3034_v40 = vld [vmem:[%s3202_s23 + $0x64] sm:$0xf]  ;;  %v2655_v42 = vld [vmem:[%s3202_s23 + $0x68] sm:$0xf] }
  0x21   : > { %v2632_v32 = vor.u32 %v3033_v27, %v2631_v26  ;;  %v2636_v33 = vor.u32 %v3029_v28, %v2633_v29  ;;  %v664_v34 = vand.u32 %v2624_v30, %v3204_v2  ;;  %v3038_v39 = vld [vmem:[%s3202_s23 + $0xdc] sm:$0x10]  ;;  %v2649_v41 = vld [vmem:[%s3202_s23 + $0xe0] sm:$0x10]  ;;  %v3039_v43 = vld [vmem:[%s3202_s23 + $0xe4] sm:$0x10] }
  0x22   : > { %v667_v35 = vand.u32 %v2628_v31, %v3204_v2  ;;  %v3035_v44 = vld [vmem:[%s3202_s23 + $0x6c] sm:$0xf]  ;;  %v2648_v46 = vor.u32 %v3038_v39, %v2647_v38  ;;  %v2652_v47 = vor.u32 %v3034_v40, %v2649_v41  ;;  %v2656_v48 = vor.u32 %v3039_v43, %v2655_v42  ;;  %v995_v56 = vld [vmem:[%s4111_s2] sm:$0xff]  ;;  %v2663_v61 = vld [vmem:[%s3202_s23 + $0x70] sm:$0xf]  ;;  %s3154_s10 = smov 17  }
  0x23   : > { %v670_v36 = vand.u32 %v2632_v32, %v3204_v2  ;;  %v673_v37 = vand.u32 %v2636_v33, %v3204_v2  ;;  %v2657_v45 = vld [vmem:[%s3202_s23 + $0xe8] sm:$0x10]  ;;  %v1088_v55 = vand.u32 127, %v1087_v53  ;;  %v4115_v59 = vmov 0   ;;  %v3040_v62 = vld [vmem:[%s3202_s23 + $0xec] sm:$0x10] }
  0x24   : > { %v2660_v49 = vor.u32 %v3035_v44, %v2657_v45  ;;  %v844_v50 = vand.u32 %v2648_v46, %v3204_v2  ;;  %v847_v51 = vand.u32 %v2652_v47, %v3204_v2  ;;  %v850_v52 = vand.u32 %v2656_v48, %v3204_v2  ;;  %3136 = vset.pattern.permute.xlu0 %v4115_v59  ;;  %v3036_v63 = vld [vmem:[%s3202_s23 + $0x74] sm:$0xf]  ;;  %v3037_v5 = vld [vmem:[%s3202_s23 + $0x7c] sm:$0xf]  ;;  %s3155_s11 = smov 15   ;;  %s3156_s12 = smov 112  }
  0x25   : > { %v1089_v57 = vadd.s32 128, %v1088_v55  ;;  %v1090_v58 = vand.u32 15, %v1088_v55  ;;  %999 = vperm.xlu0 %3136, %v995_v56   ;;  %3137 = vset.pattern.permute.xlu1 %v4115_v59  ;;  %v2673_v6 = vld [vmem:[%s3202_s23 + $0xf8] sm:$0x10]  ;;  %v2664_v8 = vor.u32 %v3040_v62, %v2663_v61  ;;  %s3008_s14 = sshll.u32 %s4146_s19, 5 }
  0x26   : > { %v853_v54 = vand.u32 %v2660_v49, %v3204_v2  ;;  %3138 = vset.pattern.permute.xlu2 %v4115_v59  ;;  %v2676_v11 = vor.u32 %v3037_v5, %v2673_v6  ;;  %s4088_s17 = scalar_lea.vmem %s4114_s5, %s3008_s14 }
  0x27   : > { %v1091_v60 = vand.u32 15, %v1089_v57  ;;  %vm1094_vm3 = vcmp.ne.s32.totalorder %v1090_v58, 0  ;;  %v856_v12 = vand.u32 %v2664_v8, %v3204_v2  ;;  %vm1092_vm6 = vcmp.ne.s32.totalorder %v1090_v58, 15 }
  0x28   : > { %v865_v16 = vand.u32 %v2676_v11, %v3204_v2 }
  0x29   : > { %2561 = vmatmul.msk.bf16.vlgmr.msrb.gmra.mxu0 %vm275_vm2, %v3217_v14  ;;  %2562 = vmatmul.msk.bf16.vlgmr.msrb.gmra.mxu1 %vm275_vm2, %v3217_v14  ;;  %vm1095_vm4 = vcmp.ne.s32.totalorder %v1091_v60, 0  ;;  %vm1093_vm7 = vcmp.ne.s32.totalorder %v1091_v60, 15 }
  0x2a   : > { %2563 = vmatmul.msk.bf16.vlgmr.msrb.gmra.mxu2 %vm275_vm2, %v3217_v14  ;;  %546 = vmatpush.bf16.msrb.mxu0 %v472_v0  ;;  %v2665_v0 = vld [vmem:[%s3202_s23 + $0xf0] sm:$0x10]  ;;  %vm1096_vm5 = vmpackc.low %vm1095_vm4, %vm1094_vm3 }
  0x2b   : > { %2564 = vmatmul.msk.bf16.vlgmr.msrb.gmra.mxu3 %vm275_vm2, %v3217_v14  ;;  %560 = vmatpush.bf16.msrb.mxu1 %v475_v1  ;;  %v2671_v1 = vld [vmem:[%s3202_s23 + $0x78] sm:$0xf]  ;;  %v2668_v9 = vor.u32 %v3036_v63, %v2665_v0  ;;  %vm1210_vm8 = vmpackc.low %vm1093_vm7, %vm1092_vm6 }
  0x2c   : > { %574 = vmatpush.bf16.msrb.mxu2 %v478_v3  ;;  %588 = vmatpush.bf16.msrb.mxu3 %v481_v4  ;;  %v3041_v3 = vld [vmem:[%s3202_s23 + $0xf4] sm:$0x10]  ;;  %v1097_v4 = vsel %vm1096_vm5, 65537, %v4115_v59 }
  0x2d   : > { %v3350_v7 = vperm.slane %v1097_v4, 0  ;;  %v2672_v10 = vor.u32 %v3041_v3, %v2671_v1  ;;  %v859_v13 = vand.u32 %v2668_v9, %v3204_v2  ;;  %v3368_v17 = vperm.slane %v1097_v4, 4 }
  0x2f   : > { %1267 = vrot.lane.b32.xlu1 %v3350_v7, %s3149_s28  ;;  %1100 = vrot.lane.b32.xlu2 %v3350_v7, %s3150_s29  ;;  %v862_v15 = vand.u32 %v2672_v10, %v3204_v2  ;;  %v1211_v2 = vsel %vm1210_vm8, 65537, %v4115_v59  ;;  %vm1104_vm8 = vcmask 908288  }
  0x37   : > { %1269 = vrot.lane.b32.xlu1 %v3368_v17, %s3149_s28  ;;  %1102 = vrot.lane.b32.xlu2 %v3368_v17, %s3150_s29 }
  0x39   : > { %2597 = vmatmul.msk.bf16.vlgmr.msra.gmra.mxu0 %vm275_vm2, %v3217_v14  ;;  %2598 = vmatmul.msk.bf16.vlgmr.msra.gmra.mxu1 %vm275_vm2, %v3217_v14 }
  0x3a   : > { %2599 = vmatmul.msk.bf16.vlgmr.msra.gmra.mxu2 %vm275_vm2, %v3217_v14  ;;  %682 = vmatpush.bf16.msra.mxu0 %v652_v18  ;;  %v996_v18 = vld [vmem:[%s4111_s2 + $0x8] sm:$0xff] }
  0x3b   : > { %2600 = vmatmul.msk.bf16.vlgmr.msra.gmra.mxu3 %vm275_vm2, %v3217_v14  ;;  %696 = vmatpush.bf16.msra.mxu1 %v655_v19  ;;  %v3378_v19 = vperm.slane %v1211_v2, 4 }
  0x3c   : > { %710 = vmatpush.bf16.msra.mxu2 %v658_v20  ;;  %724 = vmatpush.bf16.msra.mxu3 %v661_v21  ;;  %v3380_v20 = vperm.slane %v1211_v2, 0 }
  0x3d   : > { %1004 = vperm.xlu0 %3136, %v996_v18   ;;  %4118 = vst [vmem:[#allocation3_spill] sm:$0xff] %v3378_v19 }
  0x3f   : > { %1348 = vrot.lane.b32.xlu1 %v3378_v19, %s3151_s7 }
  0x45   : > { %1346 = vrot.lane.b32.xlu0 %v3380_v20, %s3151_s7 }
  0x47   : > { %1216 = vrot.lane.b32.xlu1 %v3378_v19, %s3152_s8 }
  0x49   : > { %2601 = vmatmul.msk.bf16.vlgmr.msrb.gmra.mxu0 %vm275_vm2, %v3217_v14  ;;  %2602 = vmatmul.msk.bf16.vlgmr.msrb.gmra.mxu1 %vm275_vm2, %v3217_v14 }
  0x4a   : > { %2603 = vmatmul.msk.bf16.vlgmr.msrb.gmra.mxu2 %vm275_vm2, %v3217_v14  ;;  %738 = vmatpush.bf16.msrb.mxu0 %v664_v34 }
  0x4b   : > { %2604 = vmatmul.msk.bf16.vlgmr.msrb.gmra.mxu3 %vm275_vm2, %v3217_v14  ;;  %752 = vmatpush.bf16.msrb.mxu1 %v667_v35 }
  0x4c   : > { %766 = vmatpush.bf16.msrb.mxu2 %v670_v36  ;;  %780 = vmatpush.bf16.msrb.mxu3 %v673_v37 }
  0x4d   : > { %1214 = vrot.lane.b32.xlu0 %v3380_v20, %s3152_s8 }
  0x59   : > { %2637 = vmatmul.msk.bf16.vlgmr.msra.gmra.mxu0 %vm275_vm2, %v3217_v14  ;;  %2638 = vmatmul.msk.bf16.vlgmr.msra.gmra.mxu1 %vm275_vm2, %v3217_v14 }
  0x5a   : > { %2639 = vmatmul.msk.bf16.vlgmr.msra.gmra.mxu2 %vm275_vm2, %v3217_v14  ;;  %874 = vmatpush.bf16.msra.mxu0 %v844_v50 }
  0x5b   : > { %2640 = vmatmul.msk.bf16.vlgmr.msra.gmra.mxu3 %vm275_vm2, %v3217_v14  ;;  %888 = vmatpush.bf16.msra.mxu1 %v847_v51 }
  0x5c   : > { %902 = vmatpush.bf16.msra.mxu2 %v850_v52  ;;  %916 = vmatpush.bf16.msra.mxu3 %v853_v54 }
  0x69   : > { %2641 = vmatmul.msk.bf16.vlgmr.msrb.gmra.mxu0 %vm275_vm2, %v3217_v14  ;;  %2642 = vmatmul.msk.bf16.vlgmr.msrb.gmra.mxu1 %vm275_vm2, %v3217_v14 }
  0x6a   : > { %2643 = vmatmul.msk.bf16.vlgmr.msrb.gmra.mxu2 %vm275_vm2, %v3217_v14  ;;  %930 = vmatpush.bf16.msrb.mxu0 %v856_v12 }
  0x6b   : > { %2644 = vmatmul.msk.bf16.vlgmr.msrb.gmra.mxu3 %vm275_vm2, %v3217_v14  ;;  %944 = vmatpush.bf16.msrb.mxu1 %v859_v13 }
  0x6c   : > { %958 = vmatpush.bf16.msrb.mxu2 %v862_v15  ;;  %972 = vmatpush.bf16.msrb.mxu3 %v865_v16 }
  0x79   : > { %2677 = vmatmul.msk.bf16.vlgmr.msra.gmra.mxu0 %vm275_vm2, %v3217_v14  ;;  %2678 = vmatmul.msk.bf16.vlgmr.msra.gmra.mxu1 %vm275_vm2, %v3217_v14 }
  0x7a   : > { %2679 = vmatmul.msk.bf16.vlgmr.msra.gmra.mxu2 %vm275_vm2, %v3217_v14 }
  0x7b   : > { %2680 = vmatmul.msk.bf16.vlgmr.msra.gmra.mxu3 %vm275_vm2, %v3217_v14 }
  0x89   : > { %2681 = vmatmul.msk.bf16.vlgmr.msrb.gmra.mxu0 %vm275_vm2, %v3217_v14  ;;  %2682 = vmatmul.msk.bf16.vlgmr.msrb.gmra.mxu1 %vm275_vm2, %v3217_v14 }
  0x8a   : > { %2683 = vmatmul.msk.bf16.vlgmr.msrb.gmra.mxu2 %vm275_vm2, %v3217_v14 }
  0x8b   : > { %2684 = vmatmul.msk.bf16.vlgmr.msrb.gmra.mxu3 %vm275_vm2, %v3217_v14 }
  0x96   : > { %v316_v21 = vpop.f32.mrf.mxu0  ;;  %v330_v22 = vpop.f32.mrf.mxu1 }
  0x97   : > { %v3470_v6 = vpop.permute.xlu0 %999 }
  0x9d   : > { %v3406_v23 = vpop.f32.mrf.mxu2 }
  0x9e   : > { %v3408_v24 = vpop.f32.mrf.mxu3  ;;  %v3410_v25 = vpop.f32.mrf.mxu0 }
  0x9f   : > { %v3412_v26 = vpop.f32.mrf.mxu1 }
  0xa1   : > { %v1268_v4 = vpop.permute.xlu1 %1267 }
  0xa5   : > { %v3414_v27 = vpop.f32.mrf.mxu2 }
  0xa6   : > { %v3416_v28 = vpop.f32.mrf.mxu3  ;;  %v3418_v29 = vpop.f32.mrf.mxu0 }
  0xa7   : > { %v3420_v30 = vpop.f32.mrf.mxu1 }
  0xad   : > { %v3422_v31 = vpop.f32.mrf.mxu2 }
  0xae   : > { %v3424_v14 = vpop.f32.mrf.mxu3  ;;  %v3426_v32 = vpop.f32.mrf.mxu0 }
  0xaf   : > { %v3428_v33 = vpop.f32.mrf.mxu1 }
  0xb5   : > { %v3430_v34 = vpop.f32.mrf.mxu2 }
  0xb6   : > { %v3432_v35 = vpop.f32.mrf.mxu3  ;;  %v492_v36 = vpop.f32.mrf.mxu0 }
  0xb7   : > { %v506_v37 = vpop.f32.mrf.mxu1  ;;  %v595_v5 = vmax.f32 %v316_v21, %v492_v36 }
  0xb8   : > { %v596_v8 = vmax.f32 %v330_v22, %v506_v37 }
  0xbd   : > { %v520_v38 = vpop.f32.mrf.mxu2 }
  0xbe   : > { %v534_v39 = vpop.f32.mrf.mxu3  ;;  %v494_v40 = vpop.f32.mrf.mxu0  ;;  %v597_v59 = vmax.f32 %v3406_v23, %v520_v38 }
  0xbf   : > { %v508_v41 = vpop.f32.mrf.mxu1  ;;  %v598_v21 = vmax.f32 %v3408_v24, %v534_v39  ;;  %v603_v22 = vmax.f32 %v3410_v25, %v494_v40  ;;  %v4119_v39 = vmov 0  }
  0xc0   : > { %v604_v37 = vmax.f32 %v3412_v26, %v508_v41  ;;  %v3489_v25 = vunpack.c.l.b16 %v4119_v39  ;;  %v3492_v26 = vunpack.c.h.b16 %v4119_v39 }
  0xc5   : > { %v3434_v42 = vpop.f32.mrf.mxu2 }
  0xc6   : > { %v3436_v43 = vpop.f32.mrf.mxu3  ;;  %v3438_v44 = vpop.f32.mrf.mxu0  ;;  %v605_v41 = vmax.f32 %v3414_v27, %v3434_v42 }
  0xc7   : > { %v3440_v45 = vpop.f32.mrf.mxu1 }
  0xc8   : > { %v600_v27 = vmax.f32 %v3420_v30, %v3440_v45 }
  0xcd   : > { %v3442_v46 = vpop.f32.mrf.mxu2 }
  0xce   : > { %v3444_v47 = vpop.f32.mrf.mxu3  ;;  %v3446_v48 = vpop.f32.mrf.mxu0  ;;  %v601_v42 = vmax.f32 %v3422_v31, %v3442_v46 }
  0xcf   : > { %v3448_v49 = vpop.f32.mrf.mxu1  ;;  %v607_v30 = vmax.f32 %v3426_v32, %v3446_v48 }
  0xd0   : > { %v608_v31 = vmax.f32 %v3428_v33, %v3448_v49 }
  0xd5   : > { %v3450_v50 = vpop.f32.mrf.mxu2 }
  0xd6   : > { %v3452_v51 = vpop.f32.mrf.mxu3  ;;  %v684_v52 = vpop.f32.mrf.mxu0 }
  0xd7   : > { %v698_v53 = vpop.f32.mrf.mxu1  ;;  %v787_v9 = vmax.f32 %v595_v5, %v684_v52  ;;  %v3482_v5 = vpop.permute.xlu1 %1269 }
  0xd8   : > { %v788_v11 = vmax.f32 %v596_v8, %v698_v53  ;;  %v1281_v32 = vunpack.c.h.b16 %v3482_v5 }
  0xda   : > { %vm3554_vm13 = vcmp.ne.s32.totalorder %v1281_v32, %v3492_v26 }
  0xdd   : > { %v712_v54 = vpop.f32.mrf.mxu2 }
  0xde   : > { %v726_v55 = vpop.f32.mrf.mxu3  ;;  %v686_v56 = vpop.f32.mrf.mxu0  ;;  %v789_v52 = vmax.f32 %v597_v59, %v712_v54 }
  0xdf   : > { %v700_v57 = vpop.f32.mrf.mxu1  ;;  %v790_v8 = vmax.f32 %v598_v21, %v726_v55 }
  0xe5   : > { %v3454_v58 = vpop.f32.mrf.mxu2 }
  0xe6   : > { %v3456_v60 = vpop.f32.mrf.mxu3  ;;  %v3458_v61 = vpop.f32.mrf.mxu0  ;;  %v797_v45 = vmax.f32 %v605_v41, %v3454_v58 }
  0xe7   : > { %v3460_v62 = vpop.f32.mrf.mxu1 }
  0xed   : > { %v3462_v63 = vpop.f32.mrf.mxu2 }
  0xee   : > { %v3464_v0 = vpop.f32.mrf.mxu3  ;;  %v3466_v1 = vpop.f32.mrf.mxu0 }
  0xef   : > { %v3468_v3 = vpop.f32.mrf.mxu1 }
  0xf5   : > { %v3472_v10 = vpop.f32.mrf.mxu2 }
  0xf6   : > { %v3474_v12 = vpop.f32.mrf.mxu3  ;;  %v876_v13 = vpop.f32.mrf.mxu0 }
  0xf7   : > { %v979_v15 = vmax.f32 %v787_v9, %v876_v13  ;;  %v890_v16 = vpop.f32.mrf.mxu1  ;;  %v795_v9 = vmax.f32 %v603_v22, %v686_v56  ;;  %v3484_v13 = vpop.permute.xlu0 %1004  ;;  %v606_v56 = vmax.f32 %v3416_v28, %v3436_v43 }
  0xf8   : > { %v980_v18 = vmax.f32 %v788_v11, %v890_v16 }
  0xf9   : > { %v1007_v2 = vadd.f32 %v3470_v6, %v979_v15  ;;  %v796_v15 = vmax.f32 %v604_v37, %v700_v57  ;;  %v599_v57 = vmax.f32 %v3418_v29, %v3438_v44  ;;  %v602_v29 = vmax.f32 %v3424_v14, %v3444_v47 }
  0xfa   : > { %v1008_v19 = vadd.f32 %v3470_v6, %v980_v18  ;;  %v1272_v44 = vsel %vm1271_vm9, %v1268_v4, %v3482_v5  ;;  %v1280_v37 = vunpack.c.l.b16 %v3482_v5  ;;  %v792_v4 = vmax.f32 %v600_v27, %v3460_v62 }
  0xfb   : > { %v1023_v36 = vmax.f32 %v1007_v2, 0.0  ;;  %v791_v14 = vmax.f32 %v599_v57, %v3458_v61  ;;  %v1274_v49 = vunpack.c.h.b16 %v1272_v44 }
  0xfc   : > { %v1024_v53 = vmax.f32 %v1008_v19, 0.0  ;;  %vm3541_vm11 = vcmp.ne.s32.totalorder %v1280_v37, %v3489_v25 }
  0xfd   : > { %v904_v11 = vpop.f32.mrf.mxu2  ;;  %vm3560_vm14 = vcmp.ne.s32.totalorder %v1274_v49, %v3492_v26  ;;  %vm1286_vm15 = vmpackc.low %vm3554_vm13, %vm3541_vm11 }
  0xfe   : > { %v3486_v23 = vpack.c.bf16 %v1024_v53, %v1023_v36  ;;  %v981_v38 = vmax.f32 %v789_v52, %v904_v11  ;;  %v918_v16 = vpop.f32.mrf.mxu3  ;;  %v878_v24 = vpop.f32.mrf.mxu0  ;;  %v798_v36 = vmax.f32 %v606_v56, %v3456_v60  ;;  %v1273_v53 = vunpack.c.l.b16 %v1272_v44 }
  0xff   : > { %v982_v59 = vmax.f32 %v790_v8, %v918_v16  ;;  %v987_v19 = vmax.f32 %v795_v9, %v878_v24  ;;  %v892_v40 = vpop.f32.mrf.mxu1  ;;  %v609_v11 = vmax.f32 %v3430_v34, %v3450_v50  ;;  %v3535_v5 = vpop.permute.xlu0 %1346  ;;  %v610_v16 = vmax.f32 %v3432_v35, %v3452_v51 }
 0x100   : > { %1326 = vst [vmem:[#allocation2 + $0x18] sm:$0xff] %v3486_v23  ;;  %v1009_v54 = vadd.f32 %v3470_v6, %v981_v38  ;;  %v988_v55 = vmax.f32 %v796_v15, %v892_v40  ;;  %v1349_v15 = vpop.permute.xlu1 %1348  ;;  %vm3549_vm12 = vcmp.ne.s32.totalorder %v1273_v53, %v3489_v25  ;;  %v1351_v27 = vunpack.c.l.b16 %v3535_v5 }
 0x101   : > { %1328 = vst [vmem:[#allocation2 + $0x50] sm:$0xff] %v3486_v23  ;;  %v1010_v18 = vadd.f32 %v3470_v6, %v982_v59  ;;  %v1015_v2 = vadd.f32 %v3484_v13, %v987_v19  ;;  %v3567_v57 = vsel %vm1312_vm10, %v3535_v5, %v1349_v15  ;;  %v799_v44 = vmax.f32 %v607_v30, %v3466_v1  ;;  %vm1279_vm1 = vmpackc.low %vm3560_vm14, %vm3549_vm12 }
 0x102   : > { %1330 = vst [vmem:[#allocation2 + $0xc8] sm:$0xff] %v3486_v23  ;;  %v1025_v21 = vmax.f32 %v1009_v54, 0.0  ;;  %v1016_v28 = vadd.f32 %v3484_v13, %v988_v55  ;;  %v1359_v34 = vunpack.c.h.b16 %v3567_v57  ;;  %vm3645_vm2 = vcmp.ne.s32.totalorder %v1351_v27, %v3489_v25 }
 0x103   : > { %1332 = vst [vmem:[#allocation2 + $0x100] sm:$0xff] %v3486_v23  ;;  %v1026_v43 = vmax.f32 %v1010_v18, 0.0  ;;  %v1031_v22 = vmax.f32 %v1015_v2, 0.0  ;;  %v793_v2 = vmax.f32 %v601_v42, %v3462_v63 }
 0x104   : > { %v1032_v46 = vmax.f32 %v1016_v28, 0.0  ;;  %vm3668_vm5 = vcmp.ne.s32.totalorder %v1359_v34, %v3492_v26 }
 0x105   : > { %v3523_v47 = vpack.c.bf16 %v1026_v43, %v1025_v21  ;;  %v906_v52 = vpop.f32.mrf.mxu2  ;;  %v1352_v21 = vunpack.c.h.b16 %v3535_v5  ;;  %v794_v43 = vmax.f32 %v602_v29, %v3464_v0 }
 0x106   : > { %v989_v48 = vmax.f32 %v797_v45, %v906_v52  ;;  %v920_v8 = vpop.f32.mrf.mxu3  ;;  %v932_v33 = vpop.f32.mrf.mxu0  ;;  %v3529_v58 = vpack.c.bf16 %v1032_v46, %v1031_v22  ;;  %v800_v22 = vmax.f32 %v608_v31, %v3468_v3 }
 0x107   : > { %1338 = vst [vmem:[#allocation2 + $0x58] sm:$0xff] %v3523_v47  ;;  %v990_v60 = vmax.f32 %v798_v36, %v920_v8  ;;  %v983_v61 = vmax.f32 %v791_v14, %v932_v33  ;;  %v946_v9 = vpop.f32.mrf.mxu1  ;;  %v1060_v37 = vunpack.c.h.b16 %v3523_v47  ;;  %v1059_v0 = vunpack.c.l.b16 %v3523_v47 }
 0x108   : > { %1340 = vst [vmem:[#allocation2 + $0x90] sm:$0xff] %v3523_v47  ;;  %v1017_v62 = vadd.f32 %v3484_v13, %v989_v48  ;;  %v984_v38 = vmax.f32 %v792_v4, %v946_v9  ;;  %vm3652_vm3 = vcmp.ne.s32.totalorder %v1352_v21, %v3492_v26 }
 0x109   : > { %1342 = vst [vmem:[#allocation2 + $0x108] sm:$0xff] %v3523_v47  ;;  %v1018_v39 = vadd.f32 %v3484_v13, %v990_v60  ;;  %v1011_v59 = vadd.f32 %v3470_v6, %v983_v61  ;;  %vm1357_vm6 = vmpackc.low %vm3652_vm3, %vm3645_vm2 }
 0x10a   : > { %1344 = vst [vmem:[#allocation2 + $0x140] sm:$0xff] %v3523_v47  ;;  %v1033_v41 = vmax.f32 %v1017_v62, 0.0  ;;  %v1012_v54 = vadd.f32 %v3470_v6, %v984_v38 }
 0x10b   : > { %1327 = vst [vmem:[#allocation2 + $0x38] sm:$0xff] %v3529_v58  ;;  %v1034_v56 = vmax.f32 %v1018_v39, 0.0  ;;  %v1027_v18 = vmax.f32 %v1011_v59, 0.0  ;;  %v801_v59 = vmax.f32 %v609_v11, %v3472_v10 }
 0x10c   : > { %1329 = vst [vmem:[#allocation2 + $0x70] sm:$0xff] %v3529_v58  ;;  %v1028_v28 = vmax.f32 %v1012_v54, 0.0 }
 0x10d   : > { %1331 = vst [vmem:[#allocation2 + $0xe8] sm:$0xff] %v3529_v58  ;;  %v3577_v45 = vpack.c.bf16 %v1034_v56, %v1033_v41  ;;  %v960_v46 = vpop.f32.mrf.mxu2  ;;  %v1358_v41 = vunpack.c.l.b16 %v3567_v57 }
 0x10e   : > { %1333 = vst [vmem:[#allocation2 + $0x120] sm:$0xff] %v3529_v58  ;;  %v3580_v63 = vpack.c.bf16 %v1028_v28, %v1027_v18  ;;  %v985_v42 = vmax.f32 %v793_v2, %v960_v46  ;;  %v974_v36 = vpop.f32.mrf.mxu3  ;;  %v934_v14 = vpop.f32.mrf.mxu0  ;;  %v802_v18 = vmax.f32 %v610_v16, %v3474_v12 }
 0x10f   : > { %1339 = vst [vmem:[#allocation2 + $0x78] sm:$0xff] %v3577_v45  ;;  %v986_v1 = vmax.f32 %v794_v43, %v974_v36  ;;  %v991_v3 = vmax.f32 %v799_v44, %v934_v14  ;;  %v948_v29 = vpop.f32.mrf.mxu1  ;;  %v1062_v30 = vunpack.c.h.b16 %v3577_v45  ;;  %v1061_v31 = vunpack.c.l.b16 %v3577_v45 }
 0x110   : > { %1341 = vst [vmem:[#allocation2 + $0xb0] sm:$0xff] %v3577_v45  ;;  %v1013_v52 = vadd.f32 %v3470_v6, %v985_v42  ;;  %v992_v4 = vmax.f32 %v800_v22, %v948_v29  ;;  %v1070_v53 = vunpack.c.h.b16 %v3580_v63  ;;  %v1069_v32 = vunpack.c.l.b16 %v3580_v63  ;;  %v1101_v42 = vpop.permute.xlu2 %1100 }
 0x111   : > { %1343 = vst [vmem:[#allocation2 + $0x128] sm:$0xff] %v3577_v45  ;;  %v1014_v48 = vadd.f32 %v3470_v6, %v986_v1  ;;  %v1019_v8 = vadd.f32 %v3484_v13, %v991_v3  ;;  %v3598_v33 = vpack.c.b16 %v1062_v30, %v1060_v37  ;;  %v3600_v49 = vpack.c.b16 %v1061_v31, %v1059_v0 }
 0x112   : > { %1345 = vst [vmem:[#allocation2 + $0x160] sm:$0xff] %v3577_v45  ;;  %v1029_v60 = vmax.f32 %v1013_v52, 0.0  ;;  %v1020_v61 = vadd.f32 %v3484_v13, %v992_v4  ;;  %v1158_v9 = vpack.c.b16 %v1070_v53, %v1070_v53  ;;  %v1157_v62 = vpack.c.b16 %v1069_v32, %v3489_v25 }
 0x113   : > { %1437 = vst [vmem:[#allocation2 + $0xd8] sm:$0xff] %v3580_v63  ;;  %v1030_v6 = vmax.f32 %v1014_v48, 0.0  ;;  %v1035_v15 = vmax.f32 %v1019_v8, 0.0  ;;  %v3616_v38 = vsel %vm1286_vm15, %v3598_v33, 0  ;;  %v1287_v39 = vsel %vm1279_vm1, %v3600_v49, 0 }
 0x114   : > { %1439 = vst [vmem:[#allocation2 + $0x110] sm:$0xff] %v3580_v63  ;;  %v1036_v54 = vmax.f32 %v1020_v61, 0.0  ;;  %1163 = vrot.lane.b32.xlu2 %v1158_v9, %s3153_s9  ;;  %1161 = vrot.lane.b32.xlu1 %v1157_v62, %s3153_s9  ;;  %v1292_v56 = vunpack.c.l.b16 %v3616_v38  ;;  %v1291_v11 = vunpack.c.l.b16 %v1287_v39  ;;  %v1293_v22 = vunpack.c.h.b16 %v1287_v39 }
 0x115   : > { %1441 = vst [vmem:[#allocation2 + $0x188] sm:$0xff] %v3580_v63  ;;  %v1042_v50 = vpack.c.bf16 %v1030_v6, %v1029_v60  ;;  %v962_v10 = vpop.f32.mrf.mxu2  ;;  %vm3663_vm4 = vcmp.ne.s32.totalorder %v1358_v41, %v3489_v25  ;;  %v1294_v30 = vunpack.c.h.b16 %v3616_v38 }
 0x116   : > { %1443 = vst [vmem:[#allocation2 + $0x1c0] sm:$0xff] %v3580_v63  ;;  %v3640_v2 = vpack.c.bf16 %v1036_v54, %v1035_v15  ;;  %v993_v28 = vmax.f32 %v801_v59, %v962_v10  ;;  %v976_v43 = vpop.f32.mrf.mxu3  ;;  %v1296_v44 = vpack.c.b16 %v1292_v56, %v1292_v56  ;;  %v1295_v63 = vpack.c.b16 %v1291_v11, %v3489_v25  ;;  %vm1364_vm7 = vmpackc.low %vm3668_vm5, %vm3663_vm4 }
 0x117   : > { %1449 = vst [vmem:[#allocation2 + $0x118] sm:$0xff] %v1042_v50  ;;  %v994_v51 = vmax.f32 %v802_v18, %v976_v43  ;;  %v1297_v14 = vpack.c.b16 %v1293_v22, %v3492_v26  ;;  %v1079_v37 = vunpack.c.l.b16 %v1042_v50  ;;  %v1080_v52 = vunpack.c.h.b16 %v1042_v50 }
 0x118   : > { %1451 = vst [vmem:[#allocation2 + $0x150] sm:$0xff] %v1042_v50  ;;  %v1021_v16 = vadd.f32 %v3484_v13, %v993_v28  ;;  %1301 = vrot.lane.b32.xlu0 %v1296_v44, %s3151_s7  ;;  %v1071_v57 = vunpack.c.l.b16 %v3640_v2  ;;  %v3660_v27 = vunpack.c.h.b16 %v3640_v2  ;;  %v1298_v60 = vpack.c.b16 %v1294_v30, %v1294_v30  ;;  %v1103_v62 = vpop.permute.xlu2 %1102 }
 0x119   : > { %1453 = vst [vmem:[#allocation2 + $0x1c8] sm:$0xff] %v1042_v50  ;;  %v1022_v21 = vadd.f32 %v3484_v13, %v994_v51  ;;  %v1184_v31 = vpack.c.b16 %v1079_v37, %v3489_v25  ;;  %v1185_v61 = vpack.c.b16 %v1080_v52, %v1080_v52  ;;  %v1105_v34 = vsel %vm1104_vm8, %v1101_v42, %v1103_v62 }
 0x11a   : > { %1455 = vst [vmem:[#allocation2 + $0x200] sm:$0xff] %v1042_v50  ;;  %v1037_v36 = vmax.f32 %v1021_v16, 0.0  ;;  %v3675_v0 = vpack.c.b16 %v1071_v57, %v1069_v32  ;;  %v3683_v13 = vpack.c.b16 %v3660_v27, %v1070_v53  ;;  %v1159_v50 = vpack.c.b16 %v1071_v57, %v3492_v26 }
 0x11b   : > { %1438 = vst [vmem:[#allocation2 + $0xf8] sm:$0xff] %v3640_v2  ;;  %v1038_v1 = vmax.f32 %v1022_v21, 0.0  ;;  %v1106_v16 = vunpack.c.l.b16 %v1105_v34  ;;  %v1107_v42 = vunpack.c.h.b16 %v1105_v34 }
 0x11c   : > { %1440 = vst [vmem:[#allocation2 + $0x130] sm:$0xff] %v3640_v2  ;;  %1299 = vrot.lane.b32.xlu2 %v1295_v63, %s3151_s7  ;;  %1303 = vrot.lane.b32.xlu1 %v1297_v14, %s3151_s7  ;;  %v1457_v3 = vsel %vm1357_vm6, %v3675_v0, 0  ;;  %v1458_v4 = vsel %vm1364_vm7, %v3683_v13, 0 }
 0x11d   : > { %1442 = vst [vmem:[#allocation2 + $0x1a8] sm:$0xff] %v3640_v2  ;;  %v1046_v29 = vpack.c.bf16 %v1038_v1, %v1037_v36  ;;  %v1461_v53 = vunpack.c.l.b16 %v1457_v3  ;;  %v1462_v48 = vunpack.c.l.b16 %v1458_v4  ;;  %v2759_v6 = vld [vmem:[#allocation2 + $0x1c0] sm:$0xf]  ;;  %v3060_v15 = vld [vmem:[#allocation2 + $0x1c4] sm:$0xf]  ;;  %v1463_v38 = vunpack.c.h.b16 %v1457_v3 }
 0x11e   : > { %1444 = vst [vmem:[#allocation2 + $0x1e0] sm:$0xff] %v3640_v2  ;;  %v1464_v39 = vunpack.c.h.b16 %v1458_v4  ;;  %vm3727_vm12 = vcmp.ne.s32.totalorder %v1106_v16, %v3489_v25  ;;  %v2827_v3 = vld [vmem:[#allocation2 + $0x188] sm:$0xf]  ;;  %vm1111_vm14 = vcmp.ne.s32.totalorder %v1107_v42, %v3492_v26  ;;  %v1113_v4 = vunpack.c.l.b16 %v1103_v62 }
 0x11f   : > { %1450 = vst [vmem:[#allocation2 + $0x138] sm:$0xff] %v1046_v29  ;;  %v1081_v32 = vunpack.c.l.b16 %v1046_v29  ;;  %v3709_v9 = vpack.c.b16 %v1462_v48, %v1461_v53  ;;  %v1082_v43 = vunpack.c.h.b16 %v1046_v29  ;;  %v1114_v53 = vunpack.c.h.b16 %v1103_v62 }
 0x120   : > { %1452 = vst [vmem:[#allocation2 + $0x170] sm:$0xff] %v1046_v29  ;;  %1188 = vrot.lane.b32.xlu0 %v1184_v31, %s3153_s9  ;;  %v2835_v11 = vld [vmem:[#allocation2 + $0x1c8] sm:$0xf]  ;;  %v3720_v44 = vpack.c.b16 %v1464_v39, %v1463_v38  ;;  %vm1117_vm11 = vcmp.ne.s32.totalorder %v1113_v4, %v3489_v25  ;;  %v1052_v38 = vunpack.c.h.b16 %v3529_v58  ;;  %v1049_v39 = vunpack.c.l.b16 %v3486_v23 }
 0x121   : > { %1454 = vst [vmem:[#allocation2 + $0x1e8] sm:$0xff] %v1046_v29  ;;  %v1083_v8 = vpack.c.b16 %v1081_v32, %v1079_v37  ;;  %v2767_v10 = vld [vmem:[#allocation2 + $0x200] sm:$0xf]  ;;  %v3062_v55 = vld [vmem:[#allocation2 + $0x204] sm:$0xf]  ;;  %v1186_v57 = vpack.c.b16 %v1081_v32, %v3492_v26  ;;  %v1084_v37 = vpack.c.b16 %v1082_v43, %v1080_v52  ;;  %v1187_v30 = vpack.c.b16 %v1082_v43, %v1082_v43 }
 0x122   : > { %1456 = vst [vmem:[#allocation2 + $0x220] sm:$0xff] %v1046_v29  ;;  %vm1118_vm13 = vcmp.ne.s32.totalorder %v1114_v53, %v3492_v26 }
 0x123   : > { %v1399_v54 = vsel %vm1279_vm1, %v1083_v8, 0  ;;  %v1400_v52 = vsel %vm1286_vm15, %v1084_v37, 0  ;;  %vm1112_vm1 = vmpackc.low %vm1111_vm14, %vm3727_vm12  ;;  %vm1218_vm12 = vcmask 924672   ;;  %vm1174_vm14 = vcmask 130048  }
 0x124   : > { %1305 = vrot.lane.b32.xlu2 %v1298_v60, %s3151_s7  ;;  %1190 = vrot.lane.b32.xlu1 %v1185_v61, %s3153_s9  ;;  %v1405_v28 = vunpack.c.h.b16 %v1399_v54  ;;  %v3077_v14 = vld [vmem:[#allocation2 + $0x1a4] sm:$0xf0]  ;;  %v1403_v31 = vunpack.c.l.b16 %v1399_v54  ;;  %v1404_v48 = vunpack.c.l.b16 %v1400_v52  ;;  %v1160_v60 = vpack.c.b16 %v3660_v27, %v3660_v27  ;;  %vm1119_vm15 = vmpackc.low %vm1118_vm13, %vm1117_vm11  ;;  %v1215_v54 = vpop.permute.xlu0 %1214 }
 0x125   : > { %v3061_v59 = vld [vmem:[#allocation2 + $0x1dc] sm:$0xf0]  ;;  %v2761_v41 = vld [vmem:[#allocation2 + $0x1e0] sm:$0xf0]  ;;  %v2828_v29 = vor.u32 %v3077_v14, %v2827_v3  ;;  %v1120_v40 = vsel %vm1112_vm1, %v1083_v8, 0  ;;  %v1406_v61 = vunpack.c.h.b16 %v1400_v52  ;;  %v1051_v27 = vunpack.c.l.b16 %v3529_v58 }
 0x126   : > { %v2760_v56 = vor.u32 %v3061_v59, %v2759_v6  ;;  %v2764_v18 = vor.u32 %v3060_v15, %v2761_v41  ;;  %v1409_v36 = vpack.c.b16 %v1405_v28, %v3492_v26  ;;  %v1407_v32 = vpack.c.b16 %v1403_v31, %v3489_v25  ;;  %v1217_v41 = vpop.permute.xlu1 %1216 }
 0x127   : > { %v1408_v24 = vpack.c.b16 %v1404_v48, %v1404_v48  ;;  %v1126_v6 = vunpack.c.l.b16 %v1120_v40  ;;  %v1410_v62 = vpack.c.b16 %v1406_v61, %v1406_v61  ;;  %v1121_v8 = vsel %vm1119_vm15, %v1084_v37, 0 }
 0x128   : > { %1757 = vmatpush.bf16.msra.mxu0 %v2760_v56  ;;  %1795 = vmatpush.bf16.msra.mxu2 %v2764_v18  ;;  %v3079_v2 = vld [vmem:[#allocation2 + $0x1e4] sm:$0xf0]  ;;  %v1050_v59 = vunpack.c.h.b16 %v3486_v23  ;;  %v1130_v56 = vunpack.c.h.b16 %v1121_v8  ;;  %v3756_v18 = vpack.c.b16 %v1051_v27, %v1049_v39  ;;  %v1127_v42 = vunpack.c.l.b16 %v1121_v8 }
 0x129   : > { %1165 = vrot.lane.b32.xlu0 %v1159_v50, %s3153_s9  ;;  %v3063_v19 = vld [vmem:[#allocation2 + $0x21c] sm:$0xf0]  ;;  %v2769_v22 = vld [vmem:[#allocation2 + $0x220] sm:$0xf0]  ;;  %v2836_v51 = vor.u32 %v3079_v2, %v2835_v11  ;;  %v1131_v15 = vpack.c.b16 %v1126_v6, %v3489_v25  ;;  %v1227_v50 = vunpack.c.l.b16 %v1217_v41  ;;  %v1219_v11 = vsel %vm1218_vm12, %v1215_v54, %v1217_v41 }
 0x12a   : > { %v2768_v21 = vor.u32 %v3063_v19, %v2767_v10  ;;  %v2772_v63 = vor.u32 %v3062_v55, %v2769_v22  ;;  %v3758_v34 = vpack.c.b16 %v1052_v38, %v1050_v59  ;;  %v1228_v10 = vunpack.c.h.b16 %v1217_v41 }
 0x12b   : > { %v1134_v2 = vpack.c.b16 %v1130_v56, %v1130_v56  ;;  %v1365_v28 = vsel %vm1357_vm6, %v3756_v18, 0  ;;  %v1220_v19 = vunpack.c.l.b16 %v1219_v11  ;;  %v1221_v12 = vunpack.c.h.b16 %v1219_v11 }
 0x12c   : > { %1783 = vmatpush.bf16.msra.mxu1 %v2768_v21  ;;  %1821 = vmatpush.bf16.msra.mxu3 %v2772_v63  ;;  %v1366_v43 = vsel %vm1364_vm7, %v3758_v34, 0  ;;  %vm3783_vm2 = vcmp.ne.s32.totalorder %v1227_v50, %v3489_v25  ;;  %vm1232_vm3 = vcmp.ne.s32.totalorder %v1228_v10, %v3492_v26  ;;  %v1369_v46 = vunpack.c.l.b16 %v1365_v28 }
 0x12d   : > { %1192 = vrot.lane.b32.xlu2 %v1186_v57, %s3153_s9  ;;  %1415 = vrot.lane.b32.xlu1 %v1409_v36, %s3151_s7  ;;  %v1370_v5 = vunpack.c.l.b16 %v1366_v43  ;;  %v1371_v55 = vunpack.c.h.b16 %v1365_v28  ;;  %v1372_v22 = vunpack.c.h.b16 %v1366_v43  ;;  %vm1224_vm4 = vcmp.ne.s32.totalorder %v1220_v19, %v3489_v25  ;;  %vm1233_vm6 = vmpackc.low %vm1232_vm3, %vm3783_vm2 }
 0x12e   : > { %vm1225_vm5 = vcmp.ne.s32.totalorder %v1221_v12, %v3492_v26  ;;  %v1235_v21 = vsel %vm1233_vm6, %v3683_v13, 0  ;;  %v1132_v14 = vpack.c.b16 %v1127_v42, %v1127_v42  ;;  %v3806_v13 = vpack.c.b16 %v3492_v26, %v3492_v26 }
 0x12f   : > { %v1375_v16 = vpack.c.b16 %v1372_v22, %v1371_v55  ;;  %vm1226_vm7 = vmpackc.low %vm1225_vm5, %vm1224_vm4  ;;  %v1239_v57 = vunpack.c.l.b16 %v1235_v21  ;;  %vm1149_vm1 = vcmask 138240   ;;  %vm1259_vm15 = vcmask 121856  }
 0x130   : > { %1941 = vmatpush.bf16.msrb.mxu1 %v2836_v51  ;;  %v1129_v51 = vunpack.c.h.b16 %v1120_v40  ;;  %v1234_v36 = vsel %vm1226_vm7, %v3675_v0, 0 }
 0x131   : > { %1194 = vrot.lane.b32.xlu0 %v1187_v30, %s3153_s9  ;;  %v1238_v37 = vunpack.c.l.b16 %v1234_v36  ;;  %v1243_v1 = vpack.c.b16 %v1239_v57, %v1239_v57  ;;  %v1240_v30 = vunpack.c.h.b16 %v1234_v36 }
 0x132   : > { %v1133_v63 = vpack.c.b16 %v1129_v51, %v3492_v26 }
 0x133   : > { %v1242_v3 = vpack.c.b16 %v1238_v37, %v3489_v25  ;;  %v1244_v31 = vpack.c.b16 %v1240_v30, %v3492_v26 }
 0x134   : > { %1942 = vmatpush.bf16.msrb.mxu1 %v2828_v29  ;;  %v1241_v29 = vunpack.c.h.b16 %v1235_v21 }
 0x135   : > { %1411 = vrot.lane.b32.xlu2 %v1407_v32, %s3151_s7  ;;  %1167 = vrot.lane.b32.xlu1 %v1160_v60, %s3153_s9 }
 0x136   : > { %v1245_v0 = vpack.c.b16 %v1241_v29, %v1241_v29 }
 0x139   : > { %1413 = vrot.lane.b32.xlu0 %v1408_v24, %s3151_s7 }
 0x13d   : > { %1417 = vrot.lane.b32.xlu2 %v1410_v62, %s3151_s7  ;;  %1135 = vrot.lane.b32.xlu1 %v1131_v15, %s3154_s10 }
 0x141   : > { %1485 = vrot.lane.b32.xlu0 %v3368_v17, %s3155_s11  ;;  %v3779_v17 = vpack.c.b16 %v3489_v25, %v3489_v25 }
 0x145   : > { %1483 = vrot.lane.b32.xlu2 %v3350_v7, %s3155_s11  ;;  %1141 = vrot.lane.b32.xlu1 %v1134_v2, %s3154_s10  ;;  %v1373_v7 = vpack.c.b16 %v1370_v5, %v1369_v46 }
 0x149   : > { %1379 = vrot.lane.b32.xlu0 %v3779_v17, %s3149_s28 }
 0x14d   : > { %1377 = vrot.lane.b32.xlu2 %v1373_v7, %s3149_s28  ;;  %1381 = vrot.lane.b32.xlu1 %v1375_v16, %s3149_s28 }
 0x151   : > { %1139 = vrot.lane.b32.xlu0 %v1133_v63, %s3154_s10 }
 0x155   : > { %1137 = vrot.lane.b32.xlu2 %v1132_v14, %s3154_s10  ;;  %1248 = vrot.lane.b32.xlu1 %v1243_v1, %s3155_s11 }
 0x159   : > { %1246 = vrot.lane.b32.xlu0 %v1242_v3, %s3155_s11 }
 0x15d   : > { %1383 = vrot.lane.b32.xlu2 %v3806_v13, %s3149_s28  ;;  %1467 = vrot.lane.b32.xlu1 %v3709_v9, %s3149_s28 }
 0x161   : > { %1252 = vrot.lane.b32.xlu0 %v1245_v0, %s3155_s11 }
 0x165   : > { %1250 = vrot.lane.b32.xlu2 %v1244_v31, %s3155_s11  ;;  %1534 = vrot.lane.b32.xlu1 %v3779_v17, %s3156_s12 }
 0x169   : > { %1532 = vrot.lane.b32.xlu0 %v3486_v23, %s3156_s12 }
 0x16d   : > { %1469 = vrot.lane.b32.xlu2 %v3720_v44, %s3149_s28 }
 0x16e   : > { %v1164_v52 = vpop.permute.xlu2 %1163 }
 0x16f   : > { %v1170_v23 = vrot.slane %v1164_v52, 4 }
 0x171   : > { %1538 = vrot.lane.b32.xlu0 %v3806_v13, %s3156_s12 }
 0x175   : > { %1536 = vrot.lane.b32.xlu2 %v3529_v58, %s3156_s12 }
 0x176   : > { %v1300_v9 = vpop.permute.xlu2 %1299 }
 0x177   : > { %v1307_v24 = vrot.slane %v1300_v9, 4 }
 0x17d   : > { %1514 = vrot.lane.b32.xlu2 %v3779_v17, %s3152_s8 }
 0x17e   : > { %v1306_v4 = vpop.permute.xlu2 %1305 }
 0x17f   : > { %v1310_v62 = vrot.slane %v1306_v4, 4 }
 0x185   : > { %1571 = vrot.lane.b32.xlu2 %v3380_v20, %s3154_s10 }
 0x186   : > { %v1162_v53 = vpop.permute.xlu1 %1161 }
 0x187   : > { %v1193_v32 = vpop.permute.xlu2 %1192  ;;  %v1169_v44 = vrot.slane %v1162_v53, 4 }
 0x188   : > { %v1198_v35 = vrot.slane %v1193_v32, 4 }
 0x189   : > { %v1173_v48 = vsel %vm279_vm0, %v1169_v44, %v1170_v23 }
 0x18a   : > { %v1175_v60 = vsel %vm1174_vm14, %v1162_v53, %v1173_v48  ;;  %v1302_v40 = vpop.permute.xlu0 %1301 }
 0x18b   : > { %1180 = vst [vmem:[#allocation2 + $0x8] sm:$0xff] %v1175_v60  ;;  %v1308_v58 = vrot.slane %v1302_v40, 4 }
 0x18c   : > { %1182 = vst [vmem:[#allocation2 + $0x40] sm:$0xff] %v1175_v60 }
 0x18d   : > { %v1311_v61 = vsel %vm279_vm0, %v1307_v24, %v1308_v58  ;;  %1557 = vrot.lane.b32.xlu2 %v3577_v45, %s3156_s12 }
 0x18e   : > { %v1313_v20 = vsel %vm1312_vm10, %v1300_v9, %v1311_v61  ;;  %v1304_v6 = vpop.permute.xlu1 %1303  ;;  %v4144_v9 = vld [vmem:[#allocation3_spill] sm:$0xff] }
 0x18f   : > { %1318 = vst [vmem:[#allocation2 + $0x10] sm:$0xff] %v1313_v20  ;;  %v1412_v15 = vpop.permute.xlu2 %1411  ;;  %v1309_v27 = vrot.slane %v1304_v6, 4 }
 0x190   : > { %1320 = vst [vmem:[#allocation2 + $0xc0] sm:$0xff] %v1313_v20  ;;  %v1419_v57 = vrot.slane %v1412_v15, 4 }
 0x191   : > { %v1314_v38 = vsel %vm279_vm0, %v1309_v27, %v1310_v62 }
 0x192   : > { %v1315_v8 = vsel %vm1312_vm10, %v1304_v6, %v1314_v38  ;;  %v1189_v39 = vpop.permute.xlu0 %1188 }
 0x193   : > { %1319 = vst [vmem:[#allocation2 + $0x30] sm:$0xff] %v1315_v8  ;;  %v1196_v41 = vrot.slane %v1189_v39, 4 }
 0x194   : > { %1321 = vst [vmem:[#allocation2 + $0xe0] sm:$0xff] %v1315_v8  ;;  %v3057_v8 = vld [vmem:[#allocation2 + $0x15c] sm:$0xf0] }
 0x196   : > { %v1191_v59 = vpop.permute.xlu1 %1190 }
 0x197   : > { %v1418_v54 = vpop.permute.xlu2 %1417  ;;  %v1197_v56 = vrot.slane %v1191_v59, 4 }
 0x198   : > { %v1422_v28 = vrot.slane %v1418_v54, 4 }
 0x199   : > { %v1200_v45 = vsel %vm279_vm0, %v1196_v41, %v1197_v56 }
 0x19a   : > { %v1201_v50 = vsel %vm1174_vm14, %v1189_v39, %v1200_v45  ;;  %v2745_v39 = vld [vmem:[#allocation2 + $0x160] sm:$0xf0] }
 0x19b   : > { %1206 = vst [vmem:[#allocation2 + $0x48] sm:$0xff] %v1201_v50  ;;  %v1166_v10 = vpop.permute.xlu0 %1165 }
 0x19c   : > { %1208 = vst [vmem:[#allocation2 + $0x80] sm:$0xff] %v1201_v50  ;;  %v1171_v16 = vrot.slane %v1166_v10, 4 }
 0x19f   : > { %v1484_v11 = vpop.permute.xlu2 %1483  ;;  %v1416_v2 = vpop.permute.xlu1 %1415 }
 0x1a0   : > { %v1421_v43 = vrot.slane %v1416_v2, 4  ;;  %v1488_v37 = vunpack.c.l.b16 %v1484_v11  ;;  %v1489_v1 = vunpack.c.h.b16 %v1484_v11 }
 0x1a2   : > { %v1425_v19 = vsel %vm279_vm0, %v1421_v43, %v1422_v28  ;;  %vm3850_vm11 = vcmp.ne.s32.totalorder %v1488_v37, %v3489_v25  ;;  %vm3855_vm13 = vcmp.ne.s32.totalorder %v1489_v1, %v3492_v26 }
 0x1a3   : > { %v1195_v12 = vpop.permute.xlu0 %1194  ;;  %v1426_v46 = vsel %vm1312_vm10, %v1416_v2, %v1425_v19 }
 0x1a4   : > { %v1199_v5 = vrot.slane %v1195_v12, 4  ;;  %1430 = vst [vmem:[#allocation2 + $0xf0] sm:$0xff] %v1426_v46  ;;  %v3055_v12 = vld [vmem:[#allocation2 + $0x11c] sm:$0xf0] }
 0x1a5   : > { %1432 = vst [vmem:[#allocation2 + $0x1a0] sm:$0xff] %v1426_v46 }
 0x1a6   : > { %v1202_v55 = vsel %vm279_vm0, %v1198_v35, %v1199_v5  ;;  %v2737_v35 = vld [vmem:[#allocation2 + $0x120] sm:$0xf0] }
 0x1a7   : > { %v1203_v22 = vsel %vm1174_vm14, %v1193_v32, %v1202_v55  ;;  %v3843_v7 = vpop.permute.xlu2 %1377  ;;  %v1168_v51 = vpop.permute.xlu1 %1167 }
 0x1a8   : > { %1207 = vst [vmem:[#allocation2 + $0x68] sm:$0xff] %v1203_v22  ;;  %v1172_v21 = vrot.slane %v1168_v51, 4  ;;  %v2735_v51 = vld [vmem:[#allocation2 + $0x100] sm:$0xf] }
 0x1a9   : > { %1209 = vst [vmem:[#allocation2 + $0xa0] sm:$0xff] %v1203_v22 }
 0x1aa   : > { %v1176_v63 = vsel %vm279_vm0, %v1171_v16, %v1172_v21  ;;  %v3054_v16 = vld [vmem:[#allocation2 + $0x104] sm:$0xf] }
 0x1ab   : > { %v1414_v42 = vpop.permute.xlu0 %1413  ;;  %v1177_v36 = vsel %vm1174_vm14, %v1166_v10, %v1176_v63  ;;  %v2743_v10 = vld [vmem:[#allocation2 + $0x140] sm:$0xf]  ;;  %v2736_v63 = vor.u32 %v3055_v12, %v2735_v51 }
 0x1ac   : > { %v1420_v14 = vrot.slane %v1414_v42, 4  ;;  %1181 = vst [vmem:[#allocation2 + $0x28] sm:$0xff] %v1177_v36  ;;  %v3059_v24 = vld [vmem:[#allocation2 + $0x19c] sm:$0xf0]  ;;  %v2753_v58 = vld [vmem:[#allocation2 + $0x1a0] sm:$0xf0]  ;;  %v2744_v28 = vor.u32 %v3057_v8, %v2743_v10  ;;  %v2740_v42 = vor.u32 %v3054_v16, %v2737_v35 }
 0x1ad   : > { %1183 = vst [vmem:[#allocation2 + $0x60] sm:$0xff] %v1177_v36  ;;  %v2729_v36 = vld [vmem:[#allocation2 + $0xe0] sm:$0xf0]  ;;  %v2687_v16 = vld [vmem:[%s4112_s3] sm:$0xf] }
 0x1ae   : > { %v1423_v3 = vsel %vm279_vm0, %v1419_v57, %v1420_v14  ;;  %v3053_v57 = vld [vmem:[#allocation2 + $0xdc] sm:$0xf0] }
 0x1af   : > { %v1424_v29 = vsel %vm1312_vm10, %v1412_v15, %v1423_v3  ;;  %v1138_v0 = vpop.permute.xlu2 %1137  ;;  %v1136_v31 = vpop.permute.xlu1 %1135  ;;  %vm1494_vm10 = vmpackc.low %vm3855_vm13, %vm3850_vm11 }
 0x1b0   : > { %1429 = vst [vmem:[#allocation2 + $0xd0] sm:$0xff] %v1424_v29  ;;  %v1144_v30 = vrot.slane %v1138_v0, 4  ;;  %v1143_v4 = vrot.slane %v1136_v31, 4  ;;  %v1502_v61 = vsel %vm1494_vm10, %v3600_v49, 0  ;;  %v1385_v49 = vrot.slane %v3843_v7, 4 }
 0x1b1   : > { %1431 = vst [vmem:[#allocation2 + $0x180] sm:$0xff] %v1424_v29  ;;  %v1506_v59 = vunpack.c.l.b16 %v1502_v61  ;;  %v1508_v54 = vunpack.c.h.b16 %v1502_v61  ;;  %v2727_v29 = vld [vmem:[#allocation2 + $0xc0] sm:$0xf]  ;;  %v3052_v0 = vld [vmem:[#allocation2 + $0xc4] sm:$0xf] }
 0x1b2   : > { %v1148_v53 = vsel %vm279_vm0, %v1143_v4, %v1144_v30  ;;  %v2728_v30 = vor.u32 %v3053_v57, %v2727_v29  ;;  %v3051_v4 = vld [vmem:[#allocation2 + $0x9c] sm:$0xf0]  ;;  %v2689_v57 = vld [vmem:[%s4112_s3 + $0x8] sm:$0xf0]  ;;  %v3071_v29 = vld [vmem:[#allocation2 + $0xe4] sm:$0xf0] }
 0x1b3   : > { %v1486_v23 = vpop.permute.xlu0 %1485  ;;  %v1150_v32 = vsel %vm1149_vm1, %v1136_v31, %v1148_v53  ;;  %v2732_v31 = vor.u32 %v3052_v0, %v2729_v36  ;;  %v2721_v53 = vld [vmem:[#allocation2 + $0xa0] sm:$0xf0]  ;;  %v2829_v0 = vld [vmem:[#allocation2 + $0x1a8] sm:$0xf0] }
 0x1b4   : > { %v1487_v44 = vsel %vm1259_vm15, %v1484_v11, %v1486_v23  ;;  %1155 = vst [vmem:[#allocation2] sm:$0xff] %v1150_v32  ;;  %v3056_v11 = vld [vmem:[#allocation2 + $0x144] sm:$0xf] }
 0x1b5   : > { %v1495_v48 = vunpack.c.l.b16 %v1487_v44  ;;  %v1496_v60 = vunpack.c.h.b16 %v1487_v44  ;;  %v2748_v43 = vor.u32 %v3056_v11, %v2745_v39  ;;  %v3048_v39 = vld [vmem:[#allocation2 + $0x44] sm:$0xf] }
 0x1b7   : > { %vm1499_vm2 = vcmp.ne.s32.totalorder %v1495_v48, %v3489_v25  ;;  %vm1500_vm3 = vcmp.ne.s32.totalorder %v1496_v60, %v3492_v26  ;;  %v3868_v40 = vpop.permute.xlu2 %1383  ;;  %v1142_v20 = vpop.permute.xlu1 %1141  ;;  %v2719_v60 = vld [vmem:[#allocation2 + $0x80] sm:$0xf] }
 0x1b8   : > { %vm1501_vm4 = vmpackc.low %vm1500_vm3, %vm1499_vm2  ;;  %v2751_v6 = vld [vmem:[#allocation2 + $0x180] sm:$0xf]  ;;  %v3058_v62 = vld [vmem:[#allocation2 + $0x184] sm:$0xf]  ;;  %v1388_v46 = vrot.slane %v3868_v40, 4 }
 0x1b9   : > { %v1503_v15 = vsel %vm1501_vm4, %v3598_v33, 0  ;;  %v2752_v27 = vor.u32 %v3059_v24, %v2751_v6  ;;  %v2756_v38 = vor.u32 %v3058_v62, %v2753_v58  ;;  %v3050_v40 = vld [vmem:[#allocation2 + $0x84] sm:$0xf]  ;;  %v2720_v24 = vor.u32 %v3051_v4, %v2719_v60  ;;  %v3076_v4 = vld [vmem:[#allocation2 + $0x18c] sm:$0xf] }
 0x1ba   : > { %v1507_v41 = vunpack.c.l.b16 %v1503_v15  ;;  %v1509_v56 = vunpack.c.h.b16 %v1503_v15  ;;  %v2724_v58 = vor.u32 %v3050_v40, %v2721_v53  ;;  %v2713_v6 = vld [vmem:[#allocation2 + $0x60] sm:$0xf0]  ;;  %v2832_v53 = vor.u32 %v3076_v4, %v2829_v0 }
 0x1bb   : > { %1758 = vmatpush.bf16.msra.mxu0 %v2752_v27  ;;  %1796 = vmatpush.bf16.msra.mxu2 %v2756_v38  ;;  %v3872_v45 = vpop.permute.xlu0 %1379  ;;  %v2711_v27 = vld [vmem:[#allocation2 + $0x40] sm:$0xf]  ;;  %v3046_v12 = vld [vmem:[#allocation2 + $0x4] sm:$0xf] }
 0x1bc   : > { %v1386_v50 = vrot.slane %v3872_v45, 4  ;;  %v1510_v2 = vpack.c.b16 %v1507_v41, %v1506_v59  ;;  %v1511_v33 = vpack.c.b16 %v1509_v56, %v1508_v54  ;;  %v2716_v41 = vor.u32 %v3048_v39, %v2713_v6  ;;  %v2703_v11 = vld [vmem:[#allocation2] sm:$0xf] }
 0x1be   : > { %v1389_v19 = vsel %vm279_vm0, %v1385_v49, %v1386_v50  ;;  %1512 = vrot.lane.b32.xlu1 %v1510_v2, %s3152_s8  ;;  %1516 = vrot.lane.b32.xlu0 %v1511_v33, %s3152_s8  ;;  %v3073_v2 = vld [vmem:[#allocation2 + $0x124] sm:$0xf0]  ;;  %v2837_v33 = vld [vmem:[#allocation2 + $0x1e8] sm:$0xf0] }
 0x1bf   : > { %v1390_v5 = vsel %vm1271_vm9, %v3843_v7, %v1389_v19  ;;  %1759 = vmatpush.bf16.msra.mxu0 %v2744_v28  ;;  %1797 = vmatpush.bf16.msra.mxu2 %v2748_v43  ;;  %v3884_v55 = vpop.permute.xlu2 %1250  ;;  %v1382_v22 = vpop.permute.xlu1 %1381  ;;  %v1146_v7 = vrot.slane %v1142_v20, 4  ;;  %v3049_v20 = vld [vmem:[#allocation2 + $0x5c] sm:$0xf0] }
 0x1c0   : > { %1395 = vst [vmem:[#allocation2 + $0x98] sm:$0xff] %v1390_v5  ;;  %v1387_v21 = vrot.slane %v1382_v22, 4  ;;  %v2712_v59 = vor.u32 %v3049_v20, %v2711_v27  ;;  %v3072_v20 = vld [vmem:[#allocation2 + $0x10c] sm:$0xf] }
 0x1c1   : > { %1397 = vst [vmem:[#allocation2 + $0x148] sm:$0xff] %v1390_v5  ;;  %v3078_v5 = vld [vmem:[#allocation2 + $0x1cc] sm:$0xf] }
 0x1c2   : > { %v1391_v14 = vsel %vm279_vm0, %v1387_v21, %v1388_v46  ;;  %v3043_v21 = vld [vmem:[%s4112_s3 + $0x4] sm:$0xf0] }
 0x1c3   : > { %1760 = vmatpush.bf16.msra.mxu0 %v2736_v63  ;;  %1798 = vmatpush.bf16.msra.mxu2 %v2740_v42  ;;  %v1140_v37 = vpop.permute.xlu0 %1139  ;;  %v1392_v1 = vsel %vm1271_vm9, %v1382_v22, %v1391_v14  ;;  %v3042_v42 = vld [vmem:[%s4112_s3 + $0x4] sm:$0xf]  ;;  %v2840_v14 = vor.u32 %v3078_v5, %v2837_v33 }
 0x1c4   : > { %v1145_v3 = vrot.slane %v1140_v37, 4  ;;  %1396 = vst [vmem:[#allocation2 + $0xb8] sm:$0xff] %v1392_v1 }
 0x1c5   : > { %1398 = vst [vmem:[#allocation2 + $0x168] sm:$0xff] %v1392_v1 }
 0x1c6   : > { %v1151_v52 = vsel %vm279_vm0, %v1145_v3, %v1146_v7  ;;  %1518 = vrot.lane.b32.xlu1 %v3806_v13, %s3152_s8  ;;  %1573 = vrot.lane.b32.xlu0 %v4144_v9, %s3154_s10  ;;  %v3916_v7 = vor.u32 %v3042_v42, %v2689_v57  ;;  %v2803_v9 = vld [vmem:[#allocation2 + $0xc8] sm:$0xf]  ;;  %v2789_v57 = vld [vmem:[#allocation2 + $0x68] sm:$0xf0] }
 0x1c7   : > { %v1152_v23 = vsel %vm1149_vm1, %v1140_v37, %v1151_v52  ;;  %1761 = vmatpush.bf16.msra.mxu0 %v2728_v30  ;;  %1799 = vmatpush.bf16.msra.mxu2 %v2732_v31  ;;  %v1470_v32 = vpop.permute.xlu2 %1469  ;;  %v1249_v44 = vpop.permute.xlu1 %1248  ;;  %v3914_v37 = vor.u32 %v3043_v21, %v2687_v16  ;;  %v1256_v30 = vrot.slane %v3884_v55, 4  ;;  %v2779_v42 = vld [vmem:[#allocation2 + $0x8] sm:$0xf] }
 0x1c8   : > { %1156 = vst [vmem:[#allocation2 + $0x20] sm:$0xff] %v1152_v23  ;;  %v1472_v48 = vrot.slane %v1470_v32, 4  ;;  %v1255_v38 = vrot.slane %v1249_v44, 4  ;;  %v2819_v54 = vld [vmem:[#allocation2 + $0x148] sm:$0xf]  ;;  %2773 = vmatmul.msk.bf16.vlgmr.msra.gmra.mxu1 %vm1174_vm14, %v3916_v7  ;;  %2775 = vmatmul.msk.bf16.vlgmr.msra.gmra.mxu3 %vm1174_vm14, %v3916_v7 }
 0x1c9   : > { %v3074_v60 = vld [vmem:[#allocation2 + $0x14c] sm:$0xf] }
 0x1ca   : > { %v1475_v61 = vsel %vm279_vm0, %v1472_v48, %v1388_v46  ;;  %v2811_v46 = vld [vmem:[#allocation2 + $0x108] sm:$0xf] }
 0x1cb   : > { %v1476_v62 = vsel %vm1271_vm9, %v1470_v32, %v1475_v61  ;;  %1762 = vmatpush.bf16.msra.mxu0 %v2720_v24  ;;  %1800 = vmatpush.bf16.msra.mxu2 %v2724_v58  ;;  %v1247_v15 = vpop.permute.xlu0 %1246  ;;  %v2812_v36 = vor.u32 %v3073_v2, %v2811_v46  ;;  %v2813_v61 = vld [vmem:[#allocation2 + $0x128] sm:$0xf0]  ;;  %v3067_v2 = vld [vmem:[#allocation2 + $0x64] sm:$0xf0] }
 0x1cc   : > { %1480 = vst [vmem:[#allocation2 + $0x178] sm:$0xff] %v1476_v62  ;;  %v1254_v8 = vrot.slane %v1247_v15, 4  ;;  %v3075_v56 = vld [vmem:[#allocation2 + $0x164] sm:$0xf0]  ;;  %v2821_v44 = vld [vmem:[#allocation2 + $0x168] sm:$0xf0] }
 0x1cd   : > { %1482 = vst [vmem:[#allocation2 + $0x228] sm:$0xff] %v1476_v62  ;;  %v2820_v10 = vor.u32 %v3075_v56, %v2819_v54  ;;  %v2824_v40 = vor.u32 %v3074_v60, %v2821_v44  ;;  %v3045_v44 = vld [vmem:[%s4112_s3 + $0x14] sm:$0xf0]  ;;  %v3044_v60 = vld [vmem:[%s4112_s3 + $0x14] sm:$0xf] }
 0x1ce   : > { %v1258_v49 = vsel %vm279_vm0, %v1254_v8, %v1255_v38  ;;  %1555 = vrot.lane.b32.xlu1 %v3523_v47, %s3156_s12  ;;  %v2816_v8 = vor.u32 %v3072_v20, %v2813_v61 }
 0x1cf   : > { %v1260_v28 = vsel %vm1259_vm15, %v1247_v15, %v1258_v49  ;;  %1763 = vmatpush.bf16.msra.mxu0 %v2712_v59  ;;  %1801 = vmatpush.bf16.msra.mxu2 %v2716_v41  ;;  %v3900_v43 = vpop.permute.xlu2 %1536  ;;  %v3047_v19 = vld [vmem:[#allocation2 + $0x1c] sm:$0xf0]  ;;  %v2705_v35 = vld [vmem:[#allocation2 + $0x20] sm:$0xf0]  ;;  %v1468_v22 = vpop.permute.xlu1 %1467  ;;  %v2805_v49 = vld [vmem:[#allocation2 + $0xe8] sm:$0xf0] }
 0x1d0   : > { %1265 = vst [vmem:[#allocation2 + $0x88] sm:$0xff] %v1260_v28  ;;  %1943 = vmatpush.bf16.msrb.mxu1 %v2820_v10  ;;  %v2704_v51 = vor.u32 %v3047_v19, %v2703_v11  ;;  %v2708_v47 = vor.u32 %v3046_v12, %v2705_v35  ;;  %v1471_v63 = vrot.slane %v1468_v22, 4  ;;  %v3070_v11 = vld [vmem:[#allocation2 + $0xcc] sm:$0xf]  ;;  %v2787_v19 = vld [vmem:[#allocation2 + $0x48] sm:$0xf] }
 0x1d1   : > { %v2808_v33 = vor.u32 %v3070_v11, %v2805_v49  ;;  %v1542_v35 = vrot.slane %v3900_v43, 4  ;;  %v2788_v5 = vor.u32 %v3067_v2, %v2787_v19 }
 0x1d2   : > { %v1473_v1 = vsel %vm279_vm0, %v1471_v63, %v1386_v50  ;;  %v2804_v50 = vor.u32 %v3071_v29, %v2803_v9 }
 0x1d3   : > { %1764 = vmatpush.bf16.msra.mxu0 %v2704_v51  ;;  %1802 = vmatpush.bf16.msra.mxu2 %v2708_v47  ;;  %v1253_v3 = vpop.permute.xlu0 %1252  ;;  %v1474_v31 = vsel %vm1271_vm9, %v1468_v22, %v1473_v1  ;;  %vm1545_vm9 = vcmask 916480   ;;  %v3065_v51 = vld [vmem:[#allocation2 + $0x24] sm:$0xf0]  ;;  %v3066_v1 = vld [vmem:[#allocation2 + $0x4c] sm:$0xf] }
 0x1d4   : > { %1944 = vmatpush.bf16.msrb.mxu1 %v2812_v36  ;;  %v1257_v52 = vrot.slane %v1253_v3, 4  ;;  %1479 = vst [vmem:[#allocation2 + $0x158] sm:$0xff] %v1474_v31  ;;  %v2845_v15 = vld [vmem:[#allocation2 + $0x228] sm:$0xf0]  ;;  %v2792_v29 = vor.u32 %v3066_v1, %v2789_v57  ;;  %v2889_v1 = vld [vmem:[#allocation2 + $0x130] sm:$0xf0] }
 0x1d5   : > { %1481 = vst [vmem:[#allocation2 + $0x208] sm:$0xff] %v1474_v31 }
 0x1d6   : > { %v1261_v45 = vsel %vm279_vm0, %v1256_v30, %v1257_v52  ;;  %1765 = vmatmul.bf16.vlgmr.msra.gmra.mxu0 %v3914_v37  ;;  %1602 = vrot.lane.b32.xlu1 %v3779_v17, %s3150_s29  ;;  %v2781_v30 = vld [vmem:[#allocation2 + $0x28] sm:$0xf0] }
 0x1d7   : > { %1979 = vmatpush.bf16.msrb.mxu0 %v2840_v14  ;;  %v1262_v23 = vsel %vm1259_vm15, %v3884_v55, %v1261_v45  ;;  %v3933_v32 = vpop.permute.xlu2 %1514  ;;  %1803 = vmatmul.bf16.vlgmr.msra.gmra.mxu2 %v3914_v37  ;;  %v3936_v48 = vpop.permute.xlu1 %1534  ;;  %v3081_v55 = vld [vmem:[#allocation2 + $0x224] sm:$0xf0]  ;;  %v3068_v22 = vld [vmem:[#allocation2 + $0x8c] sm:$0xf]  ;;  %v2780_v14 = vor.u32 %v3065_v51, %v2779_v42  ;;  %v2897_v42 = vld [vmem:[#allocation2 + $0x170] sm:$0xf0] }
 0x1d8   : > { %1266 = vst [vmem:[#allocation2 + $0xa8] sm:$0xff] %v1262_v23  ;;  %1945 = vmatpush.bf16.msrb.mxu1 %v2804_v50  ;;  %v1541_v24 = vrot.slane %v3936_v48, 4  ;;  %v2795_v54 = vld [vmem:[#allocation2 + $0x88] sm:$0xf]  ;;  %v2695_v23 = vld [vmem:[%s4112_s3 + $0x10] sm:$0xf] }
 0x1d9   : > { %v1521_v61 = vrot.slane %v3933_v32, 4  ;;  %v2895_v48 = vld [vmem:[#allocation2 + $0x150] sm:$0xf] }
 0x1db   : > { %1980 = vmatpush.bf16.msrb.mxu0 %v2832_v53  ;;  %v1533_v58 = vpop.permute.xlu0 %1532 }
 0x1dc   : > { %v1540_v17 = vrot.slane %v1533_v58, 4  ;;  %v2843_v6 = vld [vmem:[#allocation2 + $0x208] sm:$0xf]  ;;  %v3080_v62 = vld [vmem:[#allocation2 + $0x20c] sm:$0xf] }
 0x1dd   : > { %v2844_v38 = vor.u32 %v3081_v55, %v2843_v6  ;;  %v2848_v39 = vor.u32 %v3080_v62, %v2845_v15 }
 0x1de   : > { %v1544_v27 = vsel %vm279_vm0, %v1540_v17, %v1541_v24 }
 0x1df   : > { %1981 = vmatpush.bf16.msrb.mxu0 %v2824_v40  ;;  %v1546_v59 = vsel %vm1545_vm9, %v1533_v58, %v1544_v27  ;;  %v3943_v41 = vpop.permute.xlu2 %1571  ;;  %v3069_v56 = vld [vmem:[#allocation2 + $0xa4] sm:$0xf0]  ;;  %1967 = vmatpush.bf16.msrb.mxu3 %v2844_v38  ;;  %v2797_v12 = vld [vmem:[#allocation2 + $0xa8] sm:$0xf0]  ;;  %v3960_v40 = vor.u32 %v3045_v44, %v2695_v23  ;;  %v2697_v58 = vld [vmem:[%s4112_s3 + $0x18] sm:$0xf0] }
 0x1e0   : > { %1551 = vst [vmem:[#allocation2 + $0x198] sm:$0xff] %v1546_v59  ;;  %v2796_v10 = vor.u32 %v3069_v56, %v2795_v54  ;;  %2005 = vmatpush.bf16.msrb.mxu2 %v2848_v39  ;;  %v2800_v16 = vor.u32 %v3068_v22, %v2797_v12  ;;  %v3966_v17 = vor.u32 %v3044_v60, %v2697_v58  ;;  %v1576_v62 = vunpack.c.l.b16 %v3943_v41  ;;  %v3089_v23 = vld [vmem:[#allocation2 + $0xec] sm:$0xf0]  ;;  %v2881_v44 = vld [vmem:[#allocation2 + $0xf0] sm:$0xf0] }
 0x1e1   : > { %1553 = vst [vmem:[#allocation2 + $0x1d0] sm:$0xff] %v1546_v59  ;;  %v1577_v15 = vunpack.c.h.b16 %v3943_v41  ;;  %v2411_v58 = vld [vmem:[%s4113_s4 + $0x10] sm:$0xff] }
 0x1e2   : > { %1946 = vmatpush.bf16.msrb.mxu1 %v2796_v10  ;;  %2776 = vmatmul.msk.bf16.gmra.mxu3 %vm1174_vm14, %v3966_v17  ;;  %vm1580_vm5 = vcmp.ne.s32.totalorder %v1576_v62, %v3489_v25 }
 0x1e3   : > { %1982 = vmatpush.bf16.msrb.mxu0 %v2816_v8  ;;  %v1539_v28 = vpop.permute.xlu0 %1538  ;;  %2774 = vmatmul.msk.bf16.gmra.mxu1 %vm1174_vm14, %v3966_v17  ;;  %vm1581_vm6 = vcmp.ne.s32.totalorder %v1577_v15, %v3492_v26 }
 0x1e4   : > { %v1543_v46 = vrot.slane %v1539_v28, 4  ;;  %vm1582_vm7 = vmpackc.low %vm1581_vm6, %vm1580_vm5 }
 0x1e5   : > { %v1590_v2 = vsel %vm1582_vm7, %v3756_v18, 0 }
 0x1e6   : > { %v1547_v47 = vsel %vm279_vm0, %v1542_v35, %v1543_v46  ;;  %1947 = vmatpush.bf16.msrb.mxu1 %v2788_v5  ;;  %1770 = vmatmul.bf16.gmra.mxu0 %v3960_v40  ;;  %v1596_v28 = vunpack.c.h.b16 %v1590_v2  ;;  %v1594_v12 = vunpack.c.l.b16 %v1590_v2  ;;  %v3082_v2 = vld [vmem:[#allocation2 + $0x14] sm:$0xf] }
 0x1e7   : > { %1983 = vmatpush.bf16.msrb.mxu0 %v2808_v33  ;;  %v1548_v21 = vsel %vm1545_vm9, %v3900_v43, %v1547_v47  ;;  %v1558_v63 = vpop.permute.xlu2 %1557  ;;  %v3064_v43 = vld [vmem:[#allocation2 + $0xc] sm:$0xf]  ;;  %1808 = vmatmul.bf16.gmra.mxu2 %v3960_v40 }
 0x1e8   : > { %1552 = vst [vmem:[#allocation2 + $0x1b8] sm:$0xff] %v1548_v21  ;;  %v1560_v36 = vrot.slane %v1558_v63, 4  ;;  %v2784_v31 = vor.u32 %v3064_v43, %v2781_v30  ;;  %v2911_v52 = vld [vmem:[#allocation2 + $0x1d0] sm:$0xf]  ;;  %v3096_v4 = vld [vmem:[#allocation2 + $0x1d4] sm:$0xf] }
 0x1e9   : > { %1554 = vst [vmem:[#allocation2 + $0x1f0] sm:$0xff] %v1548_v21 }
 0x1ea   : > { %v1563_v3 = vsel %vm279_vm0, %v1560_v36, %v1543_v46  ;;  %1948 = vmatpush.bf16.msrb.mxu1 %v2780_v14  ;;  %v3091_v14 = vld [vmem:[#allocation2 + $0x12c] sm:$0xf0] }
 0x1eb   : > { %1984 = vmatpush.bf16.msrb.mxu0 %v2800_v16  ;;  %v1564_v0 = vsel %vm1545_vm9, %v1558_v63, %v1563_v3  ;;  %v3093_v63 = vld [vmem:[#allocation2 + $0x16c] sm:$0xf0] }
 0x1ec   : > { %1568 = vst [vmem:[#allocation2 + $0x1f8] sm:$0xff] %v1564_v0  ;;  %v2896_v57 = vor.u32 %v3093_v63, %v2895_v48  ;;  %v2887_v3 = vld [vmem:[#allocation2 + $0x110] sm:$0xf]  ;;  %v2965_v48 = vld [vmem:[#allocation2 + $0x138] sm:$0xf0] }
 0x1ed   : > { %1570 = vst [vmem:[#allocation2 + $0x230] sm:$0xff] %v1564_v0  ;;  %v3090_v0 = vld [vmem:[#allocation2 + $0x114] sm:$0xf]  ;;  %v2888_v30 = vor.u32 %v3091_v14, %v2887_v3  ;;  %v2957_v3 = vld [vmem:[#allocation2 + $0xf8] sm:$0xf0] }
 0x1ef   : > { %1985 = vmatpush.bf16.msrb.mxu0 %v2792_v29 }
 0x1f0   : > { %v3097_v9 = vld [vmem:[#allocation2 + $0x1ec] sm:$0xf0]  ;;  %v2913_v45 = vld [vmem:[#allocation2 + $0x1f0] sm:$0xf0] }
 0x1f1   : > { %v2912_v50 = vor.u32 %v3097_v9, %v2911_v52  ;;  %v2916_v53 = vor.u32 %v3096_v4, %v2913_v45 }
 0x1f2   : > { %2849 = vmatmul.msk.bf16.vlgmr.msrb.gmra.mxu3 %vm1174_vm14, %v3916_v7 }
 0x1f3   : > { %1986 = vmatpush.bf16.msrb.mxu0 %v2784_v31  ;;  %2133 = vmatpush.bf16.msra.mxu1 %v2912_v50  ;;  %v2892_v31 = vor.u32 %v3090_v0, %v2889_v1  ;;  %v2879_v50 = vld [vmem:[#allocation2 + $0xd0] sm:$0xf]  ;;  %v3107_v1 = vld [vmem:[#allocation2 + $0xf4] sm:$0xf0]  ;;  %v3106_v0 = vld [vmem:[#allocation2 + $0xdc] sm:$0xf] }
 0x1f4   : > { %1949 = vmatmul.bf16.vlgmr.msrb.gmra.mxu1 %v3914_v37  ;;  %v3099_v29 = vld [vmem:[#allocation2 + $0x22c] sm:$0xf0]  ;;  %v2921_v9 = vld [vmem:[#allocation2 + $0x230] sm:$0xf0]  ;;  %v2880_v60 = vor.u32 %v3089_v23, %v2879_v50  ;;  %v2941_v23 = vld [vmem:[#allocation2 + $0x78] sm:$0xf0] }
 0x1f6   : > { %1987 = vmatmul.bf16.vlgmr.msrb.gmra.mxu0 %v3914_v37 }
 0x1f7   : > { %2171 = vmatpush.bf16.msra.mxu0 %v2916_v53  ;;  %2851 = vmatmul.msk.bf16.vlgmr.msrb.gmra.mxu2 %vm1174_vm14, %v3916_v7  ;;  %v3088_v53 = vld [vmem:[#allocation2 + $0xd4] sm:$0xf] }
 0x202   : > { %2850 = vmatmul.msk.bf16.gmra.mxu3 %vm1174_vm14, %v3966_v17 }
 0x204   : > { %1954 = vmatmul.bf16.gmra.mxu1 %v3960_v40 }
 0x206   : > { %1992 = vmatmul.bf16.gmra.mxu0 %v3960_v40 }
 0x207   : > { %2852 = vmatmul.msk.bf16.gmra.mxu2 %vm1174_vm14, %v3966_v17 }
 0x230   : > { %v1513_v55 = vpop.permute.xlu1 %1512  ;;  %v1517_v20 = vpop.permute.xlu0 %1516 }
 0x231   : > { %v1520_v6 = vrot.slane %v1513_v55, 4  ;;  %v1522_v39 = vrot.slane %v1517_v20, 4 }
 0x233   : > { %v1524_v32 = vsel %vm279_vm0, %v1520_v6, %v1521_v61  ;;  %v3087_v61 = vld [vmem:[#allocation2 + $0xac] sm:$0xf0]  ;;  %v3086_v6 = vld [vmem:[#allocation2 + $0x94] sm:$0xf] }
 0x234   : > { %v1525_v27 = vsel %vm1218_vm12, %v1513_v55, %v1524_v32  ;;  %v2873_v55 = vld [vmem:[#allocation2 + $0xb0] sm:$0xf0]  ;;  %v3085_v32 = vld [vmem:[#allocation2 + $0x6c] sm:$0xf0] }
 0x235   : > { %1530 = vst [vmem:[#allocation2 + $0x190] sm:$0xff] %v1525_v27  ;;  %v2876_v15 = vor.u32 %v3086_v6, %v2873_v55  ;;  %v2865_v27 = vld [vmem:[#allocation2 + $0x70] sm:$0xf0]  ;;  %v2933_v55 = vld [vmem:[#allocation2 + $0x38] sm:$0xf0] }
 0x236   : > { %v3100_v6 = vld [vmem:[#allocation2 + $0x1c] sm:$0xf] }
 0x238   : > { %v1519_v38 = vpop.permute.xlu1 %1518  ;;  %v1574_v8 = vpop.permute.xlu0 %1573 }
 0x239   : > { %v1523_v59 = vrot.slane %v1519_v38, 4  ;;  %v1575_v54 = vsel %vm1149_vm1, %v3943_v41, %v1574_v8  ;;  %v2863_v38 = vld [vmem:[#allocation2 + $0x50] sm:$0xf]  ;;  %v3084_v8 = vld [vmem:[#allocation2 + $0x54] sm:$0xf] }
 0x23a   : > { %v1583_v56 = vunpack.c.l.b16 %v1575_v54  ;;  %v1584_v49 = vunpack.c.h.b16 %v1575_v54  ;;  %v3083_v54 = vld [vmem:[#allocation2 + $0x2c] sm:$0xf0] }
 0x23b   : > { %v1526_v10 = vsel %vm279_vm0, %v1522_v39, %v1523_v59  ;;  %v2864_v39 = vor.u32 %v3085_v32, %v2863_v38  ;;  %v2868_v59 = vor.u32 %v3084_v8, %v2865_v27 }
 0x23c   : > { %v1527_v11 = vsel %vm1218_vm12, %v1517_v20, %v1526_v10  ;;  %vm1587_vm11 = vcmp.ne.s32.totalorder %v1583_v56, %v3489_v25  ;;  %vm1588_vm13 = vcmp.ne.s32.totalorder %v1584_v49, %v3492_v26  ;;  %v2903_v18 = vld [vmem:[#allocation2 + $0x190] sm:$0xf]  ;;  %v3094_v51 = vld [vmem:[#allocation2 + $0x194] sm:$0xf] }
 0x23d   : > { %1531 = vst [vmem:[#allocation2 + $0x1b0] sm:$0xff] %v1527_v11  ;;  %vm1589_vm15 = vmpackc.low %vm1588_vm13, %vm1587_vm11  ;;  %v2871_v20 = vld [vmem:[#allocation2 + $0x90] sm:$0xf]  ;;  %v2857_v56 = vld [vmem:[#allocation2 + $0x30] sm:$0xf0] }
 0x23e   : > { %v1591_v33 = vsel %vm1589_vm15, %v3758_v34, 0  ;;  %v2872_v62 = vor.u32 %v3087_v61, %v2871_v20  ;;  %v2855_v11 = vld [vmem:[#allocation2 + $0x10] sm:$0xf]  ;;  %v3101_v61 = vld [vmem:[#allocation2 + $0x34] sm:$0xf0] }
 0x23f   : > { %v1597_v19 = vunpack.c.h.b16 %v1591_v33  ;;  %v1595_v41 = vunpack.c.l.b16 %v1591_v33  ;;  %v2856_v33 = vor.u32 %v3083_v54, %v2855_v11  ;;  %v2931_v20 = vld [vmem:[#allocation2 + $0x18] sm:$0xf] }
 0x240   : > { %v1556_v35 = vpop.permute.xlu1 %1555 }
 0x241   : > { %v1559_v46 = vrot.slane %v1556_v35, 4  ;;  %v1599_v25 = vpack.c.b16 %v1597_v19, %v1596_v28  ;;  %v1598_v5 = vpack.c.b16 %v1595_v41, %v1594_v12  ;;  %v2860_v28 = vor.u32 %v3082_v2, %v2857_v56  ;;  %v3115_v19 = vld [vmem:[#allocation2 + $0x1f4] sm:$0xf0]  ;;  %v2989_v12 = vld [vmem:[#allocation2 + $0x1f8] sm:$0xf0] }
 0x243   : > { %v1561_v26 = vsel %vm279_vm0, %v1559_v46, %v1541_v24  ;;  %1604 = vrot.lane.b32.xlu2 %v1599_v25, %s3150_s29  ;;  %1600 = vrot.lane.b32.xlu0 %v1598_v5, %s3150_s29  ;;  %v3092_v24 = vld [vmem:[#allocation2 + $0x154] sm:$0xf]  ;;  %v3113_v46 = vld [vmem:[#allocation2 + $0x1b4] sm:$0xf0]  ;;  %v2981_v25 = vld [vmem:[#allocation2 + $0x1b8] sm:$0xf0] }
 0x244   : > { %v1562_v34 = vsel %vm1545_vm9, %v1556_v35, %v1561_v26  ;;  %v3095_v22 = vld [vmem:[#allocation2 + $0x1ac] sm:$0xf0]  ;;  %v2905_v47 = vld [vmem:[#allocation2 + $0x1b0] sm:$0xf0]  ;;  %v2900_v36 = vor.u32 %v3092_v24, %v2897_v42  ;;  %v2979_v5 = vld [vmem:[#allocation2 + $0x198] sm:$0xf] }
 0x245   : > { %1567 = vst [vmem:[#allocation2 + $0x1d8] sm:$0xff] %v1562_v34  ;;  %v2904_v16 = vor.u32 %v3095_v22, %v2903_v18  ;;  %v2908_v21 = vor.u32 %v3094_v51, %v2905_v47  ;;  %v3112_v26 = vld [vmem:[#allocation2 + $0x19c] sm:$0xf]  ;;  %v2980_v18 = vor.u32 %v3113_v46, %v2979_v5  ;;  %v2971_v22 = vld [vmem:[#allocation2 + $0x158] sm:$0xf]  ;;  %v1785_v27 = vpop.f32.mrf.mxu1 }
 0x246   : > { %1569 = vst [vmem:[#allocation2 + $0x210] sm:$0xff] %v1562_v34  ;;  %v2984_v34 = vor.u32 %v3112_v26, %v2981_v25  ;;  %v3110_v51 = vld [vmem:[#allocation2 + $0x15c] sm:$0xf]  ;;  %v3111_v47 = vld [vmem:[#allocation2 + $0x174] sm:$0xf0] }
 0x247   : > { %2134 = vmatpush.bf16.msra.mxu1 %v2904_v16  ;;  %2172 = vmatpush.bf16.msra.mxu0 %v2908_v21  ;;  %v2973_v16 = vld [vmem:[#allocation2 + $0x178] sm:$0xf0]  ;;  %v2972_v21 = vor.u32 %v3111_v47, %v2971_v22  ;;  %v3109_v42 = vld [vmem:[#allocation2 + $0x134] sm:$0xf0] }
 0x248   : > { %v2976_v63 = vor.u32 %v3110_v51, %v2973_v16  ;;  %v2963_v24 = vld [vmem:[#allocation2 + $0x118] sm:$0xf]  ;;  %v1603_v54 = vpop.permute.xlu1 %1602 }
 0x24b   : > { %2135 = vmatpush.bf16.msra.mxu1 %v2896_v57  ;;  %2173 = vmatpush.bf16.msra.mxu0 %v2900_v36  ;;  %v3108_v57 = vld [vmem:[#allocation2 + $0x11c] sm:$0xf]  ;;  %v2964_v36 = vor.u32 %v3109_v42, %v2963_v24 }
 0x24c   : > { %1606 = vrot.lane.b32.xlu0 %v3806_v13, %s3150_s29  ;;  %v2884_v13 = vor.u32 %v3088_v53, %v2881_v44  ;;  %v2987_v49 = vld [vmem:[#allocation2 + $0x1d8] sm:$0xf]  ;;  %v3114_v10 = vld [vmem:[#allocation2 + $0x1dc] sm:$0xf]  ;;  %v2968_v14 = vor.u32 %v3108_v57, %v2965_v48 }
 0x24d   : > { %v2919_v43 = vld [vmem:[#allocation2 + $0x210] sm:$0xf]  ;;  %v3098_v52 = vld [vmem:[#allocation2 + $0x214] sm:$0xf]  ;;  %v2988_v41 = vor.u32 %v3115_v19, %v2987_v49  ;;  %v2992_v35 = vor.u32 %v3114_v10, %v2989_v12  ;;  %v3103_v53 = vld [vmem:[#allocation2 + $0x74] sm:$0xf0]  ;;  %v1787_v49 = vpop.f32.mrf.mxu1 }
 0x24e   : > { %v2920_v4 = vor.u32 %v3099_v29, %v2919_v43  ;;  %v2924_v45 = vor.u32 %v3098_v52, %v2921_v9  ;;  %v2955_v29 = vld [vmem:[#allocation2 + $0xd8] sm:$0xf]  ;;  %v2960_v43 = vor.u32 %v3106_v0, %v2957_v3  ;;  %v2949_v52 = vld [vmem:[#allocation2 + $0xb8] sm:$0xf0] }
 0x24f   : > { %2136 = vmatpush.bf16.msra.mxu1 %v2888_v30  ;;  %2174 = vmatpush.bf16.msra.mxu0 %v2892_v31  ;;  %v2956_v30 = vor.u32 %v3107_v1, %v2955_v29  ;;  %v3105_v31 = vld [vmem:[#allocation2 + $0xb4] sm:$0xf0] }
 0x250   : > { %2159 = vmatpush.bf16.msra.mxu3 %v2920_v4  ;;  %2197 = vmatpush.bf16.msra.mxu2 %v2924_v45  ;;  %v2947_v9 = vld [vmem:[#allocation2 + $0x98] sm:$0xf]  ;;  %v3104_v4 = vld [vmem:[#allocation2 + $0x9c] sm:$0xf] }
 0x251   : > { %v2948_v45 = vor.u32 %v3105_v31, %v2947_v9  ;;  %v2952_v50 = vor.u32 %v3104_v4, %v2949_v52  ;;  %v2939_v44 = vld [vmem:[#allocation2 + $0x58] sm:$0xf] }
 0x252   : > { %v2412_v1 = vld [vmem:[%s4113_s4 + $0x18] sm:$0xff] }
 0x253   : > { %2137 = vmatpush.bf16.msra.mxu1 %v2880_v60  ;;  %2175 = vmatpush.bf16.msra.mxu0 %v2884_v13  ;;  %v3102_v60 = vld [vmem:[#allocation2 + $0x5c] sm:$0xf]  ;;  %v2940_v13 = vor.u32 %v3103_v53, %v2939_v44  ;;  %v1766_v32 = vpop.f32.mrf.mxu0 }
 0x254   : > { %2425 = vperm.xlu0 %3136, %v2411_v58   ;;  %2925 = vmatmul.msk.bf16.vlgmr.msra.gmra.mxu3 %vm1174_vm14, %v3916_v7  ;;  %v2944_v58 = vor.u32 %v3102_v60, %v2941_v23  ;;  %v4027_v38 = vadd.f32 %v1785_v27, %v1766_v32 }
 0x255   : > { %2927 = vmatmul.msk.bf16.vlgmr.msra.gmra.mxu2 %vm1174_vm14, %v3916_v7 }
 0x257   : > { %2138 = vmatpush.bf16.msra.mxu1 %v2872_v62  ;;  %2176 = vmatpush.bf16.msra.mxu0 %v2876_v15  ;;  %v2932_v62 = vor.u32 %v3101_v61, %v2931_v20  ;;  %v2936_v15 = vor.u32 %v3100_v6, %v2933_v55 }
 0x25a   : > { %v1804_v8 = vpop.f32.mrf.mxu2 }
 0x25b   : > { %2139 = vmatpush.bf16.msra.mxu1 %v2864_v39  ;;  %2177 = vmatpush.bf16.msra.mxu0 %v2868_v59  ;;  %v1823_v39 = vpop.f32.mrf.mxu3  ;;  %v1768_v56 = vpop.f32.mrf.mxu0 }
 0x25c   : > { %v4029_v59 = vadd.f32 %v1823_v39, %v1804_v8  ;;  %v4031_v10 = vadd.f32 %v1787_v49, %v1768_v56 }
 0x25f   : > { %2140 = vmatpush.bf16.msra.mxu1 %v2856_v33  ;;  %2178 = vmatpush.bf16.msra.mxu0 %v2860_v28  ;;  %v1609_v33 = vrot.slane %v1603_v54, 4 }
 0x262   : > { %2141 = vmatmul.bf16.vlgmr.msra.gmra.mxu1 %v3914_v37  ;;  %2179 = vmatmul.bf16.vlgmr.msra.gmra.mxu0 %v3914_v37  ;;  %v1806_v11 = vpop.f32.mrf.mxu2 }
 0x263   : > { %2325 = vmatpush.bf16.msrb.mxu1 %v2988_v41  ;;  %2363 = vmatpush.bf16.msrb.mxu0 %v2992_v35  ;;  %v1825_v2 = vpop.f32.mrf.mxu3  ;;  %v1771_v12 = vpop.f32.mrf.mxu0 }
 0x264   : > { %2926 = vmatmul.msk.bf16.gmra.mxu3 %vm1174_vm14, %v3966_v17  ;;  %v1790_v41 = vpop.f32.mrf.mxu1 }
 0x265   : > { %2928 = vmatmul.msk.bf16.gmra.mxu2 %vm1174_vm14, %v3966_v17  ;;  %v4037_v46 = vadd.f32 %v1790_v41, %v1771_v12 }
 0x267   : > { %2326 = vmatpush.bf16.msrb.mxu1 %v2980_v18  ;;  %2364 = vmatpush.bf16.msrb.mxu0 %v2984_v34 }
 0x26a   : > { %v1809_v25 = vpop.f32.mrf.mxu2 }
 0x26b   : > { %2327 = vmatpush.bf16.msrb.mxu1 %v2972_v21  ;;  %2365 = vmatpush.bf16.msrb.mxu0 %v2976_v63  ;;  %v1828_v5 = vpop.f32.mrf.mxu3  ;;  %v1773_v47 = vpop.f32.mrf.mxu0  ;;  %v2409_v21 = vld [vmem:[%s4113_s4] sm:$0xff] }
 0x26c   : > { %v4039_v26 = vadd.f32 %v1828_v5, %v1809_v25  ;;  %v1792_v16 = vpop.f32.mrf.mxu1  ;;  %2415 = vperm.xlu1 %3137, %v2409_v21  }
 0x26d   : > { %v4045_v42 = vadd.f32 %v1792_v16, %v1773_v47 }
 0x26f   : > { %2328 = vmatpush.bf16.msrb.mxu1 %v2964_v36  ;;  %2366 = vmatpush.bf16.msrb.mxu0 %v2968_v14  ;;  %v2410_v14 = vld [vmem:[%s4113_s4 + $0x8] sm:$0xff] }
 0x270   : > { %2420 = vperm.xlu2 %3138, %v2410_v14  }
 0x272   : > { %2146 = vmatmul.bf16.gmra.mxu1 %v3960_v40  ;;  %2184 = vmatmul.bf16.gmra.mxu0 %v3960_v40  ;;  %v1811_v48 = vpop.f32.mrf.mxu2 }
 0x273   : > { %2329 = vmatpush.bf16.msrb.mxu1 %v2956_v30  ;;  %2367 = vmatpush.bf16.msrb.mxu0 %v2960_v43  ;;  %v1830_v24 = vpop.f32.mrf.mxu3  ;;  %v1988_v9 = vpop.f32.mrf.mxu0 }
 0x274   : > { %v4048_v36 = vadd.f32 %v1830_v24, %v1811_v48  ;;  %2430 = vperm.xlu1 %3137, %v2412_v1   ;;  %v1950_v52 = vpop.f32.mrf.mxu1 }
 0x277   : > { %2330 = vmatpush.bf16.msrb.mxu1 %v2948_v45  ;;  %2368 = vmatpush.bf16.msrb.mxu0 %v2952_v50 }
 0x27a   : > { %v2007_v45 = vpop.f32.mrf.mxu2 }
 0x27b   : > { %2331 = vmatpush.bf16.msrb.mxu1 %v2940_v13  ;;  %2369 = vmatpush.bf16.msrb.mxu0 %v2944_v58  ;;  %v1969_v4 = vpop.f32.mrf.mxu3  ;;  %v1990_v53 = vpop.f32.mrf.mxu0  ;;  %v2008_v41 = vadd.f32 %v2007_v45, %v1988_v9 }
 0x27c   : > { %v1952_v50 = vpop.f32.mrf.mxu1  ;;  %v1970_v12 = vadd.f32 %v1969_v4, %v1950_v52 }
 0x27e   : > { %v2017_v5 = vmax.f32 %v4027_v38, %v1970_v12 }
 0x27f   : > { %2332 = vmatpush.bf16.msrb.mxu1 %v2932_v62  ;;  %2370 = vmatpush.bf16.msrb.mxu0 %v2936_v15 }
 0x282   : > { %2333 = vmatmul.bf16.vlgmr.msrb.gmra.mxu1 %v3914_v37  ;;  %2371 = vmatmul.bf16.vlgmr.msrb.gmra.mxu0 %v3914_v37  ;;  %v4033_v37 = vadd.f32 %v1825_v2, %v1806_v11  ;;  %v2009_v44 = vpop.f32.mrf.mxu2 }
 0x283   : > { %v1971_v23 = vpop.f32.mrf.mxu3  ;;  %v1993_v13 = vpop.f32.mrf.mxu0  ;;  %v2010_v47 = vadd.f32 %v2009_v44, %v1990_v53 }
 0x284   : > { %v1955_v60 = vpop.f32.mrf.mxu1 }
 0x28a   : > { %v2012_v61 = vpop.f32.mrf.mxu2 }
 0x28b   : > { %v1974_v58 = vpop.f32.mrf.mxu3 }
 0x28c   : > { %v4064_v55 = vpop.f32.mrf.mxu1  ;;  %v1975_v45 = vadd.f32 %v1974_v58, %v1955_v60 }
 0x28e   : > { %v2021_v60 = vmax.f32 %v4037_v46, %v1975_v45 }
 0x292   : > { %2338 = vmatmul.bf16.gmra.mxu1 %v3960_v40  ;;  %2376 = vmatmul.bf16.gmra.mxu0 %v3960_v40  ;;  %v4070_v6 = vpop.f32.mrf.mxu2 }
 0x293   : > { %v4068_v20 = vpop.f32.mrf.mxu3 }
 0x29d   : > { %v1605_v18 = vpop.permute.xlu2 %1604 }
 0x29e   : > { %v1610_v22 = vrot.slane %v1605_v18, 4 }
 0x2b5   : > { %v1601_v28 = vpop.permute.xlu0 %1600 }
 0x2b6   : > { %v1608_v40 = vrot.slane %v1601_v28, 4 }
 0x2b8   : > { %v1612_v19 = vsel %vm279_vm0, %v1608_v40, %v1609_v33 }
 0x2b9   : > { %v1613_v35 = vsel %vm1104_vm8, %v1601_v28, %v1612_v19 }
 0x2ba   : > { %1618 = vst [vmem:[#allocation2 + $0x218] sm:$0xff] %v1613_v35 }
 0x2be   : > { %v1607_v34 = vpop.permute.xlu0 %1606 }
 0x2bf   : > { %v1611_v51 = vrot.slane %v1607_v34, 4 }
 0x2c1   : > { %v1614_v63 = vsel %vm279_vm0, %v1610_v22, %v1611_v51  ;;  %v2995_v3 = vld [vmem:[#allocation2 + $0x218] sm:$0xf]  ;;  %v3116_v0 = vld [vmem:[#allocation2 + $0x21c] sm:$0xf]  ;;  %v1972_v51 = vadd.f32 %v1971_v23, %v1952_v50  ;;  %v2013_v50 = vadd.f32 %v2012_v61, %v1993_v13 }
 0x2c2   : > { %v1615_v57 = vsel %vm1104_vm8, %v1605_v18, %v1614_v63  ;;  %v2018_v18 = vmax.f32 %v4029_v59, %v2008_v41  ;;  %v2020_v59 = vmax.f32 %v4033_v37, %v2010_v47 }
 0x2c3   : > { %1619 = vst [vmem:[#allocation2 + $0x238] sm:$0xff] %v1615_v57  ;;  %v2019_v38 = vmax.f32 %v4031_v10, %v1972_v51  ;;  %v2022_v58 = vmax.f32 %v4039_v26, %v2013_v50 }
 0x2c6   : > { %v2426_v51 = vpop.permute.xlu0 %2425 }
 0x2ca   : > { %v3117_v29 = vld [vmem:[#allocation2 + $0x234] sm:$0xf0]  ;;  %v2997_v30 = vld [vmem:[#allocation2 + $0x238] sm:$0xf0] }
 0x2cb   : > { %v2996_v43 = vor.u32 %v3117_v29, %v2995_v3  ;;  %v3000_v31 = vor.u32 %v3116_v0, %v2997_v30 }
 0x2cd   : > { %2351 = vmatpush.bf16.msrb.mxu3 %v2996_v43  ;;  %2389 = vmatpush.bf16.msrb.mxu2 %v3000_v31 }
 0x2d0   : > { %3001 = vmatmul.msk.bf16.vlgmr.msrb.gmra.mxu3 %vm1174_vm14, %v3916_v7  ;;  %3003 = vmatmul.msk.bf16.vlgmr.msrb.gmra.mxu2 %vm1174_vm14, %v3916_v7  ;;  %v4066_v7 = vpop.f32.mrf.mxu0 }
 0x2d7   : > { %v2161_v15 = vpop.f32.mrf.mxu3 }
 0x2d8   : > { %v2199_v32 = vpop.f32.mrf.mxu2 }
 0x2de   : > { %v2416_v14 = vpop.permute.xlu1 %2415 }
 0x2df   : > { %v2180_v62 = vpop.f32.mrf.mxu0  ;;  %v2163_v39 = vpop.f32.mrf.mxu3 }
 0x2e0   : > { %3002 = vmatmul.msk.bf16.gmra.mxu3 %vm1174_vm14, %v3966_v17  ;;  %3004 = vmatmul.msk.bf16.gmra.mxu2 %vm1174_vm14, %v3966_v17  ;;  %v2142_v17 = vpop.f32.mrf.mxu1  ;;  %v2201_v54 = vpop.f32.mrf.mxu2  ;;  %v2200_v22 = vadd.f32 %v2199_v32, %v2180_v62 }
 0x2e1   : > { %v2162_v34 = vadd.f32 %v2161_v15, %v2142_v17  ;;  %v2421_v15 = vpop.permute.xlu2 %2420 }
 0x2e2   : > { %v2210_v48 = vmax.f32 %v2018_v18, %v2200_v22 }
 0x2e3   : > { %v2209_v63 = vmax.f32 %v2017_v5, %v2162_v34  ;;  %v2015_v5 = vadd.f32 %v4070_v6, %v4066_v7 }
 0x2e7   : > { %v2182_v8 = vpop.f32.mrf.mxu0  ;;  %v2166_v11 = vpop.f32.mrf.mxu3 }
 0x2e8   : > { %v2144_v27 = vpop.f32.mrf.mxu1  ;;  %v2204_v2 = vpop.f32.mrf.mxu2  ;;  %v2202_v43 = vadd.f32 %v2201_v54, %v2182_v8 }
 0x2e9   : > { %v2164_v30 = vadd.f32 %v2163_v39, %v2144_v27 }
 0x2ea   : > { %v2212_v44 = vmax.f32 %v2020_v59, %v2202_v43 }
 0x2eb   : > { %v2211_v53 = vmax.f32 %v2019_v38, %v2164_v30 }
 0x2ef   : > { %v2185_v49 = vpop.f32.mrf.mxu0  ;;  %v4076_v40 = vpop.f32.mrf.mxu3 }
 0x2f0   : > { %v2147_v56 = vpop.f32.mrf.mxu1  ;;  %v4078_v19 = vpop.f32.mrf.mxu2  ;;  %v2205_v61 = vadd.f32 %v2204_v2, %v2185_v49 }
 0x2f1   : > { %v2167_v13 = vadd.f32 %v2166_v11, %v2147_v56 }
 0x2f2   : > { %v2214_v56 = vmax.f32 %v2022_v58, %v2205_v61 }
 0x2f3   : > { %v2213_v18 = vmax.f32 %v2021_v60, %v2167_v13 }
 0x2f7   : > { %v4074_v28 = vpop.f32.mrf.mxu0 }
 0x2f8   : > { %v4072_v33 = vpop.f32.mrf.mxu1  ;;  %v2207_v7 = vadd.f32 %v4078_v19, %v4074_v28 }
 0x2ff   : > { %v2372_v25 = vpop.f32.mrf.mxu0 }
 0x300   : > { %v2334_v35 = vpop.f32.mrf.mxu1 }
 0x307   : > { %v2374_v0 = vpop.f32.mrf.mxu0 }
 0x308   : > { %v2336_v29 = vpop.f32.mrf.mxu1 }
 0x30f   : > { %v2377_v12 = vpop.f32.mrf.mxu0 }
 0x310   : > { %v2339_v54 = vpop.f32.mrf.mxu1 }
 0x353   : > { %v2353_v16 = vpop.f32.mrf.mxu3  ;;  %v2391_v21 = vpop.f32.mrf.mxu2 }
 0x354   : > { %v2354_v24 = vadd.f32 %v2353_v16, %v2334_v35  ;;  %v2392_v57 = vadd.f32 %v2391_v21, %v2372_v25  ;;  %v1977_v25 = vadd.f32 %v4068_v20, %v4064_v55  ;;  %v2169_v16 = vadd.f32 %v4076_v40, %v4072_v33 }
 0x355   : > { %v2024_v55 = vmax.f32 %v4048_v36, %v2015_v5 }
 0x356   : > { %v2401_v1 = vmax.f32 %v2209_v63, %v2354_v24  ;;  %v2402_v3 = vmax.f32 %v2210_v48, %v2392_v57  ;;  %v2023_v47 = vmax.f32 %v4045_v42, %v1977_v25  ;;  %v2341_v48 = vpop.f32.mrf.mxu1  ;;  %v2379_v24 = vpop.f32.mrf.mxu0 }
 0x357   : > { %v2216_v42 = vmax.f32 %v2024_v55, %v2207_v7 }
 0x358   : > { %v2433_v31 = vadd.f32 %v2416_v14, %v2401_v1  ;;  %v2434_v52 = vadd.f32 %v2416_v14, %v2402_v3  ;;  %v2215_v57 = vmax.f32 %v2023_v47, %v2169_v16 }
 0x35a   : > { %v2441_v9 = vmax.f32 %v2433_v31, 0.0  ;;  %v2442_v4 = vmax.f32 %v2434_v52, 0.0 }
 0x35b   : > { %v2355_v23 = vpop.f32.mrf.mxu3  ;;  %v2393_v10 = vpop.f32.mrf.mxu2 }
 0x35c   : > { %v2449_v17 = vpack.c.bf16 %v2442_v4, %v2441_v9  ;;  %v2356_v37 = vadd.f32 %v2355_v23, %v2336_v29  ;;  %v2394_v62 = vadd.f32 %v2393_v10, %v2374_v0  ;;  %v2431_v0 = vpop.permute.xlu1 %2430 }
 0x35e   : > { %2453 = vst [vmem:[%s4088_s17] sm:$0xff] %v2449_v17  ;;  %v2403_v32 = vmax.f32 %v2211_v53, %v2356_v37  ;;  %v2404_v27 = vmax.f32 %v2212_v44, %v2394_v62 }
 0x360   : > { %v2435_v8 = vadd.f32 %v2421_v15, %v2403_v32  ;;  %v2436_v39 = vadd.f32 %v2421_v15, %v2404_v27 }
 0x362   : > { %v2443_v41 = vmax.f32 %v2435_v8, 0.0  ;;  %v2444_v35 = vmax.f32 %v2436_v39, 0.0 }
 0x363   : > { %v2358_v34 = vpop.f32.mrf.mxu3  ;;  %v2396_v46 = vpop.f32.mrf.mxu2 }
 0x364   : > { %v2450_v11 = vpack.c.bf16 %v2444_v35, %v2443_v41  ;;  %v2359_v26 = vadd.f32 %v2358_v34, %v2339_v54  ;;  %v2397_v49 = vadd.f32 %v2396_v46, %v2377_v12 }
 0x366   : > { %2454 = vst [vmem:[%s4088_s17 + $0x8] sm:$0xff] %v2450_v11  ;;  %v2405_v2 = vmax.f32 %v2213_v18, %v2359_v26  ;;  %v2406_v22 = vmax.f32 %v2214_v56, %v2397_v49 }
 0x368   : > { %v2437_v20 = vadd.f32 %v2426_v51, %v2405_v2  ;;  %v2438_v6 = vadd.f32 %v2426_v51, %v2406_v22 }
 0x36a   : > { %v2445_v21 = vmax.f32 %v2437_v20, 0.0  ;;  %v2446_v63 = vmax.f32 %v2438_v6, 0.0 }
 0x36b   : > { %v2360_v14 = vpop.f32.mrf.mxu3  ;;  %v2398_v1 = vpop.f32.mrf.mxu2 }
 0x36c   : > { %v2451_v3 = vpack.c.bf16 %v2446_v63, %v2445_v21  ;;  %v2361_v29 = vadd.f32 %v2360_v14, %v2341_v48  ;;  %v2399_v33 = vadd.f32 %v2398_v1, %v2379_v24 }
 0x36e   : > { %2455 = vst [vmem:[%s4088_s17 + $0x10] sm:$0xff] %v2451_v3  ;;  %v2407_v40 = vmax.f32 %v2215_v57, %v2361_v29  ;;  %v2408_v36 = vmax.f32 %v2216_v42, %v2399_v33 }
 0x370   : > { %v2439_v38 = vadd.f32 %v2431_v0, %v2407_v40  ;;  %v2440_v28 = vadd.f32 %v2431_v0, %v2408_v36 }
 0x372   : > { %v2447_v19 = vmax.f32 %v2439_v38, 0.0  ;;  %v2448_v30 = vmax.f32 %v2440_v28, 0.0 }
 0x374   : > { %v2452_v59 = vpack.c.bf16 %v2448_v30, %v2447_v19 }
 0x376   : > { %2456 = vst [vmem:[%s4088_s17 + $0x18] sm:$0xff] %v2452_v59 }
 0x377 PF: > { %s15_s18 = sadd.s32 1, %s3145_s18  }
 0x378   : > { %p12_p4 = scmp.ge.s32.totalorder %s15_s18, 4  }
 0x37a   :  { %14 = sbr.rel (!%p12_p4) target bundleno = 1 (0x1), region = 70 }

// kernel: imagenet_forward.3
= control target key start
LH: loop header
LB: loop body
LE: loop exit
PB: predicated region body
PF: predicated region fallthrough
CT: control target
= control target key end

     0   :  { %s9306_s0 = inlined_call_operand.vmem [shape: bf16[2,8192], index: 0, kind: input, shape index: {}]   ;;  %s9307_s1 = inlined_call_operand.vmem [shape: bf16[8192,128], index: 1, kind: input, shape index: {}]   ;;  %s9308_s2 = inlined_call_operand.vmem [shape: f32[1,128], index: 2, kind: input, shape index: {}]   ;;  %s9309_s3 = inlined_call_operand.hbm [shape: f32[2,128], index: 3, kind: output, shape index: {}]  }
   0x1   :  { %v7171_v0 = vld [vmem:[%s9307_s1 + $0x38] sm:$0xff]  ;;  %v7170_v4 = vld [vmem:[%s9307_s1 + $0x30] sm:$0xff]  ;;  %v7169_v8 = vld [vmem:[%s9307_s1 + $0x28] sm:$0xff] }
   0x2   :  { %v7179_v1 = vld [vmem:[%s9307_s1 + $0x78] sm:$0xff]  ;;  %4267 = vmatpush.bf16.msra.mxu0 %v7171_v0  ;;  %v7178_v5 = vld [vmem:[%s9307_s1 + $0x70] sm:$0xff]  ;;  %v7177_v9 = vld [vmem:[%s9307_s1 + $0x68] sm:$0xff] }
   0x3   :  { %v7187_v2 = vld [vmem:[%s9307_s1 + $0xb8] sm:$0xff]  ;;  %4280 = vmatpush.bf16.msra.mxu1 %v7179_v1  ;;  %v7186_v6 = vld [vmem:[%s9307_s1 + $0xb0] sm:$0xff]  ;;  %v7185_v10 = vld [vmem:[%s9307_s1 + $0xa8] sm:$0xff] }
   0x4   :  { %v7195_v3 = vld [vmem:[%s9307_s1 + $0xf8] sm:$0xff]  ;;  %4293 = vmatpush.bf16.msra.mxu2 %v7187_v2  ;;  %v7194_v7 = vld [vmem:[%s9307_s1 + $0xf0] sm:$0xff]  ;;  %v7193_v11 = vld [vmem:[%s9307_s1 + $0xe8] sm:$0xff] }
   0x5   :  { %4306 = vmatpush.bf16.msra.mxu3 %v7195_v3  ;;  %v7168_v12 = vld [vmem:[%s9307_s1 + $0x20] sm:$0xff]  ;;  %v7167_v16 = vld [vmem:[%s9307_s1 + $0x18] sm:$0xff]  ;;  %v7166_v20 = vld [vmem:[%s9307_s1 + $0x10] sm:$0xff] }
   0x6   :  { %4268 = vmatpush.bf16.msra.mxu0 %v7170_v4  ;;  %v7176_v13 = vld [vmem:[%s9307_s1 + $0x60] sm:$0xff]  ;;  %v7175_v17 = vld [vmem:[%s9307_s1 + $0x58] sm:$0xff]  ;;  %v7174_v21 = vld [vmem:[%s9307_s1 + $0x50] sm:$0xff] }
   0x7   :  { %4281 = vmatpush.bf16.msra.mxu1 %v7178_v5  ;;  %v7184_v14 = vld [vmem:[%s9307_s1 + $0xa0] sm:$0xff]  ;;  %v7183_v18 = vld [vmem:[%s9307_s1 + $0x98] sm:$0xff] }
   0x8   :  { %4294 = vmatpush.bf16.msra.mxu2 %v7186_v6  ;;  %v7192_v15 = vld [vmem:[%s9307_s1 + $0xe0] sm:$0xff]  ;;  %v7191_v19 = vld [vmem:[%s9307_s1 + $0xd8] sm:$0xff] }
   0x9   :  { %4307 = vmatpush.bf16.msra.mxu3 %v7194_v7  ;;  %v15_v22 = vld [vmem:[%s9306_s0] sm:$0xff] }
   0xa   :  { %4269 = vmatpush.bf16.msra.mxu0 %v7169_v8  ;;  %1052 = vst [vmem:[#allocation1] ss:$9 sm:$0xff] %v15_v22 }
   0xb   :  { %4282 = vmatpush.bf16.msra.mxu1 %v7177_v9 }
   0xc   :  { %4295 = vmatpush.bf16.msra.mxu2 %v7185_v10 }
   0xd   :  { %4308 = vmatpush.bf16.msra.mxu3 %v7193_v11 }
   0xe   :  { %4270 = vmatpush.bf16.msra.mxu0 %v7168_v12 }
   0xf   :  { %4283 = vmatpush.bf16.msra.mxu1 %v7176_v13 }
  0x10   :  { %4296 = vmatpush.bf16.msra.mxu2 %v7184_v14 }
  0x11   :  { %4309 = vmatpush.bf16.msra.mxu3 %v7192_v15 }
  0x12   :  { %4271 = vmatpush.bf16.msra.mxu0 %v7167_v16 }
  0x13   :  { %4284 = vmatpush.bf16.msra.mxu1 %v7175_v17 }
  0x14   :  { %8 = vsyncpa [#allocation3], 0  ;;  %4297 = vmatpush.bf16.msra.mxu2 %v7183_v18  ;;  %v7182_v23 = vld [vmem:[%s9307_s1 + $0x90] sm:$0xff]  ;;  %v7165_v25 = vld [vmem:[%s9307_s1 + $0x8] sm:$0xff]  ;;  %s5107_s28 = sshll.u32 %s9309_s3, 4  ;;  %s5108_s28 = int_to_ptr.hbm [resolvable:$true] %s5107_s28 }
  0x15   :  { %4310 = vmatpush.bf16.msra.mxu3 %v7191_v19  ;;  %v7190_v24 = vld [vmem:[%s9307_s1 + $0xd0] sm:$0xff]  ;;  %v7173_v26 = vld [vmem:[%s9307_s1 + $0x48] sm:$0xff]  ;;  %v7164_v29 = vld [vmem:[%s9307_s1] sm:$0xff] }
  0x16   :  { %4272 = vmatpush.bf16.msra.mxu0 %v7166_v20  ;;  %v7181_v27 = vld [vmem:[%s9307_s1 + $0x88] sm:$0xff]  ;;  %v7172_v30 = vld [vmem:[%s9307_s1 + $0x40] sm:$0xff]  ;;  %v7203_v33 = vld [vmem:[%s9307_s1 + $0x138] sm:$0xff] }
  0x17   :  { %4285 = vmatpush.bf16.msra.mxu1 %v7174_v21  ;;  %v7189_v28 = vld [vmem:[%s9307_s1 + $0xc8] sm:$0xff]  ;;  %v7180_v31 = vld [vmem:[%s9307_s1 + $0x80] sm:$0xff]  ;;  %v7211_v34 = vld [vmem:[%s9307_s1 + $0x178] sm:$0xff] }
  0x18   :  { %4298 = vmatpush.bf16.msra.mxu2 %v7182_v23  ;;  %v7188_v32 = vld [vmem:[%s9307_s1 + $0xc0] sm:$0xff]  ;;  %v7219_v35 = vld [vmem:[%s9307_s1 + $0x1b8] sm:$0xff]  ;;  %v7202_v37 = vld [vmem:[%s9307_s1 + $0x130] sm:$0xff] }
  0x19   :  { %4311 = vmatpush.bf16.msra.mxu3 %v7190_v24  ;;  %v7227_v36 = vld [vmem:[%s9307_s1 + $0x1f8] sm:$0xff]  ;;  %v1053_v39 = vld [vmem:[#allocation1] sm:$0xff]  ;;  %v7210_v40 = vld [vmem:[%s9307_s1 + $0x170] sm:$0xff] }
  0x1a   :  { %4273 = vmatpush.bf16.msra.mxu0 %v7165_v25  ;;  %v1055_v38 = vld [vmem:[#allocation1 + $0x12] sm:$0xff]  ;;  %v1056_v41 = vld [vmem:[#allocation1 + $0x1b] sm:$0xff]  ;;  %v1054_v42 = vld [vmem:[#allocation1 + $0x9] sm:$0xff] }
  0x1b   :  { %4286 = vmatpush.bf16.msra.mxu1 %v7173_v26  ;;  %v7218_v43 = vld [vmem:[%s9307_s1 + $0x1b0] sm:$0xff]  ;;  %v7201_v45 = vld [vmem:[%s9307_s1 + $0x128] sm:$0xff]  ;;  %v1060_v51 = vld [vmem:[#allocation1 + $0x3f] sm:$0xff] }
  0x1c   :  { %4299 = vmatpush.bf16.msra.mxu2 %v7181_v27  ;;  %v7226_v44 = vld [vmem:[%s9307_s1 + $0x1f0] sm:$0xff]  ;;  %v7209_v46 = vld [vmem:[%s9307_s1 + $0x168] sm:$0xff]  ;;  %v7200_v54 = vld [vmem:[%s9307_s1 + $0x120] sm:$0xff] }
  0x1d   :  { %4312 = vmatpush.bf16.msra.mxu3 %v7189_v28  ;;  %v7217_v47 = vld [vmem:[%s9307_s1 + $0x1a8] sm:$0xff]  ;;  %v1059_v49 = vld [vmem:[#allocation1 + $0x36] sm:$0xff]  ;;  %v7208_v55 = vld [vmem:[%s9307_s1 + $0x160] sm:$0xff] }
  0x1e   :  { %4274 = vmatpush.bf16.msra.mxu0 %v7164_v29  ;;  %v7225_v48 = vld [vmem:[%s9307_s1 + $0x1e8] sm:$0xff]  ;;  %v7216_v56 = vld [vmem:[%s9307_s1 + $0x1a0] sm:$0xff]  ;;  %v7199_v58 = vld [vmem:[%s9307_s1 + $0x118] sm:$0xff] }
  0x1f   :  { %4287 = vmatpush.bf16.msra.mxu1 %v7172_v30  ;;  %v1057_v50 = vld [vmem:[#allocation1 + $0x24] sm:$0xff]  ;;  %v1058_v53 = vld [vmem:[#allocation1 + $0x2d] sm:$0xff]  ;;  %v7207_v59 = vld [vmem:[%s9307_s1 + $0x158] sm:$0xff] }
  0x20   :  { %4300 = vmatpush.bf16.msra.mxu2 %v7180_v31  ;;  %v16_v52 = vld [vmem:[%s9306_s0 + $0x8] sm:$0xff]  ;;  %v7224_v57 = vld [vmem:[%s9307_s1 + $0x1e0] sm:$0xff]  ;;  %v7215_v60 = vld [vmem:[%s9307_s1 + $0x198] sm:$0xff] }
  0x21   :  { %4313 = vmatpush.bf16.msra.mxu3 %v7188_v32  ;;  %4275 = vmatmul.bf16.vlgmr.msra.gmra.mxu0 %v1053_v39  ;;  %1062 = vst [vmem:[#allocation1] ss:$9 sm:$0xff] %v16_v52  ;;  %v7223_v61 = vld [vmem:[%s9307_s1 + $0x1d8] sm:$0xff]  ;;  %v7198_v62 = vld [vmem:[%s9307_s1 + $0x110] sm:$0xff]  ;;  %v7197_v2 = vld [vmem:[%s9307_s1 + $0x108] sm:$0xff] }
  0x22   :  { %4319 = vmatpush.bf16.msrb.mxu0 %v7203_v33  ;;  %4288 = vmatmul.bf16.vlgmr.msra.gmra.mxu1 %v1054_v42  ;;  %v7206_v63 = vld [vmem:[%s9307_s1 + $0x150] sm:$0xff]  ;;  %v7205_v3 = vld [vmem:[%s9307_s1 + $0x148] sm:$0xff]  ;;  %v7196_v6 = vld [vmem:[%s9307_s1 + $0x100] sm:$0xff] }
  0x23   :  { %4332 = vmatpush.bf16.msrb.mxu1 %v7211_v34  ;;  %4301 = vmatmul.bf16.vlgmr.msra.gmra.mxu2 %v1055_v38  ;;  %v7214_v0 = vld [vmem:[%s9307_s1 + $0x190] sm:$0xff]  ;;  %v7213_v4 = vld [vmem:[%s9307_s1 + $0x188] sm:$0xff]  ;;  %v7204_v7 = vld [vmem:[%s9307_s1 + $0x140] sm:$0xff] }
  0x24   :  { %4345 = vmatpush.bf16.msrb.mxu2 %v7219_v35  ;;  %4314 = vmatmul.bf16.vlgmr.msra.gmra.mxu3 %v1056_v41  ;;  %v7222_v1 = vld [vmem:[%s9307_s1 + $0x1d0] sm:$0xff]  ;;  %v7221_v5 = vld [vmem:[%s9307_s1 + $0x1c8] sm:$0xff]  ;;  %v7212_v8 = vld [vmem:[%s9307_s1 + $0x180] sm:$0xff] }
  0x25   :  { %4358 = vmatpush.bf16.msrb.mxu3 %v7227_v36  ;;  %v7220_v9 = vld [vmem:[%s9307_s1 + $0x1c0] sm:$0xff]  ;;  %v7235_v10 = vld [vmem:[%s9307_s1 + $0x238] sm:$0xff]  ;;  %v7234_v14 = vld [vmem:[%s9307_s1 + $0x230] sm:$0xff] }
  0x26   :  { %4320 = vmatpush.bf16.msrb.mxu0 %v7202_v37  ;;  %v7243_v11 = vld [vmem:[%s9307_s1 + $0x278] sm:$0xff]  ;;  %v7242_v15 = vld [vmem:[%s9307_s1 + $0x270] sm:$0xff]  ;;  %v7233_v18 = vld [vmem:[%s9307_s1 + $0x228] sm:$0xff] }
  0x27   :  { %4333 = vmatpush.bf16.msrb.mxu1 %v7210_v40  ;;  %v7251_v12 = vld [vmem:[%s9307_s1 + $0x2b8] sm:$0xff]  ;;  %v7250_v16 = vld [vmem:[%s9307_s1 + $0x2b0] sm:$0xff]  ;;  %v7241_v19 = vld [vmem:[%s9307_s1 + $0x268] sm:$0xff] }
  0x28   :  { %4346 = vmatpush.bf16.msrb.mxu2 %v7218_v43  ;;  %v7259_v13 = vld [vmem:[%s9307_s1 + $0x2f8] sm:$0xff]  ;;  %v7258_v17 = vld [vmem:[%s9307_s1 + $0x2f0] sm:$0xff]  ;;  %v7249_v20 = vld [vmem:[%s9307_s1 + $0x2a8] sm:$0xff] }
  0x29   :  { %4359 = vmatpush.bf16.msrb.mxu3 %v7226_v44  ;;  %v7257_v21 = vld [vmem:[%s9307_s1 + $0x2e8] sm:$0xff]  ;;  %v7232_v22 = vld [vmem:[%s9307_s1 + $0x220] sm:$0xff]  ;;  %v7231_v26 = vld [vmem:[%s9307_s1 + $0x218] sm:$0xff] }
  0x2a   :  { %4321 = vmatpush.bf16.msrb.mxu0 %v7201_v45  ;;  %v7240_v23 = vld [vmem:[%s9307_s1 + $0x260] sm:$0xff]  ;;  %v7239_v27 = vld [vmem:[%s9307_s1 + $0x258] sm:$0xff]  ;;  %v7230_v30 = vld [vmem:[%s9307_s1 + $0x210] sm:$0xff] }
  0x2b   :  { %4334 = vmatpush.bf16.msrb.mxu1 %v7209_v46  ;;  %v7248_v24 = vld [vmem:[%s9307_s1 + $0x2a0] sm:$0xff]  ;;  %v7247_v28 = vld [vmem:[%s9307_s1 + $0x298] sm:$0xff]  ;;  %v7238_v31 = vld [vmem:[%s9307_s1 + $0x250] sm:$0xff] }
  0x2c   :  { %4347 = vmatpush.bf16.msrb.mxu2 %v7217_v47  ;;  %v7256_v25 = vld [vmem:[%s9307_s1 + $0x2e0] sm:$0xff]  ;;  %v7255_v29 = vld [vmem:[%s9307_s1 + $0x2d8] sm:$0xff]  ;;  %v7246_v32 = vld [vmem:[%s9307_s1 + $0x290] sm:$0xff] }
  0x2d   :  { %4360 = vmatpush.bf16.msrb.mxu3 %v7225_v48  ;;  %v7254_v33 = vld [vmem:[%s9307_s1 + $0x2d0] sm:$0xff]  ;;  %v7229_v34 = vld [vmem:[%s9307_s1 + $0x208] sm:$0xff]  ;;  %v7228_v38 = vld [vmem:[%s9307_s1 + $0x200] sm:$0xff] }
  0x2e   :  { %4322 = vmatpush.bf16.msrb.mxu0 %v7200_v54  ;;  %v7237_v35 = vld [vmem:[%s9307_s1 + $0x248] sm:$0xff]  ;;  %v7236_v39 = vld [vmem:[%s9307_s1 + $0x240] sm:$0xff]  ;;  %v7267_v42 = vld [vmem:[%s9307_s1 + $0x338] sm:$0xff] }
  0x2f   :  { %4335 = vmatpush.bf16.msrb.mxu1 %v7208_v55  ;;  %v7245_v36 = vld [vmem:[%s9307_s1 + $0x288] sm:$0xff]  ;;  %v7244_v40 = vld [vmem:[%s9307_s1 + $0x280] sm:$0xff]  ;;  %v7275_v43 = vld [vmem:[%s9307_s1 + $0x378] sm:$0xff] }
  0x30   :  { %4348 = vmatpush.bf16.msrb.mxu2 %v7216_v56  ;;  %v7253_v37 = vld [vmem:[%s9307_s1 + $0x2c8] sm:$0xff]  ;;  %v7252_v41 = vld [vmem:[%s9307_s1 + $0x2c0] sm:$0xff]  ;;  %v7283_v44 = vld [vmem:[%s9307_s1 + $0x3b8] sm:$0xff] }
  0x31   :  { %4361 = vmatpush.bf16.msrb.mxu3 %v7224_v57  ;;  %v7291_v45 = vld [vmem:[%s9307_s1 + $0x3f8] sm:$0xff]  ;;  %v1063_v46 = vld [vmem:[#allocation1] sm:$0xff]  ;;  %v1064_v48 = vld [vmem:[#allocation1 + $0x9] sm:$0xff] }
  0x32   :  { %4323 = vmatpush.bf16.msrb.mxu0 %v7199_v58  ;;  %v1065_v47 = vld [vmem:[#allocation1 + $0x12] sm:$0xff]  ;;  %v7265_v54 = vld [vmem:[%s9307_s1 + $0x328] sm:$0xff]  ;;  %v7264_v58 = vld [vmem:[%s9307_s1 + $0x320] sm:$0xff] }
  0x33   :  { %4336 = vmatpush.bf16.msrb.mxu1 %v7207_v59  ;;  %v7282_v52 = vld [vmem:[%s9307_s1 + $0x3b0] sm:$0xff]  ;;  %v7273_v55 = vld [vmem:[%s9307_s1 + $0x368] sm:$0xff]  ;;  %v7272_v59 = vld [vmem:[%s9307_s1 + $0x360] sm:$0xff] }
  0x34   :  { %4349 = vmatpush.bf16.msrb.mxu2 %v7215_v60  ;;  %v7281_v56 = vld [vmem:[%s9307_s1 + $0x3a8] sm:$0xff]  ;;  %v7280_v60 = vld [vmem:[%s9307_s1 + $0x3a0] sm:$0xff] }
  0x35   :  { %4362 = vmatpush.bf16.msrb.mxu3 %v7223_v61  ;;  %v7289_v57 = vld [vmem:[%s9307_s1 + $0x3e8] sm:$0xff]  ;;  %v7288_v61 = vld [vmem:[%s9307_s1 + $0x3e0] sm:$0xff] }
  0x36   :  { %4324 = vmatpush.bf16.msrb.mxu0 %v7198_v62  ;;  %v7263_v62 = vld [vmem:[%s9307_s1 + $0x318] sm:$0xff] }
  0x37   :  { %4337 = vmatpush.bf16.msrb.mxu1 %v7206_v63  ;;  %v7271_v63 = vld [vmem:[%s9307_s1 + $0x358] sm:$0xff] }
  0x38   :  { %4350 = vmatpush.bf16.msrb.mxu2 %v7214_v0  ;;  %v7279_v0 = vld [vmem:[%s9307_s1 + $0x398] sm:$0xff] }
  0x39   :  { %4363 = vmatpush.bf16.msrb.mxu3 %v7222_v1  ;;  %v7287_v1 = vld [vmem:[%s9307_s1 + $0x3d8] sm:$0xff] }
  0x3a   :  { %4325 = vmatpush.bf16.msrb.mxu0 %v7197_v2  ;;  %v7262_v2 = vld [vmem:[%s9307_s1 + $0x310] sm:$0xff] }
  0x3b   :  { %4338 = vmatpush.bf16.msrb.mxu1 %v7205_v3  ;;  %v7270_v3 = vld [vmem:[%s9307_s1 + $0x350] sm:$0xff] }
  0x3c   :  { %4351 = vmatpush.bf16.msrb.mxu2 %v7213_v4  ;;  %v7278_v4 = vld [vmem:[%s9307_s1 + $0x390] sm:$0xff] }
  0x3d   :  { %4364 = vmatpush.bf16.msrb.mxu3 %v7221_v5  ;;  %v7286_v5 = vld [vmem:[%s9307_s1 + $0x3d0] sm:$0xff] }
  0x3e   :  { %4326 = vmatpush.bf16.msrb.mxu0 %v7196_v6  ;;  %v7261_v6 = vld [vmem:[%s9307_s1 + $0x308] sm:$0xff] }
  0x3f   :  { %4339 = vmatpush.bf16.msrb.mxu1 %v7204_v7  ;;  %v7269_v7 = vld [vmem:[%s9307_s1 + $0x348] sm:$0xff] }
  0x40   :  { %4352 = vmatpush.bf16.msrb.mxu2 %v7212_v8  ;;  %v7277_v8 = vld [vmem:[%s9307_s1 + $0x388] sm:$0xff] }
  0x41   :  { %4365 = vmatpush.bf16.msrb.mxu3 %v7220_v9  ;;  %4327 = vmatmul.bf16.vlgmr.msrb.gmra.mxu0 %v1057_v50  ;;  %v7266_v50 = vld [vmem:[%s9307_s1 + $0x330] sm:$0xff]  ;;  %v7285_v9 = vld [vmem:[%s9307_s1 + $0x3c8] sm:$0xff] }
  0x42   :  { %4371 = vmatpush.bf16.msra.mxu0 %v7235_v10  ;;  %4340 = vmatmul.bf16.vlgmr.msrb.gmra.mxu1 %v1058_v53  ;;  %v7290_v53 = vld [vmem:[%s9307_s1 + $0x3f0] sm:$0xff]  ;;  %v1067_v10 = vld [vmem:[#allocation1 + $0x24] sm:$0xff] }
  0x43   :  { %4384 = vmatpush.bf16.msra.mxu1 %v7243_v11  ;;  %4353 = vmatmul.bf16.vlgmr.msrb.gmra.mxu2 %v1059_v49  ;;  %v1066_v49 = vld [vmem:[#allocation1 + $0x1b] sm:$0xff] }
  0x44   :  { %4397 = vmatpush.bf16.msra.mxu2 %v7251_v12  ;;  %4366 = vmatmul.bf16.vlgmr.msrb.gmra.mxu3 %v1060_v51  ;;  %v7274_v51 = vld [vmem:[%s9307_s1 + $0x370] sm:$0xff] }
  0x45   :  { %4410 = vmatpush.bf16.msra.mxu3 %v7259_v13  ;;  %v1069_v11 = vld [vmem:[#allocation1 + $0x36] sm:$0xff]  ;;  %v1068_v12 = vld [vmem:[#allocation1 + $0x2d] sm:$0xff]  ;;  %v1070_v13 = vld [vmem:[#allocation1 + $0x3f] sm:$0xff] }
  0x46   :  { %4372 = vmatpush.bf16.msra.mxu0 %v7234_v14  ;;  %v17_v14 = vld [vmem:[%s9306_s0 + $0x10] sm:$0xff] }
  0x47   :  { %4385 = vmatpush.bf16.msra.mxu1 %v7242_v15  ;;  %1072 = vst [vmem:[#allocation1] ss:$9 sm:$0xff] %v17_v14  ;;  %v7260_v15 = vld [vmem:[%s9307_s1 + $0x300] sm:$0xff]  ;;  %v7343_v14 = vld [vmem:[%s9307_s1 + $0x598] sm:$0xff] }
  0x48   :  { %4398 = vmatpush.bf16.msra.mxu2 %v7250_v16  ;;  %v7268_v16 = vld [vmem:[%s9307_s1 + $0x340] sm:$0xff] }
  0x49   :  { %4411 = vmatpush.bf16.msra.mxu3 %v7258_v17  ;;  %v7276_v17 = vld [vmem:[%s9307_s1 + $0x380] sm:$0xff] }
  0x4a   :  { %4373 = vmatpush.bf16.msra.mxu0 %v7233_v18  ;;  %v7284_v18 = vld [vmem:[%s9307_s1 + $0x3c0] sm:$0xff] }
  0x4b   :  { %4386 = vmatpush.bf16.msra.mxu1 %v7241_v19  ;;  %v7299_v19 = vld [vmem:[%s9307_s1 + $0x438] sm:$0xff] }
  0x4c   :  { %4399 = vmatpush.bf16.msra.mxu2 %v7249_v20  ;;  %v7307_v20 = vld [vmem:[%s9307_s1 + $0x478] sm:$0xff] }
  0x4d   :  { %4412 = vmatpush.bf16.msra.mxu3 %v7257_v21  ;;  %v7315_v21 = vld [vmem:[%s9307_s1 + $0x4b8] sm:$0xff] }
  0x4e   :  { %4374 = vmatpush.bf16.msra.mxu0 %v7232_v22  ;;  %v7323_v22 = vld [vmem:[%s9307_s1 + $0x4f8] sm:$0xff] }
  0x4f   :  { %4387 = vmatpush.bf16.msra.mxu1 %v7240_v23  ;;  %v7298_v23 = vld [vmem:[%s9307_s1 + $0x430] sm:$0xff] }
  0x50   :  { %4400 = vmatpush.bf16.msra.mxu2 %v7248_v24  ;;  %v7306_v24 = vld [vmem:[%s9307_s1 + $0x470] sm:$0xff] }
  0x51   :  { %4413 = vmatpush.bf16.msra.mxu3 %v7256_v25  ;;  %v7314_v25 = vld [vmem:[%s9307_s1 + $0x4b0] sm:$0xff] }
  0x52   :  { %4375 = vmatpush.bf16.msra.mxu0 %v7231_v26  ;;  %v7322_v26 = vld [vmem:[%s9307_s1 + $0x4f0] sm:$0xff] }
  0x53   :  { %4388 = vmatpush.bf16.msra.mxu1 %v7239_v27  ;;  %v7297_v27 = vld [vmem:[%s9307_s1 + $0x428] sm:$0xff] }
  0x54   :  { %4401 = vmatpush.bf16.msra.mxu2 %v7247_v28  ;;  %v7305_v28 = vld [vmem:[%s9307_s1 + $0x468] sm:$0xff] }
  0x55   :  { %4414 = vmatpush.bf16.msra.mxu3 %v7255_v29  ;;  %v7313_v29 = vld [vmem:[%s9307_s1 + $0x4a8] sm:$0xff] }
  0x56   :  { %4376 = vmatpush.bf16.msra.mxu0 %v7230_v30  ;;  %v7321_v30 = vld [vmem:[%s9307_s1 + $0x4e8] sm:$0xff] }
  0x57   :  { %4389 = vmatpush.bf16.msra.mxu1 %v7238_v31  ;;  %v7296_v31 = vld [vmem:[%s9307_s1 + $0x420] sm:$0xff] }
  0x58   :  { %4402 = vmatpush.bf16.msra.mxu2 %v7246_v32  ;;  %v7304_v32 = vld [vmem:[%s9307_s1 + $0x460] sm:$0xff] }
  0x59   :  { %4415 = vmatpush.bf16.msra.mxu3 %v7254_v33  ;;  %v7312_v33 = vld [vmem:[%s9307_s1 + $0x4a0] sm:$0xff] }
  0x5a   :  { %4377 = vmatpush.bf16.msra.mxu0 %v7229_v34  ;;  %v7320_v34 = vld [vmem:[%s9307_s1 + $0x4e0] sm:$0xff] }
  0x5b   :  { %4390 = vmatpush.bf16.msra.mxu1 %v7237_v35  ;;  %v7295_v35 = vld [vmem:[%s9307_s1 + $0x418] sm:$0xff] }
  0x5c   :  { %4403 = vmatpush.bf16.msra.mxu2 %v7245_v36  ;;  %v7303_v36 = vld [vmem:[%s9307_s1 + $0x458] sm:$0xff] }
  0x5d   :  { %4416 = vmatpush.bf16.msra.mxu3 %v7253_v37  ;;  %v7311_v37 = vld [vmem:[%s9307_s1 + $0x498] sm:$0xff] }
  0x5e   :  { %4378 = vmatpush.bf16.msra.mxu0 %v7228_v38  ;;  %v7319_v38 = vld [vmem:[%s9307_s1 + $0x4d8] sm:$0xff] }
  0x5f   :  { %4391 = vmatpush.bf16.msra.mxu1 %v7236_v39  ;;  %v7294_v39 = vld [vmem:[%s9307_s1 + $0x410] sm:$0xff] }
  0x60   :  { %4404 = vmatpush.bf16.msra.mxu2 %v7244_v40  ;;  %v7302_v40 = vld [vmem:[%s9307_s1 + $0x450] sm:$0xff] }
  0x61   :  { %4417 = vmatpush.bf16.msra.mxu3 %v7252_v41  ;;  %4379 = vmatmul.bf16.vlgmr.msra.gmra.mxu0 %v1063_v46  ;;  %v7310_v41 = vld [vmem:[%s9307_s1 + $0x490] sm:$0xff]  ;;  %v7317_v46 = vld [vmem:[%s9307_s1 + $0x4c8] sm:$0xff] }
  0x62   :  { %4423 = vmatpush.bf16.msrb.mxu0 %v7267_v42  ;;  %4392 = vmatmul.bf16.vlgmr.msra.gmra.mxu1 %v1064_v48  ;;  %v7318_v42 = vld [vmem:[%s9307_s1 + $0x4d0] sm:$0xff]  ;;  %v7300_v48 = vld [vmem:[%s9307_s1 + $0x440] sm:$0xff] }
  0x63   :  { %4436 = vmatpush.bf16.msrb.mxu1 %v7275_v43  ;;  %4405 = vmatmul.bf16.vlgmr.msra.gmra.mxu2 %v1065_v47  ;;  %v7293_v43 = vld [vmem:[%s9307_s1 + $0x408] sm:$0xff]  ;;  %v7292_v47 = vld [vmem:[%s9307_s1 + $0x400] sm:$0xff] }
  0x64   :  { %4449 = vmatpush.bf16.msrb.mxu2 %v7283_v44  ;;  %4418 = vmatmul.bf16.vlgmr.msra.gmra.mxu3 %v1066_v49  ;;  %v7301_v44 = vld [vmem:[%s9307_s1 + $0x448] sm:$0xff]  ;;  %v7308_v49 = vld [vmem:[%s9307_s1 + $0x480] sm:$0xff] }
  0x65   :  { %4462 = vmatpush.bf16.msrb.mxu3 %v7291_v45  ;;  %v7309_v45 = vld [vmem:[%s9307_s1 + $0x488] sm:$0xff] }
  0x66   :  { %4424 = vmatpush.bf16.msrb.mxu0 %v7266_v50  ;;  %v7316_v50 = vld [vmem:[%s9307_s1 + $0x4c0] sm:$0xff] }
  0x67   :  { %4437 = vmatpush.bf16.msrb.mxu1 %v7274_v51  ;;  %v7331_v51 = vld [vmem:[%s9307_s1 + $0x538] sm:$0xff] }
  0x68   :  { %4450 = vmatpush.bf16.msrb.mxu2 %v7282_v52  ;;  %v7339_v52 = vld [vmem:[%s9307_s1 + $0x578] sm:$0xff] }
  0x69   :  { %4463 = vmatpush.bf16.msrb.mxu3 %v7290_v53  ;;  %v7347_v53 = vld [vmem:[%s9307_s1 + $0x5b8] sm:$0xff] }
  0x6a   :  { %4425 = vmatpush.bf16.msrb.mxu0 %v7265_v54  ;;  %v7355_v54 = vld [vmem:[%s9307_s1 + $0x5f8] sm:$0xff] }
  0x6b   :  { %4438 = vmatpush.bf16.msrb.mxu1 %v7273_v55  ;;  %v1073_v55 = vld [vmem:[#allocation1] sm:$0xff] }
  0x6c   :  { %4451 = vmatpush.bf16.msrb.mxu2 %v7281_v56  ;;  %v1075_v56 = vld [vmem:[#allocation1 + $0x12] sm:$0xff] }
  0x6d   :  { %4464 = vmatpush.bf16.msrb.mxu3 %v7289_v57  ;;  %v1074_v57 = vld [vmem:[#allocation1 + $0x9] sm:$0xff] }
  0x6e   :  { %4426 = vmatpush.bf16.msrb.mxu0 %v7264_v58  ;;  %v1076_v58 = vld [vmem:[#allocation1 + $0x1b] sm:$0xff] }
  0x6f   :  { %4439 = vmatpush.bf16.msrb.mxu1 %v7272_v59  ;;  %v7330_v59 = vld [vmem:[%s9307_s1 + $0x530] sm:$0xff] }
  0x70   :  { %4452 = vmatpush.bf16.msrb.mxu2 %v7280_v60  ;;  %v7338_v60 = vld [vmem:[%s9307_s1 + $0x570] sm:$0xff] }
  0x71   :  { %4465 = vmatpush.bf16.msrb.mxu3 %v7288_v61  ;;  %v7346_v61 = vld [vmem:[%s9307_s1 + $0x5b0] sm:$0xff] }
  0x72   :  { %4427 = vmatpush.bf16.msrb.mxu0 %v7263_v62  ;;  %v7354_v62 = vld [vmem:[%s9307_s1 + $0x5f0] sm:$0xff] }
  0x73   :  { %4440 = vmatpush.bf16.msrb.mxu1 %v7271_v63  ;;  %v7329_v63 = vld [vmem:[%s9307_s1 + $0x528] sm:$0xff] }
  0x74   :  { %4453 = vmatpush.bf16.msrb.mxu2 %v7279_v0  ;;  %v7337_v0 = vld [vmem:[%s9307_s1 + $0x568] sm:$0xff] }
  0x75   :  { %4466 = vmatpush.bf16.msrb.mxu3 %v7287_v1  ;;  %v7677_v1 = vld [vmem:[%s9308_s2] ss:$0 sm:$0xff] }
  0x76   :  { %4428 = vmatpush.bf16.msrb.mxu0 %v7262_v2  ;;  %v7345_v2 = vld [vmem:[%s9307_s1 + $0x5a8] sm:$0xff] }
  0x77   :  { %4441 = vmatpush.bf16.msrb.mxu1 %v7270_v3  ;;  %v7353_v3 = vld [vmem:[%s9307_s1 + $0x5e8] sm:$0xff] }
  0x78   :  { %4454 = vmatpush.bf16.msrb.mxu2 %v7278_v4 }
  0x79   :  { %4467 = vmatpush.bf16.msrb.mxu3 %v7286_v5  ;;  %v7328_v5 = vld [vmem:[%s9307_s1 + $0x520] sm:$0xff] }
  0x7a   :  { %4429 = vmatpush.bf16.msrb.mxu0 %v7261_v6  ;;  %v7336_v6 = vld [vmem:[%s9307_s1 + $0x560] sm:$0xff] }
  0x7b   :  { %4442 = vmatpush.bf16.msrb.mxu1 %v7269_v7 }
  0x7c   :  { %4455 = vmatpush.bf16.msrb.mxu2 %v7277_v8 }
  0x7d   :  { %4468 = vmatpush.bf16.msrb.mxu3 %v7285_v9  ;;  %v7344_v9 = vld [vmem:[%s9307_s1 + $0x5a0] sm:$0xff] }
  0x7e   :  { %4430 = vmatpush.bf16.msrb.mxu0 %v7260_v15  ;;  %v7351_v15 = vld [vmem:[%s9307_s1 + $0x5d8] sm:$0xff] }
  0x7f   :  { %4443 = vmatpush.bf16.msrb.mxu1 %v7268_v16 }
  0x80   :  { %4456 = vmatpush.bf16.msrb.mxu2 %v7276_v17 }
  0x81   :  { %4469 = vmatpush.bf16.msrb.mxu3 %v7284_v18  ;;  %4431 = vmatmul.bf16.vlgmr.msrb.gmra.mxu0 %v1067_v10  ;;  %v7352_v10 = vld [vmem:[%s9307_s1 + $0x5e0] sm:$0xff] }
  0x82   :  { %4475 = vmatpush.bf16.msra.mxu0 %v7299_v19  ;;  %4444 = vmatmul.bf16.vlgmr.msrb.gmra.mxu1 %v1068_v12  ;;  %v7327_v12 = vld [vmem:[%s9307_s1 + $0x518] sm:$0xff] }
  0x83   :  { %4488 = vmatpush.bf16.msra.mxu1 %v7307_v20  ;;  %4457 = vmatmul.bf16.vlgmr.msrb.gmra.mxu2 %v1069_v11  ;;  %v7326_v20 = vld [vmem:[%s9307_s1 + $0x510] sm:$0xff] }
  0x84   :  { %4501 = vmatpush.bf16.msra.mxu2 %v7315_v21  ;;  %4470 = vmatmul.bf16.vlgmr.msrb.gmra.mxu3 %v1070_v13  ;;  %v7335_v13 = vld [vmem:[%s9307_s1 + $0x558] sm:$0xff]  ;;  %v7334_v21 = vld [vmem:[%s9307_s1 + $0x550] sm:$0xff] }
  0x85   :  { %4514 = vmatpush.bf16.msra.mxu3 %v7323_v22 }
  0x86   :  { %4476 = vmatpush.bf16.msra.mxu0 %v7298_v23 }
  0x87   :  { %4489 = vmatpush.bf16.msra.mxu1 %v7306_v24  ;;  %v7342_v24 = vld [vmem:[%s9307_s1 + $0x590] sm:$0xff] }
  0x88   :  { %4502 = vmatpush.bf16.msra.mxu2 %v7314_v25  ;;  %v7350_v25 = vld [vmem:[%s9307_s1 + $0x5d0] sm:$0xff] }
  0x89   :  { %4515 = vmatpush.bf16.msra.mxu3 %v7322_v26  ;;  %v7325_v26 = vld [vmem:[%s9307_s1 + $0x508] sm:$0xff] }
  0x8a   :  { %4477 = vmatpush.bf16.msra.mxu0 %v7297_v27  ;;  %v7333_v27 = vld [vmem:[%s9307_s1 + $0x548] sm:$0xff] }
  0x8b   :  { %4490 = vmatpush.bf16.msra.mxu1 %v7305_v28  ;;  %v7341_v28 = vld [vmem:[%s9307_s1 + $0x588] sm:$0xff] }
  0x8c   :  { %4503 = vmatpush.bf16.msra.mxu2 %v7313_v29  ;;  %v7349_v29 = vld [vmem:[%s9307_s1 + $0x5c8] sm:$0xff] }
  0x8d   :  { %4516 = vmatpush.bf16.msra.mxu3 %v7321_v30  ;;  %v1077_v30 = vld [vmem:[#allocation1 + $0x24] sm:$0xff] }
  0x8e   :  { %4478 = vmatpush.bf16.msra.mxu0 %v7296_v31  ;;  %v1079_v31 = vld [vmem:[#allocation1 + $0x36] sm:$0xff] }
  0x8f   :  { %4491 = vmatpush.bf16.msra.mxu1 %v7304_v32 }
  0x90   :  { %4504 = vmatpush.bf16.msra.mxu2 %v7312_v33  ;;  %v1078_v33 = vld [vmem:[#allocation1 + $0x2d] sm:$0xff] }
  0x91   :  { %4517 = vmatpush.bf16.msra.mxu3 %v7320_v34  ;;  %v1080_v34 = vld [vmem:[#allocation1 + $0x3f] sm:$0xff] }
  0x92   :  { %4479 = vmatpush.bf16.msra.mxu0 %v7295_v35 }
  0x93   :  { %4492 = vmatpush.bf16.msra.mxu1 %v7303_v36  ;;  %v18_v36 = vld [vmem:[%s9306_s0 + $0x18] sm:$0xff] }
  0x94   :  { %4505 = vmatpush.bf16.msra.mxu2 %v7311_v37  ;;  %1082 = vst [vmem:[#allocation1] ss:$9 sm:$0xff] %v18_v36  ;;  %v7324_v37 = vld [vmem:[%s9307_s1 + $0x500] sm:$0xff]  ;;  %v7417_v36 = vld [vmem:[%s9307_s1 + $0x7e8] sm:$0xff] }
  0x95   :  { %4518 = vmatpush.bf16.msra.mxu3 %v7319_v38  ;;  %v7332_v38 = vld [vmem:[%s9307_s1 + $0x540] sm:$0xff] }
  0x96   :  { %4480 = vmatpush.bf16.msra.mxu0 %v7294_v39  ;;  %v7340_v39 = vld [vmem:[%s9307_s1 + $0x580] sm:$0xff] }
  0x97   :  { %4493 = vmatpush.bf16.msra.mxu1 %v7302_v40  ;;  %v7348_v40 = vld [vmem:[%s9307_s1 + $0x5c0] sm:$0xff] }
  0x98   :  { %4506 = vmatpush.bf16.msra.mxu2 %v7310_v41  ;;  %v7363_v41 = vld [vmem:[%s9307_s1 + $0x638] sm:$0xff] }
  0x99   :  { %4519 = vmatpush.bf16.msra.mxu3 %v7318_v42  ;;  %v7371_v42 = vld [vmem:[%s9307_s1 + $0x678] sm:$0xff] }
  0x9a   :  { %4481 = vmatpush.bf16.msra.mxu0 %v7293_v43  ;;  %v7379_v43 = vld [vmem:[%s9307_s1 + $0x6b8] sm:$0xff] }
  0x9b   :  { %4494 = vmatpush.bf16.msra.mxu1 %v7301_v44  ;;  %v7387_v44 = vld [vmem:[%s9307_s1 + $0x6f8] sm:$0xff] }
  0x9c   :  { %4507 = vmatpush.bf16.msra.mxu2 %v7309_v45  ;;  %v7362_v45 = vld [vmem:[%s9307_s1 + $0x630] sm:$0xff] }
  0x9d   :  { %4520 = vmatpush.bf16.msra.mxu3 %v7317_v46  ;;  %v7370_v46 = vld [vmem:[%s9307_s1 + $0x670] sm:$0xff] }
  0x9e   :  { %4482 = vmatpush.bf16.msra.mxu0 %v7292_v47  ;;  %v4276_v4 = vpop.f32.mrf.mxu0  ;;  %v7378_v47 = vld [vmem:[%s9307_s1 + $0x6b0] sm:$0xff] }
  0x9f   :  { %4495 = vmatpush.bf16.msra.mxu1 %v7300_v48  ;;  %v4277_v7 = vadd.f32 %v7677_v1, %v4276_v4  ;;  %v4289_v8 = vpop.f32.mrf.mxu1  ;;  %v7386_v48 = vld [vmem:[%s9307_s1 + $0x6f0] sm:$0xff] }
  0xa0   :  { %4508 = vmatpush.bf16.msra.mxu2 %v7308_v49  ;;  %v7361_v49 = vld [vmem:[%s9307_s1 + $0x628] sm:$0xff] }
  0xa1   :  { %4521 = vmatpush.bf16.msra.mxu3 %v7316_v50  ;;  %4483 = vmatmul.bf16.vlgmr.msra.gmra.mxu0 %v1073_v55  ;;  %v4290_v11 = vadd.f32 %v4289_v8, %v4277_v7  ;;  %v7369_v50 = vld [vmem:[%s9307_s1 + $0x668] sm:$0xff]  ;;  %v7368_v55 = vld [vmem:[%s9307_s1 + $0x660] sm:$0xff] }
  0xa2   :  { %4527 = vmatpush.bf16.msrb.mxu0 %v7331_v51  ;;  %4496 = vmatmul.bf16.vlgmr.msra.gmra.mxu1 %v1074_v57  ;;  %v7377_v51 = vld [vmem:[%s9307_s1 + $0x6a8] sm:$0xff] }
  0xa3   :  { %4540 = vmatpush.bf16.msrb.mxu1 %v7339_v52  ;;  %4509 = vmatmul.bf16.vlgmr.msra.gmra.mxu2 %v1075_v56  ;;  %v7385_v52 = vld [vmem:[%s9307_s1 + $0x6e8] sm:$0xff] }
  0xa4   :  { %4553 = vmatpush.bf16.msrb.mxu2 %v7347_v53  ;;  %4522 = vmatmul.bf16.vlgmr.msra.gmra.mxu3 %v1076_v58  ;;  %v7376_v58 = vld [vmem:[%s9307_s1 + $0x6a0] sm:$0xff] }
  0xa5   :  { %4566 = vmatpush.bf16.msrb.mxu3 %v7355_v54  ;;  %v7360_v54 = vld [vmem:[%s9307_s1 + $0x620] sm:$0xff] }
  0xa6   :  { %4528 = vmatpush.bf16.msrb.mxu0 %v7330_v59  ;;  %v4302_v16 = vpop.f32.mrf.mxu2  ;;  %v4278_v19 = vpop.f32.mrf.mxu0  ;;  %v7384_v59 = vld [vmem:[%s9307_s1 + $0x6e0] sm:$0xff] }
  0xa7   :  { %4541 = vmatpush.bf16.msrb.mxu1 %v7338_v60  ;;  %v4303_v17 = vadd.f32 %v4302_v16, %v4290_v11  ;;  %v4315_v18 = vpop.f32.mrf.mxu3  ;;  %v4291_v23 = vpop.f32.mrf.mxu1  ;;  %v7357_v11 = vld [vmem:[%s9307_s1 + $0x608] sm:$0xff]  ;;  %v7372_v19 = vld [vmem:[%s9307_s1 + $0x680] sm:$0xff] }
  0xa8   :  { %4554 = vmatpush.bf16.msrb.mxu2 %v7346_v61  ;;  %v7359_v61 = vld [vmem:[%s9307_s1 + $0x618] sm:$0xff] }
  0xa9   :  { %4567 = vmatpush.bf16.msrb.mxu3 %v7354_v62  ;;  %v8283_v22 = vadd.f32 %v4315_v18, %v4303_v17  ;;  %v7367_v62 = vld [vmem:[%s9307_s1 + $0x658] sm:$0xff]  ;;  %v7356_v17 = vld [vmem:[%s9307_s1 + $0x600] sm:$0xff] }
  0xaa   :  { %4529 = vmatpush.bf16.msrb.mxu0 %v7329_v63  ;;  %v7375_v63 = vld [vmem:[%s9307_s1 + $0x698] sm:$0xff]  ;;  %v7364_v18 = vld [vmem:[%s9307_s1 + $0x640] sm:$0xff] }
  0xab   :  { %4542 = vmatpush.bf16.msrb.mxu1 %v7337_v0  ;;  %v7383_v0 = vld [vmem:[%s9307_s1 + $0x6d8] sm:$0xff] }
  0xac   :  { %4555 = vmatpush.bf16.msrb.mxu2 %v7345_v2  ;;  %v7411_v23 = vld [vmem:[%s9307_s1 + $0x7b8] sm:$0xff] }
  0xad   :  { %4568 = vmatpush.bf16.msrb.mxu3 %v7353_v3 }
  0xae   :  { %4530 = vmatpush.bf16.msrb.mxu0 %v7328_v5  ;;  %v4304_v32 = vpop.f32.mrf.mxu2  ;;  %v7358_v5 = vld [vmem:[%s9307_s1 + $0x610] sm:$0xff] }
  0xaf   :  { %4543 = vmatpush.bf16.msrb.mxu1 %v7336_v6  ;;  %v4317_v35 = vpop.f32.mrf.mxu3  ;;  %v7366_v6 = vld [vmem:[%s9307_s1 + $0x650] sm:$0xff] }
  0xb0   :  { %4556 = vmatpush.bf16.msrb.mxu2 %v7344_v9  ;;  %v7374_v9 = vld [vmem:[%s9307_s1 + $0x690] sm:$0xff]  ;;  %v7409_v35 = vld [vmem:[%s9307_s1 + $0x7a8] sm:$0xff] }
  0xb1   :  { %4569 = vmatpush.bf16.msrb.mxu3 %v7352_v10  ;;  %v7382_v10 = vld [vmem:[%s9307_s1 + $0x6d0] sm:$0xff] }
  0xb2   :  { %4531 = vmatpush.bf16.msrb.mxu0 %v7327_v12  ;;  %v7365_v12 = vld [vmem:[%s9307_s1 + $0x648] sm:$0xff]  ;;  %v7418_v32 = vld [vmem:[%s9307_s1 + $0x7f0] sm:$0xff] }
  0xb3   :  { %4544 = vmatpush.bf16.msrb.mxu1 %v7335_v13  ;;  %v7373_v13 = vld [vmem:[%s9307_s1 + $0x688] sm:$0xff] }
  0xb4   :  { %4557 = vmatpush.bf16.msrb.mxu2 %v7343_v14  ;;  %v7381_v14 = vld [vmem:[%s9307_s1 + $0x6c8] sm:$0xff] }
  0xb5   :  { %4570 = vmatpush.bf16.msrb.mxu3 %v7351_v15 }
  0xb6   :  { %4532 = vmatpush.bf16.msrb.mxu0 %v7326_v20  ;;  %v7380_v20 = vld [vmem:[%s9307_s1 + $0x6c0] sm:$0xff] }
  0xb7   :  { %4545 = vmatpush.bf16.msrb.mxu1 %v7334_v21  ;;  %v7395_v21 = vld [vmem:[%s9307_s1 + $0x738] sm:$0xff] }
  0xb8   :  { %4558 = vmatpush.bf16.msrb.mxu2 %v7342_v24  ;;  %v7419_v24 = vld [vmem:[%s9307_s1 + $0x7f8] sm:$0xff] }
  0xb9   :  { %4571 = vmatpush.bf16.msrb.mxu3 %v7350_v25  ;;  %v1083_v25 = vld [vmem:[#allocation1] sm:$0xff] }
  0xba   :  { %4533 = vmatpush.bf16.msrb.mxu0 %v7325_v26  ;;  %v1085_v26 = vld [vmem:[#allocation1 + $0x12] sm:$0xff] }
  0xbb   :  { %4546 = vmatpush.bf16.msrb.mxu1 %v7333_v27  ;;  %v1084_v27 = vld [vmem:[#allocation1 + $0x9] sm:$0xff] }
  0xbc   :  { %4559 = vmatpush.bf16.msrb.mxu2 %v7341_v28  ;;  %v1086_v28 = vld [vmem:[#allocation1 + $0x1b] sm:$0xff] }
  0xbd   :  { %4572 = vmatpush.bf16.msrb.mxu3 %v7349_v29  ;;  %v7394_v29 = vld [vmem:[%s9307_s1 + $0x730] sm:$0xff] }
  0xbe   :  { %4534 = vmatpush.bf16.msrb.mxu0 %v7324_v37  ;;  %v4328_v53 = vpop.f32.mrf.mxu0 }
  0xbf   :  { %4547 = vmatpush.bf16.msrb.mxu1 %v7332_v38  ;;  %v4329_v56 = vadd.f32 %v4328_v53, %v8283_v22  ;;  %v4341_v57 = vpop.f32.mrf.mxu1  ;;  %v7403_v22 = vld [vmem:[%s9307_s1 + $0x778] sm:$0xff] }
  0xc0   :  { %4560 = vmatpush.bf16.msrb.mxu2 %v7340_v39  ;;  %v7392_v39 = vld [vmem:[%s9307_s1 + $0x720] sm:$0xff] }
  0xc1   :  { %4573 = vmatpush.bf16.msrb.mxu3 %v7348_v40  ;;  %4535 = vmatmul.bf16.vlgmr.msrb.gmra.mxu0 %v1077_v30  ;;  %v4342_v60 = vadd.f32 %v4341_v57, %v4329_v56  ;;  %v7402_v30 = vld [vmem:[%s9307_s1 + $0x770] sm:$0xff]  ;;  %v7400_v40 = vld [vmem:[%s9307_s1 + $0x760] sm:$0xff] }
  0xc2   :  { %4579 = vmatpush.bf16.msra.mxu0 %v7363_v41  ;;  %4548 = vmatmul.bf16.vlgmr.msrb.gmra.mxu1 %v1078_v33  ;;  %v7393_v33 = vld [vmem:[%s9307_s1 + $0x728] sm:$0xff]  ;;  %v7406_v57 = vld [vmem:[%s9307_s1 + $0x790] sm:$0xff] }
  0xc3   :  { %4592 = vmatpush.bf16.msra.mxu1 %v7371_v42  ;;  %4561 = vmatmul.bf16.vlgmr.msrb.gmra.mxu2 %v1079_v31  ;;  %v7410_v31 = vld [vmem:[%s9307_s1 + $0x7b0] sm:$0xff]  ;;  %v7408_v42 = vld [vmem:[%s9307_s1 + $0x7a0] sm:$0xff] }
  0xc4   :  { %4605 = vmatpush.bf16.msra.mxu2 %v7379_v43  ;;  %4574 = vmatmul.bf16.vlgmr.msrb.gmra.mxu3 %v1080_v34  ;;  %v7401_v34 = vld [vmem:[%s9307_s1 + $0x768] sm:$0xff]  ;;  %v7416_v43 = vld [vmem:[%s9307_s1 + $0x7e0] sm:$0xff] }
  0xc5   :  { %4618 = vmatpush.bf16.msra.mxu3 %v7387_v44 }
  0xc6   :  { %4580 = vmatpush.bf16.msra.mxu0 %v7362_v45  ;;  %v4354_v1 = vpop.f32.mrf.mxu2  ;;  %v4330_v4 = vpop.f32.mrf.mxu0  ;;  %v7391_v45 = vld [vmem:[%s9307_s1 + $0x718] sm:$0xff] }
  0xc7   :  { %4593 = vmatpush.bf16.msra.mxu1 %v7370_v46  ;;  %v4355_v2 = vadd.f32 %v4354_v1, %v4342_v60  ;;  %v4367_v3 = vpop.f32.mrf.mxu3  ;;  %v4343_v8 = vpop.f32.mrf.mxu1  ;;  %v7399_v46 = vld [vmem:[%s9307_s1 + $0x758] sm:$0xff]  ;;  %v7397_v60 = vld [vmem:[%s9307_s1 + $0x748] sm:$0xff] }
  0xc8   :  { %4606 = vmatpush.bf16.msra.mxu2 %v7378_v47  ;;  %v7407_v47 = vld [vmem:[%s9307_s1 + $0x798] sm:$0xff]  ;;  %v7404_v8 = vld [vmem:[%s9307_s1 + $0x780] sm:$0xff] }
  0xc9   :  { %4619 = vmatpush.bf16.msra.mxu3 %v7386_v48  ;;  %v4368_v7 = vadd.f32 %v4367_v3, %v4355_v2  ;;  %v7415_v48 = vld [vmem:[%s9307_s1 + $0x7d8] sm:$0xff]  ;;  %v1088_v2 = vld [vmem:[#allocation1 + $0x2d] sm:$0xff] }
  0xca   :  { %4581 = vmatpush.bf16.msra.mxu0 %v7361_v49  ;;  %v1090_v3 = vld [vmem:[#allocation1 + $0x3f] sm:$0xff] }
  0xcb   :  { %4594 = vmatpush.bf16.msra.mxu1 %v7369_v50 }
  0xcc   :  { %4607 = vmatpush.bf16.msra.mxu2 %v7377_v51 }
  0xcd   :  { %4620 = vmatpush.bf16.msra.mxu3 %v7385_v52 }
  0xce   :  { %4582 = vmatpush.bf16.msra.mxu0 %v7360_v54  ;;  %v4356_v15 = vpop.f32.mrf.mxu2  ;;  %v7390_v54 = vld [vmem:[%s9307_s1 + $0x710] sm:$0xff] }
  0xcf   :  { %4595 = vmatpush.bf16.msra.mxu1 %v7368_v55  ;;  %v4369_v16 = vpop.f32.mrf.mxu3  ;;  %v7398_v55 = vld [vmem:[%s9307_s1 + $0x750] sm:$0xff] }
  0xd0   :  { %4608 = vmatpush.bf16.msra.mxu2 %v7376_v58  ;;  %v7414_v58 = vld [vmem:[%s9307_s1 + $0x7d0] sm:$0xff] }
  0xd1   :  { %4621 = vmatpush.bf16.msra.mxu3 %v7384_v59  ;;  %v7389_v59 = vld [vmem:[%s9307_s1 + $0x708] sm:$0xff]  ;;  %v7434_v15 = vld [vmem:[%s9307_s1 + $0x870] sm:$0xff] }
  0xd2   :  { %4583 = vmatpush.bf16.msra.mxu0 %v7359_v61  ;;  %v7405_v61 = vld [vmem:[%s9307_s1 + $0x788] sm:$0xff]  ;;  %v7442_v16 = vld [vmem:[%s9307_s1 + $0x8b0] sm:$0xff] }
  0xd3   :  { %4596 = vmatpush.bf16.msra.mxu1 %v7367_v62  ;;  %v7413_v62 = vld [vmem:[%s9307_s1 + $0x7c8] sm:$0xff] }
  0xd4   :  { %4609 = vmatpush.bf16.msra.mxu2 %v7375_v63  ;;  %v1087_v63 = vld [vmem:[#allocation1 + $0x24] sm:$0xff] }
  0xd5   :  { %4622 = vmatpush.bf16.msra.mxu3 %v7383_v0  ;;  %v1089_v0 = vld [vmem:[#allocation1 + $0x36] sm:$0xff] }
  0xd6   :  { %4584 = vmatpush.bf16.msra.mxu0 %v7358_v5  ;;  %v19_v5 = vld [vmem:[%s9306_s0 + $0x20] sm:$0xff] }
  0xd7   :  { %4597 = vmatpush.bf16.msra.mxu1 %v7366_v6  ;;  %1092 = vst [vmem:[#allocation1] ss:$9 sm:$0xff] %v19_v5  ;;  %v7388_v6 = vld [vmem:[%s9307_s1 + $0x700] sm:$0xff]  ;;  %v7481_v5 = vld [vmem:[%s9307_s1 + $0x9e8] sm:$0xff] }
  0xd8   :  { %4610 = vmatpush.bf16.msra.mxu2 %v7374_v9  ;;  %v7412_v9 = vld [vmem:[%s9307_s1 + $0x7c0] sm:$0xff] }
  0xd9   :  { %4623 = vmatpush.bf16.msra.mxu3 %v7382_v10  ;;  %v7427_v10 = vld [vmem:[%s9307_s1 + $0x838] sm:$0xff] }
  0xda   :  { %4585 = vmatpush.bf16.msra.mxu0 %v7357_v11  ;;  %v7435_v11 = vld [vmem:[%s9307_s1 + $0x878] sm:$0xff] }
  0xdb   :  { %4598 = vmatpush.bf16.msra.mxu1 %v7365_v12  ;;  %v7443_v12 = vld [vmem:[%s9307_s1 + $0x8b8] sm:$0xff] }
  0xdc   :  { %4611 = vmatpush.bf16.msra.mxu2 %v7373_v13  ;;  %v7451_v13 = vld [vmem:[%s9307_s1 + $0x8f8] sm:$0xff] }
  0xdd   :  { %4624 = vmatpush.bf16.msra.mxu3 %v7381_v14  ;;  %v7426_v14 = vld [vmem:[%s9307_s1 + $0x830] sm:$0xff] }
  0xde   :  { %4586 = vmatpush.bf16.msra.mxu0 %v7356_v17  ;;  %v4380_v37 = vpop.f32.mrf.mxu0  ;;  %v7450_v17 = vld [vmem:[%s9307_s1 + $0x8f0] sm:$0xff] }
  0xdf   :  { %4599 = vmatpush.bf16.msra.mxu1 %v7364_v18  ;;  %v4381_v38 = vadd.f32 %v4380_v37, %v4368_v7  ;;  %v4393_v41 = vpop.f32.mrf.mxu1  ;;  %v7396_v7 = vld [vmem:[%s9307_s1 + $0x740] sm:$0xff]  ;;  %v7425_v18 = vld [vmem:[%s9307_s1 + $0x828] sm:$0xff] }
  0xe0   :  { %4612 = vmatpush.bf16.msra.mxu2 %v7372_v19  ;;  %v7433_v19 = vld [vmem:[%s9307_s1 + $0x868] sm:$0xff] }
  0xe1   :  { %4625 = vmatpush.bf16.msra.mxu3 %v7380_v20  ;;  %4587 = vmatmul.bf16.vlgmr.msra.gmra.mxu0 %v1083_v25  ;;  %v4394_v44 = vadd.f32 %v4393_v41, %v4381_v38  ;;  %v7441_v20 = vld [vmem:[%s9307_s1 + $0x8a8] sm:$0xff]  ;;  %v7432_v25 = vld [vmem:[%s9307_s1 + $0x860] sm:$0xff] }
  0xe2   :  { %4631 = vmatpush.bf16.msrb.mxu0 %v7395_v21  ;;  %4600 = vmatmul.bf16.vlgmr.msra.gmra.mxu1 %v1084_v27  ;;  %v7449_v21 = vld [vmem:[%s9307_s1 + $0x8e8] sm:$0xff]  ;;  %v7440_v27 = vld [vmem:[%s9307_s1 + $0x8a0] sm:$0xff] }
  0xe3   :  { %4644 = vmatpush.bf16.msrb.mxu1 %v7403_v22  ;;  %4613 = vmatmul.bf16.vlgmr.msra.gmra.mxu2 %v1085_v26 }
  0xe4   :  { %4657 = vmatpush.bf16.msrb.mxu2 %v7411_v23  ;;  %4626 = vmatmul.bf16.vlgmr.msra.gmra.mxu3 %v1086_v28  ;;  %v7448_v28 = vld [vmem:[%s9307_s1 + $0x8e0] sm:$0xff] }
  0xe5   :  { %4670 = vmatpush.bf16.msrb.mxu3 %v7419_v24  ;;  %v7424_v24 = vld [vmem:[%s9307_s1 + $0x820] sm:$0xff] }
  0xe6   :  { %4632 = vmatpush.bf16.msrb.mxu0 %v7394_v29  ;;  %v4406_v49 = vpop.f32.mrf.mxu2  ;;  %v4382_v52 = vpop.f32.mrf.mxu0 }
  0xe7   :  { %4645 = vmatpush.bf16.msrb.mxu1 %v7402_v30  ;;  %v4407_v50 = vadd.f32 %v4406_v49, %v4394_v44  ;;  %v4419_v51 = vpop.f32.mrf.mxu3  ;;  %v4395_v56 = vpop.f32.mrf.mxu1  ;;  %v7423_v30 = vld [vmem:[%s9307_s1 + $0x818] sm:$0xff]  ;;  %v7421_v44 = vld [vmem:[%s9307_s1 + $0x808] sm:$0xff]  ;;  %v7436_v52 = vld [vmem:[%s9307_s1 + $0x880] sm:$0xff] }
  0xe8   :  { %4658 = vmatpush.bf16.msrb.mxu2 %v7410_v31  ;;  %v7431_v31 = vld [vmem:[%s9307_s1 + $0x858] sm:$0xff] }
  0xe9   :  { %4671 = vmatpush.bf16.msrb.mxu3 %v7418_v32  ;;  %v8475_v53 = vadd.f32 %v4419_v51, %v4407_v50  ;;  %v7439_v32 = vld [vmem:[%s9307_s1 + $0x898] sm:$0xff]  ;;  %v7420_v50 = vld [vmem:[%s9307_s1 + $0x800] sm:$0xff] }
  0xea   :  { %4633 = vmatpush.bf16.msrb.mxu0 %v7393_v33  ;;  %v7447_v33 = vld [vmem:[%s9307_s1 + $0x8d8] sm:$0xff]  ;;  %v7428_v51 = vld [vmem:[%s9307_s1 + $0x840] sm:$0xff] }
  0xeb   :  { %4646 = vmatpush.bf16.msrb.mxu1 %v7401_v34  ;;  %v7475_v56 = vld [vmem:[%s9307_s1 + $0x9b8] sm:$0xff] }
  0xec   :  { %4659 = vmatpush.bf16.msrb.mxu2 %v7409_v35 }
  0xed   :  { %4672 = vmatpush.bf16.msrb.mxu3 %v7417_v36 }
  0xee   :  { %4634 = vmatpush.bf16.msrb.mxu0 %v7392_v39  ;;  %v4408_v1 = vpop.f32.mrf.mxu2  ;;  %v7422_v39 = vld [vmem:[%s9307_s1 + $0x810] sm:$0xff] }
  0xef   :  { %4647 = vmatpush.bf16.msrb.mxu1 %v7400_v40  ;;  %v4421_v4 = vpop.f32.mrf.mxu3  ;;  %v7430_v40 = vld [vmem:[%s9307_s1 + $0x850] sm:$0xff] }
  0xf0   :  { %4660 = vmatpush.bf16.msrb.mxu2 %v7408_v42  ;;  %v7438_v42 = vld [vmem:[%s9307_s1 + $0x890] sm:$0xff]  ;;  %v7473_v4 = vld [vmem:[%s9307_s1 + $0x9a8] sm:$0xff] }
  0xf1   :  { %4673 = vmatpush.bf16.msrb.mxu3 %v7416_v43  ;;  %v7446_v43 = vld [vmem:[%s9307_s1 + $0x8d0] sm:$0xff] }
  0xf2   :  { %4635 = vmatpush.bf16.msrb.mxu0 %v7391_v45  ;;  %v7429_v45 = vld [vmem:[%s9307_s1 + $0x848] sm:$0xff]  ;;  %v7482_v1 = vld [vmem:[%s9307_s1 + $0x9f0] sm:$0xff] }
  0xf3   :  { %4648 = vmatpush.bf16.msrb.mxu1 %v7399_v46  ;;  %v7437_v46 = vld [vmem:[%s9307_s1 + $0x888] sm:$0xff] }
  0xf4   :  { %4661 = vmatpush.bf16.msrb.mxu2 %v7407_v47  ;;  %v7445_v47 = vld [vmem:[%s9307_s1 + $0x8c8] sm:$0xff] }
  0xf5   :  { %4674 = vmatpush.bf16.msrb.mxu3 %v7415_v48 }
  0xf6   :  { %4636 = vmatpush.bf16.msrb.mxu0 %v7390_v54  ;;  %v7459_v54 = vld [vmem:[%s9307_s1 + $0x938] sm:$0xff] }
  0xf7   :  { %4649 = vmatpush.bf16.msrb.mxu1 %v7398_v55  ;;  %v7467_v55 = vld [vmem:[%s9307_s1 + $0x978] sm:$0xff] }
  0xf8   :  { %4662 = vmatpush.bf16.msrb.mxu2 %v7406_v57  ;;  %v7483_v57 = vld [vmem:[%s9307_s1 + $0x9f8] sm:$0xff] }
  0xf9   :  { %4675 = vmatpush.bf16.msrb.mxu3 %v7414_v58  ;;  %v1093_v58 = vld [vmem:[#allocation1] sm:$0xff] }
  0xfa   :  { %4637 = vmatpush.bf16.msrb.mxu0 %v7389_v59  ;;  %v1095_v59 = vld [vmem:[#allocation1 + $0x12] sm:$0xff] }
  0xfb   :  { %4650 = vmatpush.bf16.msrb.mxu1 %v7397_v60  ;;  %v1094_v60 = vld [vmem:[#allocation1 + $0x9] sm:$0xff] }
  0xfc   :  { %4663 = vmatpush.bf16.msrb.mxu2 %v7405_v61  ;;  %v1096_v61 = vld [vmem:[#allocation1 + $0x1b] sm:$0xff] }
  0xfd   :  { %4676 = vmatpush.bf16.msrb.mxu3 %v7413_v62  ;;  %v7458_v62 = vld [vmem:[%s9307_s1 + $0x930] sm:$0xff] }
  0xfe   :  { %4638 = vmatpush.bf16.msrb.mxu0 %v7388_v6  ;;  %v4432_v22 = vpop.f32.mrf.mxu0 }
  0xff   :  { %4651 = vmatpush.bf16.msrb.mxu1 %v7396_v7  ;;  %v4433_v23 = vadd.f32 %v4432_v22, %v8475_v53  ;;  %v4445_v26 = vpop.f32.mrf.mxu1  ;;  %v7444_v53 = vld [vmem:[%s9307_s1 + $0x8c0] sm:$0xff] }
 0x100   :  { %4664 = vmatpush.bf16.msrb.mxu2 %v7404_v8  ;;  %v7456_v8 = vld [vmem:[%s9307_s1 + $0x920] sm:$0xff] }
 0x101   :  { %4677 = vmatpush.bf16.msrb.mxu3 %v7412_v9  ;;  %4639 = vmatmul.bf16.vlgmr.msrb.gmra.mxu0 %v1087_v63  ;;  %v4446_v29 = vadd.f32 %v4445_v26, %v4433_v23  ;;  %v7466_v63 = vld [vmem:[%s9307_s1 + $0x970] sm:$0xff]  ;;  %v7464_v9 = vld [vmem:[%s9307_s1 + $0x960] sm:$0xff] }
 0x102   :  { %4683 = vmatpush.bf16.msra.mxu0 %v7427_v10  ;;  %4652 = vmatmul.bf16.vlgmr.msrb.gmra.mxu1 %v1088_v2  ;;  %v7457_v2 = vld [vmem:[%s9307_s1 + $0x928] sm:$0xff]  ;;  %v7454_v23 = vld [vmem:[%s9307_s1 + $0x910] sm:$0xff] }
 0x103   :  { %4696 = vmatpush.bf16.msra.mxu1 %v7435_v11  ;;  %4665 = vmatmul.bf16.vlgmr.msrb.gmra.mxu2 %v1089_v0  ;;  %v7474_v0 = vld [vmem:[%s9307_s1 + $0x9b0] sm:$0xff]  ;;  %v7472_v11 = vld [vmem:[%s9307_s1 + $0x9a0] sm:$0xff] }
 0x104   :  { %4709 = vmatpush.bf16.msra.mxu2 %v7443_v12  ;;  %4678 = vmatmul.bf16.vlgmr.msrb.gmra.mxu3 %v1090_v3  ;;  %v7465_v3 = vld [vmem:[%s9307_s1 + $0x968] sm:$0xff]  ;;  %v7480_v12 = vld [vmem:[%s9307_s1 + $0x9e0] sm:$0xff]  ;;  %v7470_v26 = vld [vmem:[%s9307_s1 + $0x990] sm:$0xff] }
 0x105   :  { %4722 = vmatpush.bf16.msra.mxu3 %v7451_v13 }
 0x106   :  { %4684 = vmatpush.bf16.msra.mxu0 %v7426_v14  ;;  %v4458_v34 = vpop.f32.mrf.mxu2  ;;  %v4434_v37 = vpop.f32.mrf.mxu0  ;;  %v7455_v14 = vld [vmem:[%s9307_s1 + $0x918] sm:$0xff] }
 0x107   :  { %4697 = vmatpush.bf16.msra.mxu1 %v7434_v15  ;;  %v4459_v35 = vadd.f32 %v4458_v34, %v4446_v29  ;;  %v4471_v36 = vpop.f32.mrf.mxu3  ;;  %v4447_v41 = vpop.f32.mrf.mxu1  ;;  %v7463_v15 = vld [vmem:[%s9307_s1 + $0x958] sm:$0xff]  ;;  %v7461_v29 = vld [vmem:[%s9307_s1 + $0x948] sm:$0xff] }
 0x108   :  { %4710 = vmatpush.bf16.msra.mxu2 %v7442_v16  ;;  %v7471_v16 = vld [vmem:[%s9307_s1 + $0x998] sm:$0xff]  ;;  %v7468_v41 = vld [vmem:[%s9307_s1 + $0x980] sm:$0xff] }
 0x109   :  { %4723 = vmatpush.bf16.msra.mxu3 %v7450_v17  ;;  %v4472_v38 = vadd.f32 %v4471_v36, %v4459_v35  ;;  %v7479_v17 = vld [vmem:[%s9307_s1 + $0x9d8] sm:$0xff]  ;;  %v1098_v35 = vld [vmem:[#allocation1 + $0x2d] sm:$0xff] }
 0x10a   :  { %4685 = vmatpush.bf16.msra.mxu0 %v7425_v18  ;;  %v1100_v36 = vld [vmem:[#allocation1 + $0x3f] sm:$0xff] }
 0x10b   :  { %4698 = vmatpush.bf16.msra.mxu1 %v7433_v19 }
 0x10c   :  { %4711 = vmatpush.bf16.msra.mxu2 %v7441_v20 }
 0x10d   :  { %4724 = vmatpush.bf16.msra.mxu3 %v7449_v21 }
 0x10e   :  { %4686 = vmatpush.bf16.msra.mxu0 %v7424_v24  ;;  %v4460_v48 = vpop.f32.mrf.mxu2  ;;  %v7462_v24 = vld [vmem:[%s9307_s1 + $0x950] sm:$0xff] }
 0x10f   :  { %4699 = vmatpush.bf16.msra.mxu1 %v7432_v25  ;;  %v4473_v49 = vpop.f32.mrf.mxu3  ;;  %v7498_v48 = vld [vmem:[%s9307_s1 + $0xa70] sm:$0xff] }
 0x110   :  { %4712 = vmatpush.bf16.msra.mxu2 %v7440_v27  ;;  %v7478_v27 = vld [vmem:[%s9307_s1 + $0x9d0] sm:$0xff] }
 0x111   :  { %4725 = vmatpush.bf16.msra.mxu3 %v7448_v28  ;;  %v7453_v28 = vld [vmem:[%s9307_s1 + $0x908] sm:$0xff]  ;;  %v7506_v49 = vld [vmem:[%s9307_s1 + $0xab0] sm:$0xff] }
 0x112   :  { %4687 = vmatpush.bf16.msra.mxu0 %v7423_v30  ;;  %v7469_v30 = vld [vmem:[%s9307_s1 + $0x988] sm:$0xff] }
 0x113   :  { %4700 = vmatpush.bf16.msra.mxu1 %v7431_v31  ;;  %v7477_v31 = vld [vmem:[%s9307_s1 + $0x9c8] sm:$0xff] }
 0x114   :  { %4713 = vmatpush.bf16.msra.mxu2 %v7439_v32  ;;  %v1097_v32 = vld [vmem:[#allocation1 + $0x24] sm:$0xff] }
 0x115   :  { %4726 = vmatpush.bf16.msra.mxu3 %v7447_v33  ;;  %v1099_v33 = vld [vmem:[#allocation1 + $0x36] sm:$0xff] }
 0x116   :  { %4688 = vmatpush.bf16.msra.mxu0 %v7422_v39  ;;  %v7452_v39 = vld [vmem:[%s9307_s1 + $0x900] sm:$0xff] }
 0x117   :  { %4701 = vmatpush.bf16.msra.mxu1 %v7430_v40  ;;  %v7460_v40 = vld [vmem:[%s9307_s1 + $0x940] sm:$0xff] }
 0x118   :  { %4714 = vmatpush.bf16.msra.mxu2 %v7438_v42  ;;  %v7476_v42 = vld [vmem:[%s9307_s1 + $0x9c0] sm:$0xff] }
 0x119   :  { %4727 = vmatpush.bf16.msra.mxu3 %v7446_v43  ;;  %v7491_v43 = vld [vmem:[%s9307_s1 + $0xa38] sm:$0xff] }
 0x11a   :  { %4689 = vmatpush.bf16.msra.mxu0 %v7421_v44  ;;  %v7499_v44 = vld [vmem:[%s9307_s1 + $0xa78] sm:$0xff] }
 0x11b   :  { %4702 = vmatpush.bf16.msra.mxu1 %v7429_v45  ;;  %v7507_v45 = vld [vmem:[%s9307_s1 + $0xab8] sm:$0xff] }
 0x11c   :  { %4715 = vmatpush.bf16.msra.mxu2 %v7437_v46  ;;  %v7515_v46 = vld [vmem:[%s9307_s1 + $0xaf8] sm:$0xff] }
 0x11d   :  { %4728 = vmatpush.bf16.msra.mxu3 %v7445_v47  ;;  %v7490_v47 = vld [vmem:[%s9307_s1 + $0xa30] sm:$0xff] }
 0x11e   :  { %4690 = vmatpush.bf16.msra.mxu0 %v7420_v50  ;;  %v4484_v6 = vpop.f32.mrf.mxu0  ;;  %v7514_v50 = vld [vmem:[%s9307_s1 + $0xaf0] sm:$0xff] }
 0x11f   :  { %4703 = vmatpush.bf16.msra.mxu1 %v7428_v51  ;;  %v4485_v7 = vadd.f32 %v4484_v6, %v4472_v38  ;;  %v4497_v10 = vpop.f32.mrf.mxu1  ;;  %v20_v38 = vld [vmem:[%s9306_s0 + $0x28] sm:$0xff] }
 0x120   :  { %4716 = vmatpush.bf16.msra.mxu2 %v7436_v52  ;;  %1102 = vst [vmem:[#allocation1] ss:$9 sm:$0xff] %v20_v38  ;;  %v7489_v51 = vld [vmem:[%s9307_s1 + $0xa28] sm:$0xff] }
 0x121   :  { %4729 = vmatpush.bf16.msra.mxu3 %v7444_v53  ;;  %4691 = vmatmul.bf16.vlgmr.msra.gmra.mxu0 %v1093_v58  ;;  %v4498_v13 = vadd.f32 %v4497_v10, %v4485_v7  ;;  %v7497_v52 = vld [vmem:[%s9307_s1 + $0xa68] sm:$0xff]  ;;  %v7496_v58 = vld [vmem:[%s9307_s1 + $0xa60] sm:$0xff] }
 0x122   :  { %4735 = vmatpush.bf16.msrb.mxu0 %v7459_v54  ;;  %4704 = vmatmul.bf16.vlgmr.msra.gmra.mxu1 %v1094_v60  ;;  %v7505_v53 = vld [vmem:[%s9307_s1 + $0xaa8] sm:$0xff]  ;;  %v7504_v60 = vld [vmem:[%s9307_s1 + $0xaa0] sm:$0xff] }
 0x123   :  { %4748 = vmatpush.bf16.msrb.mxu1 %v7467_v55  ;;  %4717 = vmatmul.bf16.vlgmr.msra.gmra.mxu2 %v1095_v59  ;;  %v7513_v54 = vld [vmem:[%s9307_s1 + $0xae8] sm:$0xff] }
 0x124   :  { %4761 = vmatpush.bf16.msrb.mxu2 %v7475_v56  ;;  %4730 = vmatmul.bf16.vlgmr.msra.gmra.mxu3 %v1096_v61  ;;  %v7512_v61 = vld [vmem:[%s9307_s1 + $0xae0] sm:$0xff]  ;;  %v7545_v38 = vld [vmem:[%s9307_s1 + $0xbe8] sm:$0xff] }
 0x125   :  { %4774 = vmatpush.bf16.msrb.mxu3 %v7483_v57  ;;  %v7488_v57 = vld [vmem:[%s9307_s1 + $0xa20] sm:$0xff] }
 0x126   :  { %4736 = vmatpush.bf16.msrb.mxu0 %v7458_v62  ;;  %v4510_v18 = vpop.f32.mrf.mxu2  ;;  %v4486_v21 = vpop.f32.mrf.mxu0 }
 0x127   :  { %4749 = vmatpush.bf16.msrb.mxu1 %v7466_v63  ;;  %v4511_v19 = vadd.f32 %v4510_v18, %v4498_v13  ;;  %v4523_v20 = vpop.f32.mrf.mxu3  ;;  %v4499_v25 = vpop.f32.mrf.mxu1  ;;  %v7487_v63 = vld [vmem:[%s9307_s1 + $0xa18] sm:$0xff]  ;;  %v7485_v13 = vld [vmem:[%s9307_s1 + $0xa08] sm:$0xff]  ;;  %v7500_v21 = vld [vmem:[%s9307_s1 + $0xa80] sm:$0xff] }
 0x128   :  { %4762 = vmatpush.bf16.msrb.mxu2 %v7474_v0  ;;  %v7495_v0 = vld [vmem:[%s9307_s1 + $0xa58] sm:$0xff] }
 0x129   :  { %4775 = vmatpush.bf16.msrb.mxu3 %v7482_v1  ;;  %v8673_v22 = vadd.f32 %v4523_v20, %v4511_v19  ;;  %v7503_v1 = vld [vmem:[%s9307_s1 + $0xa98] sm:$0xff]  ;;  %v7484_v19 = vld [vmem:[%s9307_s1 + $0xa00] sm:$0xff] }
 0x12a   :  { %4737 = vmatpush.bf16.msrb.mxu0 %v7457_v2  ;;  %v7511_v2 = vld [vmem:[%s9307_s1 + $0xad8] sm:$0xff]  ;;  %v7492_v20 = vld [vmem:[%s9307_s1 + $0xa40] sm:$0xff] }
 0x12b   :  { %4750 = vmatpush.bf16.msrb.mxu1 %v7465_v3  ;;  %v7539_v25 = vld [vmem:[%s9307_s1 + $0xbb8] sm:$0xff] }
 0x12c   :  { %4763 = vmatpush.bf16.msrb.mxu2 %v7473_v4 }
 0x12d   :  { %4776 = vmatpush.bf16.msrb.mxu3 %v7481_v5 }
 0x12e   :  { %4738 = vmatpush.bf16.msrb.mxu0 %v7456_v8  ;;  %v4512_v34 = vpop.f32.mrf.mxu2  ;;  %v7486_v8 = vld [vmem:[%s9307_s1 + $0xa10] sm:$0xff] }
 0x12f   :  { %4751 = vmatpush.bf16.msrb.mxu1 %v7464_v9  ;;  %v4525_v37 = vpop.f32.mrf.mxu3  ;;  %v7494_v9 = vld [vmem:[%s9307_s1 + $0xa50] sm:$0xff] }
 0x130   :  { %4764 = vmatpush.bf16.msrb.mxu2 %v7472_v11  ;;  %v7502_v11 = vld [vmem:[%s9307_s1 + $0xa90] sm:$0xff]  ;;  %v7537_v37 = vld [vmem:[%s9307_s1 + $0xba8] sm:$0xff] }
 0x131   :  { %4777 = vmatpush.bf16.msrb.mxu3 %v7480_v12  ;;  %v7510_v12 = vld [vmem:[%s9307_s1 + $0xad0] sm:$0xff] }
 0x132   :  { %4739 = vmatpush.bf16.msrb.mxu0 %v7455_v14  ;;  %v7493_v14 = vld [vmem:[%s9307_s1 + $0xa48] sm:$0xff]  ;;  %v7546_v34 = vld [vmem:[%s9307_s1 + $0xbf0] sm:$0xff] }
 0x133   :  { %4752 = vmatpush.bf16.msrb.mxu1 %v7463_v15  ;;  %v7501_v15 = vld [vmem:[%s9307_s1 + $0xa88] sm:$0xff] }
 0x134   :  { %4765 = vmatpush.bf16.msrb.mxu2 %v7471_v16  ;;  %v7509_v16 = vld [vmem:[%s9307_s1 + $0xac8] sm:$0xff] }
 0x135   :  { %4778 = vmatpush.bf16.msrb.mxu3 %v7479_v17 }
 0x136   :  { %4740 = vmatpush.bf16.msrb.mxu0 %v7454_v23  ;;  %v7523_v23 = vld [vmem:[%s9307_s1 + $0xb38] sm:$0xff] }
 0x137   :  { %4753 = vmatpush.bf16.msrb.mxu1 %v7462_v24  ;;  %v7531_v24 = vld [vmem:[%s9307_s1 + $0xb78] sm:$0xff] }
 0x138   :  { %4766 = vmatpush.bf16.msrb.mxu2 %v7470_v26  ;;  %v7547_v26 = vld [vmem:[%s9307_s1 + $0xbf8] sm:$0xff] }
 0x139   :  { %4779 = vmatpush.bf16.msrb.mxu3 %v7478_v27  ;;  %v1103_v27 = vld [vmem:[#allocation1] sm:$0xff] }
 0x13a   :  { %4741 = vmatpush.bf16.msrb.mxu0 %v7453_v28  ;;  %v1105_v28 = vld [vmem:[#allocation1 + $0x12] sm:$0xff] }
 0x13b   :  { %4754 = vmatpush.bf16.msrb.mxu1 %v7461_v29  ;;  %v1104_v29 = vld [vmem:[#allocation1 + $0x9] sm:$0xff] }
 0x13c   :  { %4767 = vmatpush.bf16.msrb.mxu2 %v7469_v30  ;;  %v1106_v30 = vld [vmem:[#allocation1 + $0x1b] sm:$0xff] }
 0x13d   :  { %4780 = vmatpush.bf16.msrb.mxu3 %v7477_v31  ;;  %v7522_v31 = vld [vmem:[%s9307_s1 + $0xb30] sm:$0xff] }
 0x13e   :  { %4742 = vmatpush.bf16.msrb.mxu0 %v7452_v39  ;;  %v4536_v55 = vpop.f32.mrf.mxu0 }
 0x13f   :  { %4755 = vmatpush.bf16.msrb.mxu1 %v7460_v40  ;;  %v4537_v56 = vadd.f32 %v4536_v55, %v8673_v22  ;;  %v4549_v59 = vpop.f32.mrf.mxu1  ;;  %v7508_v22 = vld [vmem:[%s9307_s1 + $0xac0] sm:$0xff] }
 0x140   :  { %4768 = vmatpush.bf16.msrb.mxu2 %v7468_v41  ;;  %v7520_v41 = vld [vmem:[%s9307_s1 + $0xb20] sm:$0xff] }
 0x141   :  { %4781 = vmatpush.bf16.msrb.mxu3 %v7476_v42  ;;  %4743 = vmatmul.bf16.vlgmr.msrb.gmra.mxu0 %v1097_v32  ;;  %v4550_v62 = vadd.f32 %v4549_v59, %v4537_v56  ;;  %v7530_v32 = vld [vmem:[%s9307_s1 + $0xb70] sm:$0xff]  ;;  %v7528_v42 = vld [vmem:[%s9307_s1 + $0xb60] sm:$0xff] }
 0x142   :  { %4787 = vmatpush.bf16.msra.mxu0 %v7491_v43  ;;  %4756 = vmatmul.bf16.vlgmr.msrb.gmra.mxu1 %v1098_v35  ;;  %v7521_v35 = vld [vmem:[%s9307_s1 + $0xb28] sm:$0xff]  ;;  %v7518_v56 = vld [vmem:[%s9307_s1 + $0xb10] sm:$0xff] }
 0x143   :  { %4800 = vmatpush.bf16.msra.mxu1 %v7499_v44  ;;  %4769 = vmatmul.bf16.vlgmr.msrb.gmra.mxu2 %v1099_v33  ;;  %v7538_v33 = vld [vmem:[%s9307_s1 + $0xbb0] sm:$0xff]  ;;  %v7536_v44 = vld [vmem:[%s9307_s1 + $0xba0] sm:$0xff] }
 0x144   :  { %4813 = vmatpush.bf16.msra.mxu2 %v7507_v45  ;;  %4782 = vmatmul.bf16.vlgmr.msrb.gmra.mxu3 %v1100_v36  ;;  %v7529_v36 = vld [vmem:[%s9307_s1 + $0xb68] sm:$0xff]  ;;  %v7544_v45 = vld [vmem:[%s9307_s1 + $0xbe0] sm:$0xff]  ;;  %v7534_v59 = vld [vmem:[%s9307_s1 + $0xb90] sm:$0xff] }
 0x145   :  { %4826 = vmatpush.bf16.msra.mxu3 %v7515_v46 }
 0x146   :  { %4788 = vmatpush.bf16.msra.mxu0 %v7490_v47  ;;  %v4562_v3 = vpop.f32.mrf.mxu2  ;;  %v4538_v6 = vpop.f32.mrf.mxu0  ;;  %v7519_v47 = vld [vmem:[%s9307_s1 + $0xb18] sm:$0xff] }
 0x147   :  { %4801 = vmatpush.bf16.msra.mxu1 %v7498_v48  ;;  %v4563_v4 = vadd.f32 %v4562_v3, %v4550_v62  ;;  %v4575_v5 = vpop.f32.mrf.mxu3  ;;  %v4551_v10 = vpop.f32.mrf.mxu1  ;;  %v7527_v48 = vld [vmem:[%s9307_s1 + $0xb58] sm:$0xff]  ;;  %v7525_v62 = vld [vmem:[%s9307_s1 + $0xb48] sm:$0xff] }
 0x148   :  { %4814 = vmatpush.bf16.msra.mxu2 %v7506_v49  ;;  %v7535_v49 = vld [vmem:[%s9307_s1 + $0xb98] sm:$0xff]  ;;  %v7532_v10 = vld [vmem:[%s9307_s1 + $0xb80] sm:$0xff] }
 0x149   :  { %4827 = vmatpush.bf16.msra.mxu3 %v7514_v50  ;;  %v4576_v7 = vadd.f32 %v4575_v5, %v4563_v4  ;;  %v7543_v50 = vld [vmem:[%s9307_s1 + $0xbd8] sm:$0xff]  ;;  %v1108_v4 = vld [vmem:[#allocation1 + $0x2d] sm:$0xff] }
 0x14a   :  { %4789 = vmatpush.bf16.msra.mxu0 %v7489_v51  ;;  %v1110_v5 = vld [vmem:[#allocation1 + $0x3f] sm:$0xff] }
 0x14b   :  { %4802 = vmatpush.bf16.msra.mxu1 %v7497_v52 }
 0x14c   :  { %4815 = vmatpush.bf16.msra.mxu2 %v7505_v53 }
 0x14d   :  { %4828 = vmatpush.bf16.msra.mxu3 %v7513_v54 }
 0x14e   :  { %4790 = vmatpush.bf16.msra.mxu0 %v7488_v57  ;;  %v4564_v17 = vpop.f32.mrf.mxu2  ;;  %v7526_v57 = vld [vmem:[%s9307_s1 + $0xb50] sm:$0xff] }
 0x14f   :  { %4803 = vmatpush.bf16.msra.mxu1 %v7496_v58  ;;  %v4577_v18 = vpop.f32.mrf.mxu3  ;;  %v7562_v17 = vld [vmem:[%s9307_s1 + $0xc70] sm:$0xff] }
 0x150   :  { %4816 = vmatpush.bf16.msra.mxu2 %v7504_v60  ;;  %v7542_v60 = vld [vmem:[%s9307_s1 + $0xbd0] sm:$0xff] }
 0x151   :  { %4829 = vmatpush.bf16.msra.mxu3 %v7512_v61  ;;  %v7517_v61 = vld [vmem:[%s9307_s1 + $0xb08] sm:$0xff]  ;;  %v7570_v18 = vld [vmem:[%s9307_s1 + $0xcb0] sm:$0xff] }
 0x152   :  { %4791 = vmatpush.bf16.msra.mxu0 %v7487_v63  ;;  %v7533_v63 = vld [vmem:[%s9307_s1 + $0xb88] sm:$0xff] }
 0x153   :  { %4804 = vmatpush.bf16.msra.mxu1 %v7495_v0  ;;  %v7541_v0 = vld [vmem:[%s9307_s1 + $0xbc8] sm:$0xff] }
 0x154   :  { %4817 = vmatpush.bf16.msra.mxu2 %v7503_v1  ;;  %v1107_v1 = vld [vmem:[#allocation1 + $0x24] sm:$0xff] }
 0x155   :  { %4830 = vmatpush.bf16.msra.mxu3 %v7511_v2  ;;  %v1109_v2 = vld [vmem:[#allocation1 + $0x36] sm:$0xff] }
 0x156   :  { %4792 = vmatpush.bf16.msra.mxu0 %v7486_v8  ;;  %v7516_v8 = vld [vmem:[%s9307_s1 + $0xb00] sm:$0xff] }
 0x157   :  { %4805 = vmatpush.bf16.msra.mxu1 %v7494_v9  ;;  %v7524_v9 = vld [vmem:[%s9307_s1 + $0xb40] sm:$0xff] }
 0x158   :  { %4818 = vmatpush.bf16.msra.mxu2 %v7502_v11  ;;  %v7540_v11 = vld [vmem:[%s9307_s1 + $0xbc0] sm:$0xff] }
 0x159   :  { %4831 = vmatpush.bf16.msra.mxu3 %v7510_v12  ;;  %v7555_v12 = vld [vmem:[%s9307_s1 + $0xc38] sm:$0xff] }
 0x15a   :  { %4793 = vmatpush.bf16.msra.mxu0 %v7485_v13  ;;  %v7563_v13 = vld [vmem:[%s9307_s1 + $0xc78] sm:$0xff] }
 0x15b   :  { %4806 = vmatpush.bf16.msra.mxu1 %v7493_v14  ;;  %v7571_v14 = vld [vmem:[%s9307_s1 + $0xcb8] sm:$0xff] }
 0x15c   :  { %4819 = vmatpush.bf16.msra.mxu2 %v7501_v15  ;;  %v7579_v15 = vld [vmem:[%s9307_s1 + $0xcf8] sm:$0xff] }
 0x15d   :  { %4832 = vmatpush.bf16.msra.mxu3 %v7509_v16  ;;  %v7554_v16 = vld [vmem:[%s9307_s1 + $0xc30] sm:$0xff] }
 0x15e   :  { %4794 = vmatpush.bf16.msra.mxu0 %v7484_v19  ;;  %v4588_v39 = vpop.f32.mrf.mxu0  ;;  %v7578_v19 = vld [vmem:[%s9307_s1 + $0xcf0] sm:$0xff] }
 0x15f   :  { %4807 = vmatpush.bf16.msra.mxu1 %v7492_v20  ;;  %v4589_v40 = vadd.f32 %v4588_v39, %v4576_v7  ;;  %v4601_v43 = vpop.f32.mrf.mxu1  ;;  %v21_v7 = vld [vmem:[%s9306_s0 + $0x30] sm:$0xff]  ;;  %v7553_v20 = vld [vmem:[%s9307_s1 + $0xc28] sm:$0xff] }
 0x160   :  { %4820 = vmatpush.bf16.msra.mxu2 %v7500_v21  ;;  %1112 = vst [vmem:[#allocation1] ss:$9 sm:$0xff] %v21_v7  ;;  %v7561_v21 = vld [vmem:[%s9307_s1 + $0xc68] sm:$0xff] }
 0x161   :  { %4833 = vmatpush.bf16.msra.mxu3 %v7508_v22  ;;  %4795 = vmatmul.bf16.vlgmr.msra.gmra.mxu0 %v1103_v27  ;;  %v4602_v46 = vadd.f32 %v4601_v43, %v4589_v40  ;;  %v7569_v22 = vld [vmem:[%s9307_s1 + $0xca8] sm:$0xff]  ;;  %v7560_v27 = vld [vmem:[%s9307_s1 + $0xc60] sm:$0xff] }
 0x162   :  { %4839 = vmatpush.bf16.msrb.mxu0 %v7523_v23  ;;  %4808 = vmatmul.bf16.vlgmr.msra.gmra.mxu1 %v1104_v29  ;;  %v7577_v23 = vld [vmem:[%s9307_s1 + $0xce8] sm:$0xff]  ;;  %v7568_v29 = vld [vmem:[%s9307_s1 + $0xca0] sm:$0xff] }
 0x163   :  { %4852 = vmatpush.bf16.msrb.mxu1 %v7531_v24  ;;  %4821 = vmatmul.bf16.vlgmr.msra.gmra.mxu2 %v1105_v28  ;;  %v7609_v7 = vld [vmem:[%s9307_s1 + $0xde8] sm:$0xff] }
 0x164   :  { %4865 = vmatpush.bf16.msrb.mxu2 %v7539_v25  ;;  %4834 = vmatmul.bf16.vlgmr.msra.gmra.mxu3 %v1106_v30  ;;  %v7576_v30 = vld [vmem:[%s9307_s1 + $0xce0] sm:$0xff] }
 0x165   :  { %4878 = vmatpush.bf16.msrb.mxu3 %v7547_v26  ;;  %v7552_v26 = vld [vmem:[%s9307_s1 + $0xc20] sm:$0xff] }
 0x166   :  { %4840 = vmatpush.bf16.msrb.mxu0 %v7522_v31  ;;  %v4614_v51 = vpop.f32.mrf.mxu2  ;;  %v4590_v54 = vpop.f32.mrf.mxu0 }
 0x167   :  { %4853 = vmatpush.bf16.msrb.mxu1 %v7530_v32  ;;  %v4615_v52 = vadd.f32 %v4614_v51, %v4602_v46  ;;  %v4627_v53 = vpop.f32.mrf.mxu3  ;;  %v4603_v58 = vpop.f32.mrf.mxu1  ;;  %v7551_v32 = vld [vmem:[%s9307_s1 + $0xc18] sm:$0xff]  ;;  %v7549_v46 = vld [vmem:[%s9307_s1 + $0xc08] sm:$0xff]  ;;  %v7564_v54 = vld [vmem:[%s9307_s1 + $0xc80] sm:$0xff] }
 0x168   :  { %4866 = vmatpush.bf16.msrb.mxu2 %v7538_v33  ;;  %v7559_v33 = vld [vmem:[%s9307_s1 + $0xc58] sm:$0xff] }
 0x169   :  { %4879 = vmatpush.bf16.msrb.mxu3 %v7546_v34  ;;  %v8871_v55 = vadd.f32 %v4627_v53, %v4615_v52  ;;  %v7567_v34 = vld [vmem:[%s9307_s1 + $0xc98] sm:$0xff]  ;;  %v7548_v52 = vld [vmem:[%s9307_s1 + $0xc00] sm:$0xff] }
 0x16a   :  { %4841 = vmatpush.bf16.msrb.mxu0 %v7521_v35  ;;  %v7575_v35 = vld [vmem:[%s9307_s1 + $0xcd8] sm:$0xff]  ;;  %v7556_v53 = vld [vmem:[%s9307_s1 + $0xc40] sm:$0xff] }
 0x16b   :  { %4854 = vmatpush.bf16.msrb.mxu1 %v7529_v36  ;;  %v7603_v58 = vld [vmem:[%s9307_s1 + $0xdb8] sm:$0xff] }
 0x16c   :  { %4867 = vmatpush.bf16.msrb.mxu2 %v7537_v37 }
 0x16d   :  { %4880 = vmatpush.bf16.msrb.mxu3 %v7545_v38 }
 0x16e   :  { %4842 = vmatpush.bf16.msrb.mxu0 %v7520_v41  ;;  %v4616_v3 = vpop.f32.mrf.mxu2  ;;  %v7550_v41 = vld [vmem:[%s9307_s1 + $0xc10] sm:$0xff] }
 0x16f   :  { %4855 = vmatpush.bf16.msrb.mxu1 %v7528_v42  ;;  %v4629_v6 = vpop.f32.mrf.mxu3  ;;  %v7558_v42 = vld [vmem:[%s9307_s1 + $0xc50] sm:$0xff] }
 0x170   :  { %4868 = vmatpush.bf16.msrb.mxu2 %v7536_v44  ;;  %v7566_v44 = vld [vmem:[%s9307_s1 + $0xc90] sm:$0xff]  ;;  %v7601_v6 = vld [vmem:[%s9307_s1 + $0xda8] sm:$0xff] }
 0x171   :  { %4881 = vmatpush.bf16.msrb.mxu3 %v7544_v45  ;;  %v7574_v45 = vld [vmem:[%s9307_s1 + $0xcd0] sm:$0xff] }
 0x172   :  { %4843 = vmatpush.bf16.msrb.mxu0 %v7519_v47  ;;  %v7557_v47 = vld [vmem:[%s9307_s1 + $0xc48] sm:$0xff]  ;;  %v7610_v3 = vld [vmem:[%s9307_s1 + $0xdf0] sm:$0xff] }
 0x173   :  { %4856 = vmatpush.bf16.msrb.mxu1 %v7527_v48  ;;  %v7565_v48 = vld [vmem:[%s9307_s1 + $0xc88] sm:$0xff] }
 0x174   :  { %4869 = vmatpush.bf16.msrb.mxu2 %v7535_v49  ;;  %v7573_v49 = vld [vmem:[%s9307_s1 + $0xcc8] sm:$0xff] }
 0x175   :  { %4882 = vmatpush.bf16.msrb.mxu3 %v7543_v50 }
 0x176   :  { %4844 = vmatpush.bf16.msrb.mxu0 %v7518_v56  ;;  %v7587_v56 = vld [vmem:[%s9307_s1 + $0xd38] sm:$0xff] }
 0x177   :  { %4857 = vmatpush.bf16.msrb.mxu1 %v7526_v57  ;;  %v7595_v57 = vld [vmem:[%s9307_s1 + $0xd78] sm:$0xff] }
 0x178   :  { %4870 = vmatpush.bf16.msrb.mxu2 %v7534_v59  ;;  %v7611_v59 = vld [vmem:[%s9307_s1 + $0xdf8] sm:$0xff] }
 0x179   :  { %4883 = vmatpush.bf16.msrb.mxu3 %v7542_v60  ;;  %v1113_v60 = vld [vmem:[#allocation1] sm:$0xff] }
 0x17a   :  { %4845 = vmatpush.bf16.msrb.mxu0 %v7517_v61  ;;  %v1115_v61 = vld [vmem:[#allocation1 + $0x12] sm:$0xff] }
 0x17b   :  { %4858 = vmatpush.bf16.msrb.mxu1 %v7525_v62  ;;  %v1114_v62 = vld [vmem:[#allocation1 + $0x9] sm:$0xff] }
 0x17c   :  { %4871 = vmatpush.bf16.msrb.mxu2 %v7533_v63  ;;  %v1116_v63 = vld [vmem:[#allocation1 + $0x1b] sm:$0xff] }
 0x17d   :  { %4884 = vmatpush.bf16.msrb.mxu3 %v7541_v0  ;;  %v7586_v0 = vld [vmem:[%s9307_s1 + $0xd30] sm:$0xff] }
 0x17e   :  { %4846 = vmatpush.bf16.msrb.mxu0 %v7516_v8  ;;  %v4640_v24 = vpop.f32.mrf.mxu0 }
 0x17f   :  { %4859 = vmatpush.bf16.msrb.mxu1 %v7524_v9  ;;  %v4641_v25 = vadd.f32 %v4640_v24, %v8871_v55  ;;  %v4653_v28 = vpop.f32.mrf.mxu1  ;;  %v7572_v55 = vld [vmem:[%s9307_s1 + $0xcc0] sm:$0xff] }
 0x180   :  { %4872 = vmatpush.bf16.msrb.mxu2 %v7532_v10  ;;  %v7584_v10 = vld [vmem:[%s9307_s1 + $0xd20] sm:$0xff] }
 0x181   :  { %4885 = vmatpush.bf16.msrb.mxu3 %v7540_v11  ;;  %4847 = vmatmul.bf16.vlgmr.msrb.gmra.mxu0 %v1107_v1  ;;  %v4654_v31 = vadd.f32 %v4653_v28, %v4641_v25  ;;  %v7594_v1 = vld [vmem:[%s9307_s1 + $0xd70] sm:$0xff]  ;;  %v7592_v11 = vld [vmem:[%s9307_s1 + $0xd60] sm:$0xff] }
 0x182   :  { %4891 = vmatpush.bf16.msra.mxu0 %v7555_v12  ;;  %4860 = vmatmul.bf16.vlgmr.msrb.gmra.mxu1 %v1108_v4  ;;  %v7585_v4 = vld [vmem:[%s9307_s1 + $0xd28] sm:$0xff]  ;;  %v7582_v25 = vld [vmem:[%s9307_s1 + $0xd10] sm:$0xff] }
 0x183   :  { %4904 = vmatpush.bf16.msra.mxu1 %v7563_v13  ;;  %4873 = vmatmul.bf16.vlgmr.msrb.gmra.mxu2 %v1109_v2  ;;  %v7602_v2 = vld [vmem:[%s9307_s1 + $0xdb0] sm:$0xff]  ;;  %v7600_v13 = vld [vmem:[%s9307_s1 + $0xda0] sm:$0xff] }
 0x184   :  { %4917 = vmatpush.bf16.msra.mxu2 %v7571_v14  ;;  %4886 = vmatmul.bf16.vlgmr.msrb.gmra.mxu3 %v1110_v5  ;;  %v7593_v5 = vld [vmem:[%s9307_s1 + $0xd68] sm:$0xff]  ;;  %v7608_v14 = vld [vmem:[%s9307_s1 + $0xde0] sm:$0xff]  ;;  %v7598_v28 = vld [vmem:[%s9307_s1 + $0xd90] sm:$0xff] }
 0x185   :  { %4930 = vmatpush.bf16.msra.mxu3 %v7579_v15 }
 0x186   :  { %4892 = vmatpush.bf16.msra.mxu0 %v7554_v16  ;;  %v4666_v36 = vpop.f32.mrf.mxu2  ;;  %v4642_v39 = vpop.f32.mrf.mxu0  ;;  %v7583_v16 = vld [vmem:[%s9307_s1 + $0xd18] sm:$0xff] }
 0x187   :  { %4905 = vmatpush.bf16.msra.mxu1 %v7562_v17  ;;  %v4667_v37 = vadd.f32 %v4666_v36, %v4654_v31  ;;  %v4679_v38 = vpop.f32.mrf.mxu3  ;;  %v4655_v43 = vpop.f32.mrf.mxu1  ;;  %v7591_v17 = vld [vmem:[%s9307_s1 + $0xd58] sm:$0xff]  ;;  %v7589_v31 = vld [vmem:[%s9307_s1 + $0xd48] sm:$0xff] }
 0x188   :  { %4918 = vmatpush.bf16.msra.mxu2 %v7570_v18  ;;  %v7599_v18 = vld [vmem:[%s9307_s1 + $0xd98] sm:$0xff]  ;;  %v7596_v43 = vld [vmem:[%s9307_s1 + $0xd80] sm:$0xff] }
 0x189   :  { %4931 = vmatpush.bf16.msra.mxu3 %v7578_v19  ;;  %v4680_v40 = vadd.f32 %v4679_v38, %v4667_v37  ;;  %v7607_v19 = vld [vmem:[%s9307_s1 + $0xdd8] sm:$0xff]  ;;  %v1118_v37 = vld [vmem:[#allocation1 + $0x2d] sm:$0xff] }
 0x18a   :  { %4893 = vmatpush.bf16.msra.mxu0 %v7553_v20  ;;  %v1120_v38 = vld [vmem:[#allocation1 + $0x3f] sm:$0xff] }
 0x18b   :  { %4906 = vmatpush.bf16.msra.mxu1 %v7561_v21 }
 0x18c   :  { %4919 = vmatpush.bf16.msra.mxu2 %v7569_v22 }
 0x18d   :  { %4932 = vmatpush.bf16.msra.mxu3 %v7577_v23 }
 0x18e   :  { %4894 = vmatpush.bf16.msra.mxu0 %v7552_v26  ;;  %v4668_v50 = vpop.f32.mrf.mxu2  ;;  %v7590_v26 = vld [vmem:[%s9307_s1 + $0xd50] sm:$0xff] }
 0x18f   :  { %4907 = vmatpush.bf16.msra.mxu1 %v7560_v27  ;;  %v4681_v51 = vpop.f32.mrf.mxu3  ;;  %v7626_v50 = vld [vmem:[%s9307_s1 + $0xe70] sm:$0xff] }
 0x190   :  { %4920 = vmatpush.bf16.msra.mxu2 %v7568_v29  ;;  %v7606_v29 = vld [vmem:[%s9307_s1 + $0xdd0] sm:$0xff] }
 0x191   :  { %4933 = vmatpush.bf16.msra.mxu3 %v7576_v30  ;;  %v7581_v30 = vld [vmem:[%s9307_s1 + $0xd08] sm:$0xff]  ;;  %v7634_v51 = vld [vmem:[%s9307_s1 + $0xeb0] sm:$0xff] }
 0x192   :  { %4895 = vmatpush.bf16.msra.mxu0 %v7551_v32  ;;  %v7597_v32 = vld [vmem:[%s9307_s1 + $0xd88] sm:$0xff] }
 0x193   :  { %4908 = vmatpush.bf16.msra.mxu1 %v7559_v33  ;;  %v7605_v33 = vld [vmem:[%s9307_s1 + $0xdc8] sm:$0xff] }
 0x194   :  { %4921 = vmatpush.bf16.msra.mxu2 %v7567_v34  ;;  %v1117_v34 = vld [vmem:[#allocation1 + $0x24] sm:$0xff] }
 0x195   :  { %4934 = vmatpush.bf16.msra.mxu3 %v7575_v35  ;;  %v1119_v35 = vld [vmem:[#allocation1 + $0x36] sm:$0xff] }
 0x196   :  { %4896 = vmatpush.bf16.msra.mxu0 %v7550_v41  ;;  %v7580_v41 = vld [vmem:[%s9307_s1 + $0xd00] sm:$0xff] }
 0x197   :  { %4909 = vmatpush.bf16.msra.mxu1 %v7558_v42  ;;  %v7588_v42 = vld [vmem:[%s9307_s1 + $0xd40] sm:$0xff] }
 0x198   :  { %4922 = vmatpush.bf16.msra.mxu2 %v7566_v44  ;;  %v7604_v44 = vld [vmem:[%s9307_s1 + $0xdc0] sm:$0xff] }
 0x199   :  { %4935 = vmatpush.bf16.msra.mxu3 %v7574_v45  ;;  %v7619_v45 = vld [vmem:[%s9307_s1 + $0xe38] sm:$0xff] }
 0x19a   :  { %4897 = vmatpush.bf16.msra.mxu0 %v7549_v46  ;;  %v7627_v46 = vld [vmem:[%s9307_s1 + $0xe78] sm:$0xff] }
 0x19b   :  { %4910 = vmatpush.bf16.msra.mxu1 %v7557_v47  ;;  %v7635_v47 = vld [vmem:[%s9307_s1 + $0xeb8] sm:$0xff] }
 0x19c   :  { %4923 = vmatpush.bf16.msra.mxu2 %v7565_v48  ;;  %v7643_v48 = vld [vmem:[%s9307_s1 + $0xef8] sm:$0xff] }
 0x19d   :  { %4936 = vmatpush.bf16.msra.mxu3 %v7573_v49  ;;  %v7618_v49 = vld [vmem:[%s9307_s1 + $0xe30] sm:$0xff] }
 0x19e   :  { %4898 = vmatpush.bf16.msra.mxu0 %v7548_v52  ;;  %v4692_v8 = vpop.f32.mrf.mxu0  ;;  %v7642_v52 = vld [vmem:[%s9307_s1 + $0xef0] sm:$0xff] }
 0x19f   :  { %4911 = vmatpush.bf16.msra.mxu1 %v7556_v53  ;;  %v4693_v9 = vadd.f32 %v4692_v8, %v4680_v40  ;;  %v4705_v12 = vpop.f32.mrf.mxu1  ;;  %v22_v40 = vld [vmem:[%s9306_s0 + $0x38] sm:$0xff]  ;;  %v7617_v53 = vld [vmem:[%s9307_s1 + $0xe28] sm:$0xff] }
 0x1a0   :  { %4924 = vmatpush.bf16.msra.mxu2 %v7564_v54  ;;  %1122 = vst [vmem:[#allocation1] ss:$9 sm:$0xff] %v22_v40  ;;  %v7625_v54 = vld [vmem:[%s9307_s1 + $0xe68] sm:$0xff] }
 0x1a1   :  { %4937 = vmatpush.bf16.msra.mxu3 %v7572_v55  ;;  %4899 = vmatmul.bf16.vlgmr.msra.gmra.mxu0 %v1113_v60  ;;  %v4706_v15 = vadd.f32 %v4705_v12, %v4693_v9  ;;  %v7633_v55 = vld [vmem:[%s9307_s1 + $0xea8] sm:$0xff]  ;;  %v7624_v60 = vld [vmem:[%s9307_s1 + $0xe60] sm:$0xff] }
 0x1a2   :  { %4943 = vmatpush.bf16.msrb.mxu0 %v7587_v56  ;;  %4912 = vmatmul.bf16.vlgmr.msra.gmra.mxu1 %v1114_v62  ;;  %v7641_v56 = vld [vmem:[%s9307_s1 + $0xee8] sm:$0xff]  ;;  %v7632_v62 = vld [vmem:[%s9307_s1 + $0xea0] sm:$0xff] }
 0x1a3   :  { %4956 = vmatpush.bf16.msrb.mxu1 %v7595_v57  ;;  %4925 = vmatmul.bf16.vlgmr.msra.gmra.mxu2 %v1115_v61  ;;  %v7673_v40 = vld [vmem:[%s9307_s1 + $0xfe8] sm:$0xff] }
 0x1a4   :  { %4969 = vmatpush.bf16.msrb.mxu2 %v7603_v58  ;;  %4938 = vmatmul.bf16.vlgmr.msra.gmra.mxu3 %v1116_v63  ;;  %v7640_v63 = vld [vmem:[%s9307_s1 + $0xee0] sm:$0xff] }
 0x1a5   :  { %4982 = vmatpush.bf16.msrb.mxu3 %v7611_v59  ;;  %v7616_v59 = vld [vmem:[%s9307_s1 + $0xe20] sm:$0xff] }
 0x1a6   :  { %4944 = vmatpush.bf16.msrb.mxu0 %v7586_v0  ;;  %v4718_v20 = vpop.f32.mrf.mxu2  ;;  %v4694_v23 = vpop.f32.mrf.mxu0 }
 0x1a7   :  { %4957 = vmatpush.bf16.msrb.mxu1 %v7594_v1  ;;  %v4719_v21 = vadd.f32 %v4718_v20, %v4706_v15  ;;  %v4731_v22 = vpop.f32.mrf.mxu3  ;;  %v4707_v27 = vpop.f32.mrf.mxu1  ;;  %v7615_v1 = vld [vmem:[%s9307_s1 + $0xe18] sm:$0xff]  ;;  %v7613_v15 = vld [vmem:[%s9307_s1 + $0xe08] sm:$0xff]  ;;  %v7628_v23 = vld [vmem:[%s9307_s1 + $0xe80] sm:$0xff] }
 0x1a8   :  { %4970 = vmatpush.bf16.msrb.mxu2 %v7602_v2  ;;  %v7623_v2 = vld [vmem:[%s9307_s1 + $0xe58] sm:$0xff] }
 0x1a9   :  { %4983 = vmatpush.bf16.msrb.mxu3 %v7610_v3  ;;  %v9069_v24 = vadd.f32 %v4731_v22, %v4719_v21  ;;  %v7631_v3 = vld [vmem:[%s9307_s1 + $0xe98] sm:$0xff]  ;;  %v7612_v21 = vld [vmem:[%s9307_s1 + $0xe00] sm:$0xff] }
 0x1aa   :  { %4945 = vmatpush.bf16.msrb.mxu0 %v7585_v4  ;;  %v7639_v4 = vld [vmem:[%s9307_s1 + $0xed8] sm:$0xff]  ;;  %v7620_v22 = vld [vmem:[%s9307_s1 + $0xe40] sm:$0xff] }
 0x1ab   :  { %4958 = vmatpush.bf16.msrb.mxu1 %v7593_v5  ;;  %v7667_v27 = vld [vmem:[%s9307_s1 + $0xfb8] sm:$0xff] }
 0x1ac   :  { %4971 = vmatpush.bf16.msrb.mxu2 %v7601_v6 }
 0x1ad   :  { %4984 = vmatpush.bf16.msrb.mxu3 %v7609_v7 }
 0x1ae   :  { %4946 = vmatpush.bf16.msrb.mxu0 %v7584_v10  ;;  %v4720_v36 = vpop.f32.mrf.mxu2  ;;  %v7614_v10 = vld [vmem:[%s9307_s1 + $0xe10] sm:$0xff] }
 0x1af   :  { %4959 = vmatpush.bf16.msrb.mxu1 %v7592_v11  ;;  %v4733_v39 = vpop.f32.mrf.mxu3  ;;  %v7622_v11 = vld [vmem:[%s9307_s1 + $0xe50] sm:$0xff] }
 0x1b0   :  { %4972 = vmatpush.bf16.msrb.mxu2 %v7600_v13  ;;  %v7630_v13 = vld [vmem:[%s9307_s1 + $0xe90] sm:$0xff]  ;;  %v7665_v39 = vld [vmem:[%s9307_s1 + $0xfa8] sm:$0xff] }
 0x1b1   :  { %4985 = vmatpush.bf16.msrb.mxu3 %v7608_v14  ;;  %v7638_v14 = vld [vmem:[%s9307_s1 + $0xed0] sm:$0xff] }
 0x1b2   :  { %4947 = vmatpush.bf16.msrb.mxu0 %v7583_v16  ;;  %v7621_v16 = vld [vmem:[%s9307_s1 + $0xe48] sm:$0xff]  ;;  %v7674_v36 = vld [vmem:[%s9307_s1 + $0xff0] sm:$0xff] }
 0x1b3   :  { %4960 = vmatpush.bf16.msrb.mxu1 %v7591_v17  ;;  %v7629_v17 = vld [vmem:[%s9307_s1 + $0xe88] sm:$0xff] }
 0x1b4   :  { %4973 = vmatpush.bf16.msrb.mxu2 %v7599_v18  ;;  %v7637_v18 = vld [vmem:[%s9307_s1 + $0xec8] sm:$0xff] }
 0x1b5   :  { %4986 = vmatpush.bf16.msrb.mxu3 %v7607_v19 }
 0x1b6   :  { %4948 = vmatpush.bf16.msrb.mxu0 %v7582_v25  ;;  %v7651_v25 = vld [vmem:[%s9307_s1 + $0xf38] sm:$0xff] }
 0x1b7   :  { %4961 = vmatpush.bf16.msrb.mxu1 %v7590_v26  ;;  %v7659_v26 = vld [vmem:[%s9307_s1 + $0xf78] sm:$0xff] }
 0x1b8   :  { %4974 = vmatpush.bf16.msrb.mxu2 %v7598_v28  ;;  %v7675_v28 = vld [vmem:[%s9307_s1 + $0xff8] sm:$0xff] }
 0x1b9   :  { %4987 = vmatpush.bf16.msrb.mxu3 %v7606_v29  ;;  %v1123_v29 = vld [vmem:[#allocation1] sm:$0xff] }
 0x1ba   :  { %4949 = vmatpush.bf16.msrb.mxu0 %v7581_v30  ;;  %v1125_v30 = vld [vmem:[#allocation1 + $0x12] sm:$0xff] }
 0x1bb   :  { %4962 = vmatpush.bf16.msrb.mxu1 %v7589_v31  ;;  %v1124_v31 = vld [vmem:[#allocation1 + $0x9] sm:$0xff] }
 0x1bc   :  { %4975 = vmatpush.bf16.msrb.mxu2 %v7597_v32  ;;  %v1126_v32 = vld [vmem:[#allocation1 + $0x1b] sm:$0xff] }
 0x1bd   :  { %4988 = vmatpush.bf16.msrb.mxu3 %v7605_v33  ;;  %v7650_v33 = vld [vmem:[%s9307_s1 + $0xf30] sm:$0xff] }
 0x1be   :  { %4950 = vmatpush.bf16.msrb.mxu0 %v7580_v41  ;;  %v4744_v57 = vpop.f32.mrf.mxu0 }
 0x1bf   :  { %4963 = vmatpush.bf16.msrb.mxu1 %v7588_v42  ;;  %v4745_v58 = vadd.f32 %v4744_v57, %v9069_v24  ;;  %v4757_v61 = vpop.f32.mrf.mxu1  ;;  %v7636_v24 = vld [vmem:[%s9307_s1 + $0xec0] sm:$0xff] }
 0x1c0   :  { %4976 = vmatpush.bf16.msrb.mxu2 %v7596_v43  ;;  %v7648_v43 = vld [vmem:[%s9307_s1 + $0xf20] sm:$0xff] }
 0x1c1   :  { %4989 = vmatpush.bf16.msrb.mxu3 %v7604_v44  ;;  %4951 = vmatmul.bf16.vlgmr.msrb.gmra.mxu0 %v1117_v34  ;;  %v4758_v0 = vadd.f32 %v4757_v61, %v4745_v58  ;;  %v7658_v34 = vld [vmem:[%s9307_s1 + $0xf70] sm:$0xff]  ;;  %v7656_v44 = vld [vmem:[%s9307_s1 + $0xf60] sm:$0xff] }
 0x1c2   :  { %4995 = vmatpush.bf16.msra.mxu0 %v7619_v45  ;;  %4964 = vmatmul.bf16.vlgmr.msrb.gmra.mxu1 %v1118_v37  ;;  %v7649_v37 = vld [vmem:[%s9307_s1 + $0xf28] sm:$0xff]  ;;  %v7646_v58 = vld [vmem:[%s9307_s1 + $0xf10] sm:$0xff] }
 0x1c3   :  { %5008 = vmatpush.bf16.msra.mxu1 %v7627_v46  ;;  %4977 = vmatmul.bf16.vlgmr.msrb.gmra.mxu2 %v1119_v35  ;;  %v7666_v35 = vld [vmem:[%s9307_s1 + $0xfb0] sm:$0xff]  ;;  %v7664_v46 = vld [vmem:[%s9307_s1 + $0xfa0] sm:$0xff] }
 0x1c4   :  { %5021 = vmatpush.bf16.msra.mxu2 %v7635_v47  ;;  %4990 = vmatmul.bf16.vlgmr.msrb.gmra.mxu3 %v1120_v38  ;;  %v7657_v38 = vld [vmem:[%s9307_s1 + $0xf68] sm:$0xff]  ;;  %v7672_v47 = vld [vmem:[%s9307_s1 + $0xfe0] sm:$0xff]  ;;  %v7662_v61 = vld [vmem:[%s9307_s1 + $0xf90] sm:$0xff] }
 0x1c5   :  { %5034 = vmatpush.bf16.msra.mxu3 %v7643_v48 }
 0x1c6   :  { %4996 = vmatpush.bf16.msra.mxu0 %v7618_v49  ;;  %v4770_v5 = vpop.f32.mrf.mxu2  ;;  %v4746_v8 = vpop.f32.mrf.mxu0  ;;  %v7647_v49 = vld [vmem:[%s9307_s1 + $0xf18] sm:$0xff] }
 0x1c7   :  { %5009 = vmatpush.bf16.msra.mxu1 %v7626_v50  ;;  %v4771_v6 = vadd.f32 %v4770_v5, %v4758_v0  ;;  %v4783_v7 = vpop.f32.mrf.mxu3  ;;  %v4759_v12 = vpop.f32.mrf.mxu1  ;;  %v7655_v50 = vld [vmem:[%s9307_s1 + $0xf58] sm:$0xff]  ;;  %v7653_v0 = vld [vmem:[%s9307_s1 + $0xf48] sm:$0xff]  ;;  %v7644_v5 = vld [vmem:[%s9307_s1 + $0xf00] sm:$0xff] }
 0x1c8   :  { %5022 = vmatpush.bf16.msra.mxu2 %v7634_v51  ;;  %v7663_v51 = vld [vmem:[%s9307_s1 + $0xf98] sm:$0xff]  ;;  %v7668_v8 = vld [vmem:[%s9307_s1 + $0xfc0] sm:$0xff] }
 0x1c9   :  { %5035 = vmatpush.bf16.msra.mxu3 %v7642_v52  ;;  %v4784_v9 = vadd.f32 %v4783_v7, %v4771_v6  ;;  %v7671_v52 = vld [vmem:[%s9307_s1 + $0xfd8] sm:$0xff]  ;;  %v7652_v6 = vld [vmem:[%s9307_s1 + $0xf40] sm:$0xff] }
 0x1ca   :  { %4997 = vmatpush.bf16.msra.mxu0 %v7617_v53  ;;  %v7660_v7 = vld [vmem:[%s9307_s1 + $0xf80] sm:$0xff] }
 0x1cb   :  { %5010 = vmatpush.bf16.msra.mxu1 %v7625_v54  ;;  %v1130_v12 = vld [vmem:[#allocation1 + $0x3f] sm:$0xff] }
 0x1cc   :  { %5023 = vmatpush.bf16.msra.mxu2 %v7633_v55 }
 0x1cd   :  { %5036 = vmatpush.bf16.msra.mxu3 %v7641_v56 }
 0x1ce   :  { %4998 = vmatpush.bf16.msra.mxu0 %v7616_v59  ;;  %v4772_v19 = vpop.f32.mrf.mxu2  ;;  %v7654_v59 = vld [vmem:[%s9307_s1 + $0xf50] sm:$0xff] }
 0x1cf   :  { %5011 = vmatpush.bf16.msra.mxu1 %v7624_v60  ;;  %v4785_v20 = vpop.f32.mrf.mxu3 }
 0x1d0   :  { %5024 = vmatpush.bf16.msra.mxu2 %v7632_v62  ;;  %v7670_v62 = vld [vmem:[%s9307_s1 + $0xfd0] sm:$0xff] }
 0x1d1   :  { %5037 = vmatpush.bf16.msra.mxu3 %v7640_v63  ;;  %v7645_v63 = vld [vmem:[%s9307_s1 + $0xf08] sm:$0xff] }
 0x1d2   :  { %4999 = vmatpush.bf16.msra.mxu0 %v7615_v1  ;;  %v7661_v1 = vld [vmem:[%s9307_s1 + $0xf88] sm:$0xff] }
 0x1d3   :  { %5012 = vmatpush.bf16.msra.mxu1 %v7623_v2  ;;  %v7669_v2 = vld [vmem:[%s9307_s1 + $0xfc8] sm:$0xff]  ;;  %s7704_s1 = smov [#allocation2]  }
 0x1d4   :  { %5025 = vmatpush.bf16.msra.mxu2 %v7631_v3  ;;  %s5105_s25 = sshll.u32 %s7704_s1, 4  ;;  %s5106_s25 = int_to_ptr.vmem [resolvable:$true] %s5105_s25 }
 0x1d5   :  { %5038 = vmatpush.bf16.msra.mxu3 %v7639_v4 }
 0x1d6   :  { %5000 = vmatpush.bf16.msra.mxu0 %v7614_v10  ;;  %v1128_v10 = vld [vmem:[#allocation1 + $0x2d] sm:$0xff] }
 0x1d7   :  { %5013 = vmatpush.bf16.msra.mxu1 %v7622_v11  ;;  %v1129_v11 = vld [vmem:[#allocation1 + $0x36] sm:$0xff] }
 0x1d8   :  { %5026 = vmatpush.bf16.msra.mxu2 %v7630_v13 }
 0x1d9   :  { %5039 = vmatpush.bf16.msra.mxu3 %v7638_v14 }
 0x1da   :  { %5001 = vmatpush.bf16.msra.mxu0 %v7613_v15 }
 0x1db   :  { %5014 = vmatpush.bf16.msra.mxu1 %v7621_v16 }
 0x1dc   :  { %5027 = vmatpush.bf16.msra.mxu2 %v7629_v17 }
 0x1dd   :  { %5040 = vmatpush.bf16.msra.mxu3 %v7637_v18 }
 0x1de   :  { %5002 = vmatpush.bf16.msra.mxu0 %v7612_v21  ;;  %v4796_v41 = vpop.f32.mrf.mxu0 }
 0x1df   :  { %5015 = vmatpush.bf16.msra.mxu1 %v7620_v22  ;;  %v4797_v42 = vadd.f32 %v4796_v41, %v4784_v9  ;;  %v4809_v45 = vpop.f32.mrf.mxu1  ;;  %v1127_v9 = vld [vmem:[#allocation1 + $0x24] sm:$0xff] }
 0x1e0   :  { %5028 = vmatpush.bf16.msra.mxu2 %v7628_v23 }
 0x1e1   :  { %5041 = vmatpush.bf16.msra.mxu3 %v7636_v24  ;;  %5003 = vmatmul.bf16.vlgmr.msra.gmra.mxu0 %v1123_v29  ;;  %v4810_v48 = vadd.f32 %v4809_v45, %v4797_v42 }
 0x1e2   :  { %5047 = vmatpush.bf16.msrb.mxu0 %v7651_v25  ;;  %5016 = vmatmul.bf16.vlgmr.msra.gmra.mxu1 %v1124_v31 }
 0x1e3   :  { %5060 = vmatpush.bf16.msrb.mxu1 %v7659_v26  ;;  %5029 = vmatmul.bf16.vlgmr.msra.gmra.mxu2 %v1125_v30 }
 0x1e4   :  { %5073 = vmatpush.bf16.msrb.mxu2 %v7667_v27  ;;  %5042 = vmatmul.bf16.vlgmr.msra.gmra.mxu3 %v1126_v32 }
 0x1e5   :  { %5086 = vmatpush.bf16.msrb.mxu3 %v7675_v28 }
 0x1e6   :  { %5048 = vmatpush.bf16.msrb.mxu0 %v7650_v33  ;;  %v4822_v53 = vpop.f32.mrf.mxu2  ;;  %v4798_v56 = vpop.f32.mrf.mxu0 }
 0x1e7   :  { %5061 = vmatpush.bf16.msrb.mxu1 %v7658_v34  ;;  %v4823_v54 = vadd.f32 %v4822_v53, %v4810_v48  ;;  %v4835_v55 = vpop.f32.mrf.mxu3  ;;  %v4811_v60 = vpop.f32.mrf.mxu1 }
 0x1e8   :  { %5074 = vmatpush.bf16.msrb.mxu2 %v7666_v35 }
 0x1e9   :  { %5087 = vmatpush.bf16.msrb.mxu3 %v7674_v36  ;;  %v4836_v57 = vadd.f32 %v4835_v55, %v4823_v54 }
 0x1ea   :  { %5049 = vmatpush.bf16.msrb.mxu0 %v7649_v37 }
 0x1eb   :  { %5062 = vmatpush.bf16.msrb.mxu1 %v7657_v38 }
 0x1ec   :  { %5075 = vmatpush.bf16.msrb.mxu2 %v7665_v39 }
 0x1ed   :  { %5088 = vmatpush.bf16.msrb.mxu3 %v7673_v40 }
 0x1ee   :  { %5050 = vmatpush.bf16.msrb.mxu0 %v7648_v43  ;;  %v4824_v3 = vpop.f32.mrf.mxu2 }
 0x1ef   :  { %5063 = vmatpush.bf16.msrb.mxu1 %v7656_v44  ;;  %v4837_v4 = vpop.f32.mrf.mxu3 }
 0x1f0   :  { %5076 = vmatpush.bf16.msrb.mxu2 %v7664_v46 }
 0x1f1   :  { %5089 = vmatpush.bf16.msrb.mxu3 %v7672_v47 }
 0x1f2   :  { %5051 = vmatpush.bf16.msrb.mxu0 %v7647_v49 }
 0x1f3   :  { %5064 = vmatpush.bf16.msrb.mxu1 %v7655_v50 }
 0x1f4   :  { %5077 = vmatpush.bf16.msrb.mxu2 %v7663_v51 }
 0x1f5   :  { %5090 = vmatpush.bf16.msrb.mxu3 %v7671_v52 }
 0x1f6   :  { %5052 = vmatpush.bf16.msrb.mxu0 %v7646_v58 }
 0x1f7   :  { %5065 = vmatpush.bf16.msrb.mxu1 %v7654_v59 }
 0x1f8   :  { %5078 = vmatpush.bf16.msrb.mxu2 %v7662_v61 }
 0x1f9   :  { %5091 = vmatpush.bf16.msrb.mxu3 %v7670_v62 }
 0x1fa   :  { %5053 = vmatpush.bf16.msrb.mxu0 %v7645_v63 }
 0x1fb   :  { %5066 = vmatpush.bf16.msrb.mxu1 %v7653_v0 }
 0x1fc   :  { %5079 = vmatpush.bf16.msrb.mxu2 %v7661_v1 }
 0x1fd   :  { %5092 = vmatpush.bf16.msrb.mxu3 %v7669_v2 }
 0x1fe   :  { %5054 = vmatpush.bf16.msrb.mxu0 %v7644_v5  ;;  %v4848_v13 = vpop.f32.mrf.mxu0 }
 0x1ff   :  { %5067 = vmatpush.bf16.msrb.mxu1 %v7652_v6  ;;  %v4849_v14 = vadd.f32 %v4848_v13, %v4836_v57  ;;  %v4861_v15 = vpop.f32.mrf.mxu1 }
 0x200   :  { %5080 = vmatpush.bf16.msrb.mxu2 %v7660_v7 }
 0x201   :  { %5093 = vmatpush.bf16.msrb.mxu3 %v7668_v8  ;;  %5055 = vmatmul.bf16.vlgmr.msrb.gmra.mxu0 %v1127_v9  ;;  %v4862_v16 = vadd.f32 %v4861_v15, %v4849_v14 }
 0x202   :  { %5068 = vmatmul.bf16.vlgmr.msrb.gmra.mxu1 %v1128_v10 }
 0x203   :  { %5081 = vmatmul.bf16.vlgmr.msrb.gmra.mxu2 %v1129_v11 }
 0x204   :  { %5094 = vmatmul.bf16.vlgmr.msrb.gmra.mxu3 %v1130_v12 }
 0x206   :  { %v4874_v17 = vpop.f32.mrf.mxu2  ;;  %v4850_v20 = vpop.f32.mrf.mxu0 }
 0x207   :  { %v4875_v18 = vadd.f32 %v4874_v17, %v4862_v16  ;;  %v4887_v19 = vpop.f32.mrf.mxu3  ;;  %v4863_v22 = vpop.f32.mrf.mxu1 }
 0x209   :  { %v4888_v21 = vadd.f32 %v4887_v19, %v4875_v18 }
 0x20e   :  { %v4876_v23 = vpop.f32.mrf.mxu2 }
 0x20f   :  { %v4889_v24 = vpop.f32.mrf.mxu3 }
 0x21e   :  { %v4900_v25 = vpop.f32.mrf.mxu0 }
 0x21f   :  { %v4901_v26 = vadd.f32 %v4900_v25, %v4888_v21  ;;  %v4913_v27 = vpop.f32.mrf.mxu1 }
 0x221   :  { %v4914_v28 = vadd.f32 %v4913_v27, %v4901_v26 }
 0x226   :  { %v4926_v29 = vpop.f32.mrf.mxu2  ;;  %v4902_v32 = vpop.f32.mrf.mxu0 }
 0x227   :  { %v4927_v30 = vadd.f32 %v4926_v29, %v4914_v28  ;;  %v4939_v31 = vpop.f32.mrf.mxu3  ;;  %v4915_v34 = vpop.f32.mrf.mxu1 }
 0x229   :  { %v4940_v33 = vadd.f32 %v4939_v31, %v4927_v30 }
 0x22e   :  { %v4928_v35 = vpop.f32.mrf.mxu2 }
 0x22f   :  { %v4941_v36 = vpop.f32.mrf.mxu3 }
 0x23e   :  { %v4952_v37 = vpop.f32.mrf.mxu0 }
 0x23f   :  { %v4965_v38 = vpop.f32.mrf.mxu1  ;;  %v4953_v48 = vadd.f32 %v4952_v37, %v4940_v33 }
 0x241   :  { %v4966_v52 = vadd.f32 %v4965_v38, %v4953_v48 }
 0x246   :  { %v4978_v39 = vpop.f32.mrf.mxu2  ;;  %v4954_v41 = vpop.f32.mrf.mxu0 }
 0x247   :  { %v4991_v40 = vpop.f32.mrf.mxu3  ;;  %v4967_v42 = vpop.f32.mrf.mxu1  ;;  %v4979_v53 = vadd.f32 %v4978_v39, %v4966_v52 }
 0x249   :  { %v4992_v56 = vadd.f32 %v4991_v40, %v4979_v53 }
 0x24e   :  { %v4980_v43 = vpop.f32.mrf.mxu2 }
 0x24f   :  { %v4993_v44 = vpop.f32.mrf.mxu3 }
 0x25e   :  { %v5004_v45 = vpop.f32.mrf.mxu0 }
 0x25f   :  { %v5017_v46 = vpop.f32.mrf.mxu1  ;;  %v5005_v57 = vadd.f32 %v5004_v45, %v4992_v56 }
 0x261   :  { %v5018_v58 = vadd.f32 %v5017_v46, %v5005_v57 }
 0x266   :  { %v5030_v47 = vpop.f32.mrf.mxu2  ;;  %v5006_v50 = vpop.f32.mrf.mxu0 }
 0x267   :  { %v5043_v49 = vpop.f32.mrf.mxu3  ;;  %v5019_v51 = vpop.f32.mrf.mxu1  ;;  %v5031_v59 = vadd.f32 %v5030_v47, %v5018_v58 }
 0x269   :  { %v5044_v60 = vadd.f32 %v5043_v49, %v5031_v59 }
 0x26e   :  { %v5032_v54 = vpop.f32.mrf.mxu2 }
 0x26f   :  { %v5045_v55 = vpop.f32.mrf.mxu3 }
 0x27e   :  { %v5056_v61 = vpop.f32.mrf.mxu0 }
 0x27f   :  { %v5069_v62 = vpop.f32.mrf.mxu1  ;;  %v5057_v63 = vadd.f32 %v5056_v61, %v5044_v60 }
 0x281   :  { %v5070_v0 = vadd.f32 %v5069_v62, %v5057_v63 }
 0x286   :  { %v5082_v1 = vpop.f32.mrf.mxu2  ;;  %v5058_v4 = vpop.f32.mrf.mxu0 }
 0x287   :  { %v5095_v2 = vpop.f32.mrf.mxu3  ;;  %v5083_v3 = vadd.f32 %v5082_v1, %v5070_v0  ;;  %v5071_v5 = vpop.f32.mrf.mxu1 }
 0x289   :  { %v5096_v6 = vadd.f32 %v5095_v2, %v5083_v3 }
 0x28b   :  { %5099 = vst [vmem:[#allocation2] sm:$0x3] %v5096_v6 }
 0x28c   :  { %5110 = dma.vmem_to_hbm [thread:$0]  %s5106_s25, 32, %s5108_s28, [#allocation3]  }
 0x28e   :  { %v5084_v7 = vpop.f32.mrf.mxu2 }
 0x28f   :  { %v5097_v8 = vpop.f32.mrf.mxu3 }
 0x290   :  { %7702 = dma.done.wait [#allocation3], 32  }
 0x291   :  { %7703 = vsyncadd [#allocation3], 4294967264 }
 0x292   :  { %5115 = vsyncpa [#allocation3], 1 }

</bundles_post_ra>
